<compile_context>
chip_gen: v6e
topology: v6e:2x2x1
jax: 0.10.0
libtpu: 0.0.40
codegen_flags: <defaults>
</compile_context>

<pallas_src>
import jax
import jax.numpy as jnp
from jax import lax
from jax.experimental import pallas as pl
from jax.experimental.pallas import tpu as pltpu


def bottleneck_kernel(x_ref, w1_ref, s1_ref, b1_ref,
                      w2_ref, s2_ref, b2_ref,
                      w3_ref, s3_ref, b3_ref,
                      o_ref, cs_ref, acc_ref):
    _, H, W, Cin = x_ref.shape
    Cw = w1_ref.shape[1]
    Cout = w3_ref.shape[1]
    HW = H * W
    f32 = jnp.float32
    bf16 = jnp.bfloat16

    # ---- conv1 (1x1) -> bn1 -> relu  (bf16 operands, f32 accumulation) -----
    x2d = x_ref[0].reshape(HW, Cin).astype(bf16)
    y1 = jnp.dot(x2d, w1_ref[...], preferred_element_type=f32)
    y1 = jnp.maximum(y1 * s1_ref[0] + b1_ref[0], 0.0)
    y1 = y1.reshape(H, W, Cw)

    # ---- stage three column-shifted copies of y1 with a 1-row halo ---------
    # cs_ref[kw, i, w, :] == padded_y1[i, w + kw, :]  (zero outside the image)
    zrow = jnp.zeros((1, W, Cw), f32)
    for kw in range(3):
        cs_ref[kw, 0:1, :, :] = zrow
        cs_ref[kw, H + 1:H + 2, :, :] = zrow
    zcol = jnp.zeros((H, 1, Cw), f32)
    cs_ref[0, 1:H + 1, 0:1, :] = zcol
    cs_ref[2, 1:H + 1, W - 1:W, :] = zcol
    cs_ref[1, 1:H + 1, :, :] = y1
    cs_ref[0, 1:H + 1, 1:W, :] = y1[:, 0:W - 1, :]
    cs_ref[2, 1:H + 1, 0:W - 1, :] = y1[:, 1:W, :]

    # ---- conv2 (3x3, stride 1, pad 1) -> bn2 -> relu ------------------------
    # Each tap window is a contiguous (H, W, Cw) slice (major-dim offset only),
    # so the reshape is layout-free.  Accumulate the 9 taps in f32 VMEM.
    for kh in range(3):
        for kw in range(3):
            win = cs_ref[kw, kh:kh + H, :, :].reshape(HW, Cw).astype(bf16)
            part = jnp.dot(win, w2_ref[kh, kw], preferred_element_type=f32)
            if kh == 0 and kw == 0:
                acc_ref[...] = part
            else:
                acc_ref[...] += part
    y2 = jnp.maximum(acc_ref[...] * s2_ref[0] + b2_ref[0], 0.0)

    # ---- conv3 (1x1) -> bn3 --------------------------------------------------
    y3 = jnp.dot(y2.astype(bf16), w3_ref[...], preferred_element_type=f32)
    y3 = y3 * s3_ref[0] + b3_ref[0]

    # ---- identity residual + relu (re-read x: short live range) -------------
    identity = x_ref[0].reshape(HW, Cout)       # Cin == Cout (asserted outside)
    out = jnp.maximum(y3 + identity, 0.0)
    o_ref[0] = out.reshape(H, W, Cout).astype(o_ref.dtype)


def bottleneck_forward(x_nchw, params):
    """x_nchw: (N, Cin, H, W) float32.  Returns (N, Cout, H, W) float32."""
    (w1, s1, b1, w2, s2, b2, w3, s3, b3) = params
    x = jnp.transpose(x_nchw, (0, 2, 3, 1))      # NCHW -> NHWC
    N, H, W, Cin = x.shape
    Cw = w1.shape[1]
    Cout = w3.shape[1]
    assert Cin == Cout, "identity residual needs inplanes == planes * expansion"

    # bf16 weights feed the MXU directly (f32 accumulation in-kernel).
    w1b, w2b, w3b = (w.astype(jnp.bfloat16) for w in (w1, w2, w3))

    def resident(a):            # whole array, same block every grid step
        return pl.BlockSpec(a.shape, lambda n, nd=a.ndim: (0,) * nd)

    flops = 2 * N * H * W * (Cin * Cw + 9 * Cw * Cw + Cw * Cout)
    bytes_accessed = (
        4 * (x.size + N * H * W * Cout)
        + 2 * (w1b.size + w2b.size + w3b.size)
        + 4 * (s1.size + b1.size + s2.size + b2.size + s3.size + b3.size))

    out = pl.pallas_call(
        bottleneck_kernel,
        out_shape=jax.ShapeDtypeStruct((N, H, W, Cout), x.dtype),
        grid=(N,),
        in_specs=[
            pl.BlockSpec((1, H, W, Cin), lambda n: (n, 0, 0, 0)),
            resident(w1b), resident(s1), resident(b1),
            resident(w2b), resident(s2), resident(b2),
            resident(w3b), resident(s3), resident(b3),
        ],
        out_specs=pl.BlockSpec((1, H, W, Cout), lambda n: (n, 0, 0, 0)),
        scratch_shapes=[
            pltpu.VMEM((3, H + 2, W, Cw), jnp.float32),   # column-shifted y1
            pltpu.VMEM((H * W, Cw), jnp.float32),         # 3x3 tap accumulator
        ],
        compiler_params=pltpu.CompilerParams(
            dimension_semantics=("parallel",),     # megacore on v7x; no-op v5e/v6e
            vmem_limit_bytes=32 * 1024 * 1024),
        cost_estimate=pl.CostEstimate(flops=flops, transcendentals=0,
                                      bytes_accessed=bytes_accessed),
    )(x, w1b, s1, b1, w2b, s2, b2, w3b, s3, b3)
    return jnp.transpose(out, (0, 3, 1, 2))      # NHWC -> NCHW


def make_params(key, inplanes, planes, base_width=64, groups=1):
    """Deterministic synthetic parameters matching Bottleneck.__init__ shapes."""
    width = int(planes * (base_width / 64.0)) * groups
    cout = planes * 4  # expansion = 4
    eps = 1e-5
    ks = jax.random.split(key, 12)

    def bn_fold(kg, kb, km, kv, c):
        gamma = 1.0 + 0.1 * jax.random.normal(kg, (c,), jnp.float32)
        beta = 0.1 * jax.random.normal(kb, (c,), jnp.float32)
        mean = 0.1 * jax.random.normal(km, (c,), jnp.float32)
        var = jnp.abs(jax.random.normal(kv, (c,), jnp.float32)) + 0.5
        scale = gamma / jnp.sqrt(var + eps)
        bias = beta - mean * scale
        return scale.reshape(1, c), bias.reshape(1, c)

    w1 = 0.1 * jax.random.normal(ks[0], (inplanes, width), jnp.float32)
    s1, b1 = bn_fold(ks[1], ks[2], ks[3], ks[4], width)
    w2 = 0.1 * jax.random.normal(ks[5], (3, 3, width, width), jnp.float32)
    s2, b2 = bn_fold(ks[6], ks[7], ks[8], ks[9], width)
    w3 = 0.1 * jax.random.normal(ks[10], (width, cout), jnp.float32)
    s3, b3 = bn_fold(ks[11], ks[0], ks[5], ks[10], cout)
    return (w1, s1, b1, w2, s2, b2, w3, s3, b3)


def reference_forward(x_nchw, params):
    """Pure-JAX reference (same math; bf16 conv operands, f32 accumulation)."""
    (w1, s1, b1, w2, s2, b2, w3, s3, b3) = params
    x = jnp.transpose(x_nchw, (0, 2, 3, 1))
    dn = ('NHWC', 'HWIO', 'NHWC')
    bf16 = jnp.bfloat16

    def conv(a, w, pad):
        return lax.conv_general_dilated(a.astype(bf16), w.astype(bf16), (1, 1),
                                        pad, dimension_numbers=dn,
                                        preferred_element_type=jnp.float32)

    y = conv(x, w1[None, None], 'VALID')
    y = jnp.maximum(y * s1[0] + b1[0], 0.0)
    y = conv(y, w2, ((1, 1), (1, 1)))
    y = jnp.maximum(y * s2[0] + b2[0], 0.0)
    y = conv(y, w3[None, None], 'VALID')
    y = y * s3[0] + b3[0]
    y = jnp.maximum(y + x, 0.0)
    return jnp.transpose(y, (0, 3, 1, 2))


if __name__ == "__main__":
    # stride=1, downsample=None, groups=1, base_width=64 (identity residual:
    # inplanes == planes * expansion).  Channels chosen so the output last dim
    # is lane-dense (Cout = 128) while shapes stay small.
    N, planes, H, W = 2, 32, 16, 16
    inplanes = planes * 4                          # 128
    key = jax.random.PRNGKey(0)
    kx, kp = jax.random.split(key)
    x = jax.random.normal(kx, (N, inplanes, H, W), jnp.float32)  # NCHW input
    params = make_params(kp, inplanes, planes)

    out = jax.block_until_ready(bottleneck_forward(x, params))
    ref = reference_forward(x, params)

    assert out.shape == (N, planes * 4, H, W), out.shape
    max_err = float(jnp.max(jnp.abs(out - ref)))
    # bf16 MXU operands (f32 accumulation) -> looser tolerance than pure f32.
    assert jnp.allclose(out, ref, atol=2e-2, rtol=2e-2), max_err
    print("KERNEL_OK")
</pallas_src>

<mosaic_0001>
module attributes {stable_mosaic.version = 11 : i64} {
  func.func @bottleneck_kernel(%arg0: i32, %arg1: memref<1x16x16x128xf32, #tpu.memory_space<vmem>>, %arg2: memref<128x32xbf16, #tpu.memory_space<vmem>>, %arg3: memref<1x32xf32, #tpu.memory_space<vmem>>, %arg4: memref<1x32xf32, #tpu.memory_space<vmem>>, %arg5: memref<3x3x32x32xbf16, #tpu.memory_space<vmem>>, %arg6: memref<1x32xf32, #tpu.memory_space<vmem>>, %arg7: memref<1x32xf32, #tpu.memory_space<vmem>>, %arg8: memref<32x128xbf16, #tpu.memory_space<vmem>>, %arg9: memref<1x128xf32, #tpu.memory_space<vmem>>, %arg10: memref<1x128xf32, #tpu.memory_space<vmem>>, %arg11: memref<1x16x16x128xf32, #tpu.memory_space<vmem>>, %arg12: memref<3x18x16x32xf32, #tpu.memory_space<vmem>>, %arg13: memref<256x32xf32, #tpu.memory_space<vmem>>) attributes {dimension_semantics = [#tpu.dimension_semantics<parallel>], iteration_bounds = array<i64: 2>, scalar_prefetch = 0 : i64, scratch_operands = 2 : i64, tpu.core_type = #tpu.core_type<tc>, window_params = [{transform_indices = @transform_0, window_bounds = array<i64: 1, 16, 16, 128>}, {pipeline_mode = #tpu.pipeline_mode<synchronous>, transform_indices = @transform_1, window_bounds = array<i64: 128, 32>}, {pipeline_mode = #tpu.pipeline_mode<synchronous>, transform_indices = @transform_2, window_bounds = array<i64: 1, 32>}, {pipeline_mode = #tpu.pipeline_mode<synchronous>, transform_indices = @transform_3, window_bounds = array<i64: 1, 32>}, {pipeline_mode = #tpu.pipeline_mode<synchronous>, transform_indices = @transform_4, window_bounds = array<i64: 3, 3, 32, 32>}, {pipeline_mode = #tpu.pipeline_mode<synchronous>, transform_indices = @transform_5, window_bounds = array<i64: 1, 32>}, {pipeline_mode = #tpu.pipeline_mode<synchronous>, transform_indices = @transform_6, window_bounds = array<i64: 1, 32>}, {pipeline_mode = #tpu.pipeline_mode<synchronous>, transform_indices = @transform_7, window_bounds = array<i64: 32, 128>}, {pipeline_mode = #tpu.pipeline_mode<synchronous>, transform_indices = @transform_8, window_bounds = array<i64: 1, 128>}, {pipeline_mode = #tpu.pipeline_mode<synchronous>, transform_indices = @transform_9, window_bounds = array<i64: 1, 128>}, {transform_indices = @transform_10, window_bounds = array<i64: 1, 16, 16, 128>}]} {
    %c0 = arith.constant 0 : index
    %c0_0 = arith.constant 0 : index
    %c0_1 = arith.constant 0 : index
    %c0_2 = arith.constant 0 : index
    %0 = vector.load %arg1[%c0, %c0_0, %c0_1, %c0_2] : memref<1x16x16x128xf32, #tpu.memory_space<vmem>>, vector<1x16x16x128xf32>
    %1 = vector.shape_cast %0 : vector<1x16x16x128xf32> to vector<16x16x128xf32>
    %2 = vector.shape_cast %1 : vector<16x16x128xf32> to vector<256x128xf32>
    %3 = arith.truncf %2 : vector<256x128xf32> to vector<256x128xbf16>
    %c0_3 = arith.constant 0 : index
    %c0_4 = arith.constant 0 : index
    %4 = vector.load %arg2[%c0_3, %c0_4] : memref<128x32xbf16, #tpu.memory_space<vmem>>, vector<128x32xbf16>
    %cst = arith.constant dense<0.000000e+00> : vector<256x32xf32>
    %5 = tpu.matmul %3, %4, %cst {dimension_numbers = #tpu.dot_dimension_numbers<[1], [0], [0], [1], [0, 0, 1, 1], [], []>} : vector<256x128xbf16>, vector<128x32xbf16>, vector<256x32xf32> -> vector<256x32xf32>
    %c0_5 = arith.constant 0 : index
    %c0_6 = arith.constant 0 : index
    %6 = vector.load %arg3[%c0_5, %c0_6] : memref<1x32xf32, #tpu.memory_space<vmem>>, vector<1x32xf32>
    %7 = vector.shape_cast %6 : vector<1x32xf32> to vector<32xf32>
    %8 = vector.shape_cast %7 : vector<32xf32> to vector<1x32xf32>
    %9 = vector.broadcast %8 : vector<1x32xf32> to vector<256x32xf32>
    %10 = arith.mulf %5, %9 : vector<256x32xf32>
    %c0_7 = arith.constant 0 : index
    %c0_8 = arith.constant 0 : index
    %11 = vector.load %arg4[%c0_7, %c0_8] : memref<1x32xf32, #tpu.memory_space<vmem>>, vector<1x32xf32>
    %12 = vector.shape_cast %11 : vector<1x32xf32> to vector<32xf32>
    %13 = vector.shape_cast %12 : vector<32xf32> to vector<1x32xf32>
    %14 = vector.broadcast %13 : vector<1x32xf32> to vector<256x32xf32>
    %15 = arith.addf %10, %14 : vector<256x32xf32>
    %cst_9 = arith.constant 0.000000e+00 : f32
    %16 = vector.broadcast %cst_9 : f32 to vector<256x32xf32>
    %17 = arith.maximumf %15, %16 : vector<256x32xf32>
    %18 = vector.shape_cast %17 : vector<256x32xf32> to vector<16x16x32xf32>
    %cst_10 = arith.constant 0.000000e+00 : f32
    %19 = vector.broadcast %cst_10 : f32 to vector<1x16x32xf32>
    %c0_11 = arith.constant 0 : index
    %c0_12 = arith.constant 0 : index
    %c0_13 = arith.constant 0 : index
    %c0_14 = arith.constant 0 : index
    %20 = vector.load %arg12[%c0_11, %c0_12, %c0_13, %c0_14] : memref<3x18x16x32xf32, #tpu.memory_space<vmem>>, vector<1x1x16x32xf32>
    %21 = vector.shape_cast %20 : vector<1x1x16x32xf32> to vector<1x16x32xf32>
    %22 = vector.shape_cast %19 : vector<1x16x32xf32> to vector<1x1x16x32xf32>
    tpu.vector_store %arg12[%c0_11, %c0_12, %c0_13, %c0_14], %22 {strides = array<i32>} : memref<3x18x16x32xf32, #tpu.memory_space<vmem>>, vector<1x1x16x32xf32>,
    %c0_15 = arith.constant 0 : index
    %c17 = arith.constant 17 : index
    %c0_16 = arith.constant 0 : index
    %c0_17 = arith.constant 0 : index
    %23 = vector.load %arg12[%c0_15, %c17, %c0_16, %c0_17] : memref<3x18x16x32xf32, #tpu.memory_space<vmem>>, vector<1x1x16x32xf32>
    %24 = vector.shape_cast %23 : vector<1x1x16x32xf32> to vector<1x16x32xf32>
    %25 = vector.shape_cast %19 : vector<1x16x32xf32> to vector<1x1x16x32xf32>
    tpu.vector_store %arg12[%c0_15, %c17, %c0_16, %c0_17], %25 {strides = array<i32>} : memref<3x18x16x32xf32, #tpu.memory_space<vmem>>, vector<1x1x16x32xf32>,
    %c1 = arith.constant 1 : index
    %c0_18 = arith.constant 0 : index
    %c0_19 = arith.constant 0 : index
    %c0_20 = arith.constant 0 : index
    %26 = vector.load %arg12[%c1, %c0_18, %c0_19, %c0_20] : memref<3x18x16x32xf32, #tpu.memory_space<vmem>>, vector<1x1x16x32xf32>
    %27 = vector.shape_cast %26 : vector<1x1x16x32xf32> to vector<1x16x32xf32>
    %28 = vector.shape_cast %19 : vector<1x16x32xf32> to vector<1x1x16x32xf32>
    tpu.vector_store %arg12[%c1, %c0_18, %c0_19, %c0_20], %28 {strides = array<i32>} : memref<3x18x16x32xf32, #tpu.memory_space<vmem>>, vector<1x1x16x32xf32>,
    %c1_21 = arith.constant 1 : index
    %c17_22 = arith.constant 17 : index
    %c0_23 = arith.constant 0 : index
    %c0_24 = arith.constant 0 : index
    %29 = vector.load %arg12[%c1_21, %c17_22, %c0_23, %c0_24] : memref<3x18x16x32xf32, #tpu.memory_space<vmem>>, vector<1x1x16x32xf32>
    %30 = vector.shape_cast %29 : vector<1x1x16x32xf32> to vector<1x16x32xf32>
    %31 = vector.shape_cast %19 : vector<1x16x32xf32> to vector<1x1x16x32xf32>
    tpu.vector_store %arg12[%c1_21, %c17_22, %c0_23, %c0_24], %31 {strides = array<i32>} : memref<3x18x16x32xf32, #tpu.memory_space<vmem>>, vector<1x1x16x32xf32>,
    %c2 = arith.constant 2 : index
    %c0_25 = arith.constant 0 : index
    %c0_26 = arith.constant 0 : index
    %c0_27 = arith.constant 0 : index
    %32 = vector.load %arg12[%c2, %c0_25, %c0_26, %c0_27] : memref<3x18x16x32xf32, #tpu.memory_space<vmem>>, vector<1x1x16x32xf32>
    %33 = vector.shape_cast %32 : vector<1x1x16x32xf32> to vector<1x16x32xf32>
    %34 = vector.shape_cast %19 : vector<1x16x32xf32> to vector<1x1x16x32xf32>
    tpu.vector_store %arg12[%c2, %c0_25, %c0_26, %c0_27], %34 {strides = array<i32>} : memref<3x18x16x32xf32, #tpu.memory_space<vmem>>, vector<1x1x16x32xf32>,
    %c2_28 = arith.constant 2 : index
    %c17_29 = arith.constant 17 : index
    %c0_30 = arith.constant 0 : index
    %c0_31 = arith.constant 0 : index
    %35 = vector.load %arg12[%c2_28, %c17_29, %c0_30, %c0_31] : memref<3x18x16x32xf32, #tpu.memory_space<vmem>>, vector<1x1x16x32xf32>
    %36 = vector.shape_cast %35 : vector<1x1x16x32xf32> to vector<1x16x32xf32>
    %37 = vector.shape_cast %19 : vector<1x16x32xf32> to vector<1x1x16x32xf32>
    tpu.vector_store %arg12[%c2_28, %c17_29, %c0_30, %c0_31], %37 {strides = array<i32>} : memref<3x18x16x32xf32, #tpu.memory_space<vmem>>, vector<1x1x16x32xf32>,
    %cst_32 = arith.constant 0.000000e+00 : f32
    %38 = vector.broadcast %cst_32 : f32 to vector<16x1x32xf32>
    %c0_33 = arith.constant 0 : index
    %c1_34 = arith.constant 1 : index
    %c0_35 = arith.constant 0 : index
    %c0_36 = arith.constant 0 : index
    %39 = vector.load %arg12[%c0_33, %c1_34, %c0_35, %c0_36] : memref<3x18x16x32xf32, #tpu.memory_space<vmem>>, vector<1x16x1x32xf32>
    %40 = vector.shape_cast %39 : vector<1x16x1x32xf32> to vector<16x1x32xf32>
    %41 = vector.shape_cast %38 : vector<16x1x32xf32> to vector<1x16x1x32xf32>
    tpu.vector_store %arg12[%c0_33, %c1_34, %c0_35, %c0_36], %41 {strides = array<i32>} : memref<3x18x16x32xf32, #tpu.memory_space<vmem>>, vector<1x16x1x32xf32>,
    %c2_37 = arith.constant 2 : index
    %c1_38 = arith.constant 1 : index
    %c15 = arith.constant 15 : index
    %c0_39 = arith.constant 0 : index
    %42 = vector.load %arg12[%c2_37, %c1_38, %c15, %c0_39] : memref<3x18x16x32xf32, #tpu.memory_space<vmem>>, vector<1x16x1x32xf32>
    %43 = vector.shape_cast %42 : vector<1x16x1x32xf32> to vector<16x1x32xf32>
    %44 = vector.shape_cast %38 : vector<16x1x32xf32> to vector<1x16x1x32xf32>
    tpu.vector_store %arg12[%c2_37, %c1_38, %c15, %c0_39], %44 {strides = array<i32>} : memref<3x18x16x32xf32, #tpu.memory_space<vmem>>, vector<1x16x1x32xf32>,
    %c1_40 = arith.constant 1 : index
    %c1_41 = arith.constant 1 : index
    %c0_42 = arith.constant 0 : index
    %c0_43 = arith.constant 0 : index
    %45 = vector.load %arg12[%c1_40, %c1_41, %c0_42, %c0_43] : memref<3x18x16x32xf32, #tpu.memory_space<vmem>>, vector<1x16x16x32xf32>
    %46 = vector.shape_cast %45 : vector<1x16x16x32xf32> to vector<16x16x32xf32>
    %47 = vector.shape_cast %18 : vector<16x16x32xf32> to vector<1x16x16x32xf32>
    tpu.vector_store %arg12[%c1_40, %c1_41, %c0_42, %c0_43], %47 {strides = array<i32>} : memref<3x18x16x32xf32, #tpu.memory_space<vmem>>, vector<1x16x16x32xf32>,
    %48 = vector.extract_strided_slice %18 {offsets = [0, 0, 0], sizes = [16, 15, 32], strides = [1, 1, 1]} : vector<16x16x32xf32> to vector<16x15x32xf32>
    %c0_44 = arith.constant 0 : index
    %c1_45 = arith.constant 1 : index
    %c1_46 = arith.constant 1 : index
    %c0_47 = arith.constant 0 : index
    %49 = vector.load %arg12[%c0_44, %c1_45, %c1_46, %c0_47] : memref<3x18x16x32xf32, #tpu.memory_space<vmem>>, vector<1x16x15x32xf32>
    %50 = vector.shape_cast %49 : vector<1x16x15x32xf32> to vector<16x15x32xf32>
    %51 = vector.shape_cast %48 : vector<16x15x32xf32> to vector<1x16x15x32xf32>
    tpu.vector_store %arg12[%c0_44, %c1_45, %c1_46, %c0_47], %51 {strides = array<i32>} : memref<3x18x16x32xf32, #tpu.memory_space<vmem>>, vector<1x16x15x32xf32>,
    %52 = vector.extract_strided_slice %18 {offsets = [0, 1, 0], sizes = [16, 15, 32], strides = [1, 1, 1]} : vector<16x16x32xf32> to vector<16x15x32xf32>
    %c2_48 = arith.constant 2 : index
    %c1_49 = arith.constant 1 : index
    %c0_50 = arith.constant 0 : index
    %c0_51 = arith.constant 0 : index
    %53 = vector.load %arg12[%c2_48, %c1_49, %c0_50, %c0_51] : memref<3x18x16x32xf32, #tpu.memory_space<vmem>>, vector<1x16x15x32xf32>
    %54 = vector.shape_cast %53 : vector<1x16x15x32xf32> to vector<16x15x32xf32>
    %55 = vector.shape_cast %52 : vector<16x15x32xf32> to vector<1x16x15x32xf32>
    tpu.vector_store %arg12[%c2_48, %c1_49, %c0_50, %c0_51], %55 {strides = array<i32>} : memref<3x18x16x32xf32, #tpu.memory_space<vmem>>, vector<1x16x15x32xf32>,
    %c0_52 = arith.constant 0 : index
    %c0_53 = arith.constant 0 : index
    %c0_54 = arith.constant 0 : index
    %c0_55 = arith.constant 0 : index
    %56 = vector.load %arg12[%c0_52, %c0_53, %c0_54, %c0_55] : memref<3x18x16x32xf32, #tpu.memory_space<vmem>>, vector<1x16x16x32xf32>
    %57 = vector.shape_cast %56 : vector<1x16x16x32xf32> to vector<16x16x32xf32>
    %58 = vector.shape_cast %57 : vector<16x16x32xf32> to vector<256x32xf32>
    %59 = arith.truncf %58 : vector<256x32xf32> to vector<256x32xbf16>
    %c0_56 = arith.constant 0 : index
    %c0_57 = arith.constant 0 : index
    %c0_58 = arith.constant 0 : index
    %c0_59 = arith.constant 0 : index
    %60 = vector.load %arg5[%c0_56, %c0_57, %c0_58, %c0_59] : memref<3x3x32x32xbf16, #tpu.memory_space<vmem>>, vector<1x1x32x32xbf16>
    %61 = vector.shape_cast %60 : vector<1x1x32x32xbf16> to vector<32x32xbf16>
    %cst_60 = arith.constant dense<0.000000e+00> : vector<256x32xf32>
    %62 = tpu.matmul %59, %61, %cst_60 {dimension_numbers = #tpu.dot_dimension_numbers<[1], [0], [0], [1], [0, 0, 1, 1], [], []>} : vector<256x32xbf16>, vector<32x32xbf16>, vector<256x32xf32> -> vector<256x32xf32>
    %c0_61 = arith.constant 0 : index
    %c0_62 = arith.constant 0 : index
    %63 = vector.load %arg13[%c0_61, %c0_62] : memref<256x32xf32, #tpu.memory_space<vmem>>, vector<256x32xf32>
    tpu.vector_store %arg13[%c0_61, %c0_62], %62 {strides = array<i32>} : memref<256x32xf32, #tpu.memory_space<vmem>>, vector<256x32xf32>,
    %c1_63 = arith.constant 1 : index
    %c0_64 = arith.constant 0 : index
    %c0_65 = arith.constant 0 : index
    %c0_66 = arith.constant 0 : index
    %64 = vector.load %arg12[%c1_63, %c0_64, %c0_65, %c0_66] : memref<3x18x16x32xf32, #tpu.memory_space<vmem>>, vector<1x16x16x32xf32>
    %65 = vector.shape_cast %64 : vector<1x16x16x32xf32> to vector<16x16x32xf32>
    %66 = vector.shape_cast %65 : vector<16x16x32xf32> to vector<256x32xf32>
    %67 = arith.truncf %66 : vector<256x32xf32> to vector<256x32xbf16>
    %c0_67 = arith.constant 0 : index
    %c1_68 = arith.constant 1 : index
    %c0_69 = arith.constant 0 : index
    %c0_70 = arith.constant 0 : index
    %68 = vector.load %arg5[%c0_67, %c1_68, %c0_69, %c0_70] : memref<3x3x32x32xbf16, #tpu.memory_space<vmem>>, vector<1x1x32x32xbf16>
    %69 = vector.shape_cast %68 : vector<1x1x32x32xbf16> to vector<32x32xbf16>
    %cst_71 = arith.constant dense<0.000000e+00> : vector<256x32xf32>
    %70 = tpu.matmul %67, %69, %cst_71 {dimension_numbers = #tpu.dot_dimension_numbers<[1], [0], [0], [1], [0, 0, 1, 1], [], []>} : vector<256x32xbf16>, vector<32x32xbf16>, vector<256x32xf32> -> vector<256x32xf32>
    %c0_72 = arith.constant 0 : index
    %c0_73 = arith.constant 0 : index
    %71 = vector.load %arg13[%c0_72, %c0_73] : memref<256x32xf32, #tpu.memory_space<vmem>>, vector<256x32xf32>
    %72 = arith.addf %71, %70 : vector<256x32xf32>
    %c0_74 = arith.constant 0 : index
    %c0_75 = arith.constant 0 : index
    %73 = vector.load %arg13[%c0_74, %c0_75] : memref<256x32xf32, #tpu.memory_space<vmem>>, vector<256x32xf32>
    tpu.vector_store %arg13[%c0_74, %c0_75], %72 {strides = array<i32>} : memref<256x32xf32, #tpu.memory_space<vmem>>, vector<256x32xf32>,
    %c2_76 = arith.constant 2 : index
    %c0_77 = arith.constant 0 : index
    %c0_78 = arith.constant 0 : index
    %c0_79 = arith.constant 0 : index
    %74 = vector.load %arg12[%c2_76, %c0_77, %c0_78, %c0_79] : memref<3x18x16x32xf32, #tpu.memory_space<vmem>>, vector<1x16x16x32xf32>
    %75 = vector.shape_cast %74 : vector<1x16x16x32xf32> to vector<16x16x32xf32>
    %76 = vector.shape_cast %75 : vector<16x16x32xf32> to vector<256x32xf32>
    %77 = arith.truncf %76 : vector<256x32xf32> to vector<256x32xbf16>
    %c0_80 = arith.constant 0 : index
    %c2_81 = arith.constant 2 : index
    %c0_82 = arith.constant 0 : index
    %c0_83 = arith.constant 0 : index
    %78 = vector.load %arg5[%c0_80, %c2_81, %c0_82, %c0_83] : memref<3x3x32x32xbf16, #tpu.memory_space<vmem>>, vector<1x1x32x32xbf16>
    %79 = vector.shape_cast %78 : vector<1x1x32x32xbf16> to vector<32x32xbf16>
    %cst_84 = arith.constant dense<0.000000e+00> : vector<256x32xf32>
    %80 = tpu.matmul %77, %79, %cst_84 {dimension_numbers = #tpu.dot_dimension_numbers<[1], [0], [0], [1], [0, 0, 1, 1], [], []>} : vector<256x32xbf16>, vector<32x32xbf16>, vector<256x32xf32> -> vector<256x32xf32>
    %c0_85 = arith.constant 0 : index
    %c0_86 = arith.constant 0 : index
    %81 = vector.load %arg13[%c0_85, %c0_86] : memref<256x32xf32, #tpu.memory_space<vmem>>, vector<256x32xf32>
    %82 = arith.addf %81, %80 : vector<256x32xf32>
    %c0_87 = arith.constant 0 : index
    %c0_88 = arith.constant 0 : index
    %83 = vector.load %arg13[%c0_87, %c0_88] : memref<256x32xf32, #tpu.memory_space<vmem>>, vector<256x32xf32>
    tpu.vector_store %arg13[%c0_87, %c0_88], %82 {strides = array<i32>} : memref<256x32xf32, #tpu.memory_space<vmem>>, vector<256x32xf32>,
    %c0_89 = arith.constant 0 : index
    %c1_90 = arith.constant 1 : index
    %c0_91 = arith.constant 0 : index
    %c0_92 = arith.constant 0 : index
    %84 = vector.load %arg12[%c0_89, %c1_90, %c0_91, %c0_92] : memref<3x18x16x32xf32, #tpu.memory_space<vmem>>, vector<1x16x16x32xf32>
    %85 = vector.shape_cast %84 : vector<1x16x16x32xf32> to vector<16x16x32xf32>
    %86 = vector.shape_cast %85 : vector<16x16x32xf32> to vector<256x32xf32>
    %87 = arith.truncf %86 : vector<256x32xf32> to vector<256x32xbf16>
    %c1_93 = arith.constant 1 : index
    %c0_94 = arith.constant 0 : index
    %c0_95 = arith.constant 0 : index
    %c0_96 = arith.constant 0 : index
    %88 = vector.load %arg5[%c1_93, %c0_94, %c0_95, %c0_96] : memref<3x3x32x32xbf16, #tpu.memory_space<vmem>>, vector<1x1x32x32xbf16>
    %89 = vector.shape_cast %88 : vector<1x1x32x32xbf16> to vector<32x32xbf16>
    %cst_97 = arith.constant dense<0.000000e+00> : vector<256x32xf32>
    %90 = tpu.matmul %87, %89, %cst_97 {dimension_numbers = #tpu.dot_dimension_numbers<[1], [0], [0], [1], [0, 0, 1, 1], [], []>} : vector<256x32xbf16>, vector<32x32xbf16>, vector<256x32xf32> -> vector<256x32xf32>
    %c0_98 = arith.constant 0 : index
    %c0_99 = arith.constant 0 : index
    %91 = vector.load %arg13[%c0_98, %c0_99] : memref<256x32xf32, #tpu.memory_space<vmem>>, vector<256x32xf32>
    %92 = arith.addf %91, %90 : vector<256x32xf32>
    %c0_100 = arith.constant 0 : index
    %c0_101 = arith.constant 0 : index
    %93 = vector.load %arg13[%c0_100, %c0_101] : memref<256x32xf32, #tpu.memory_space<vmem>>, vector<256x32xf32>
    tpu.vector_store %arg13[%c0_100, %c0_101], %92 {strides = array<i32>} : memref<256x32xf32, #tpu.memory_space<vmem>>, vector<256x32xf32>,
    %c1_102 = arith.constant 1 : index
    %c1_103 = arith.constant 1 : index
    %c0_104 = arith.constant 0 : index
    %c0_105 = arith.constant 0 : index
    %94 = vector.load %arg12[%c1_102, %c1_103, %c0_104, %c0_105] : memref<3x18x16x32xf32, #tpu.memory_space<vmem>>, vector<1x16x16x32xf32>
    %95 = vector.shape_cast %94 : vector<1x16x16x32xf32> to vector<16x16x32xf32>
    %96 = vector.shape_cast %95 : vector<16x16x32xf32> to vector<256x32xf32>
    %97 = arith.truncf %96 : vector<256x32xf32> to vector<256x32xbf16>
    %c1_106 = arith.constant 1 : index
    %c1_107 = arith.constant 1 : index
    %c0_108 = arith.constant 0 : index
    %c0_109 = arith.constant 0 : index
    %98 = vector.load %arg5[%c1_106, %c1_107, %c0_108, %c0_109] : memref<3x3x32x32xbf16, #tpu.memory_space<vmem>>, vector<1x1x32x32xbf16>
    %99 = vector.shape_cast %98 : vector<1x1x32x32xbf16> to vector<32x32xbf16>
    %cst_110 = arith.constant dense<0.000000e+00> : vector<256x32xf32>
    %100 = tpu.matmul %97, %99, %cst_110 {dimension_numbers = #tpu.dot_dimension_numbers<[1], [0], [0], [1], [0, 0, 1, 1], [], []>} : vector<256x32xbf16>, vector<32x32xbf16>, vector<256x32xf32> -> vector<256x32xf32>
    %c0_111 = arith.constant 0 : index
    %c0_112 = arith.constant 0 : index
    %101 = vector.load %arg13[%c0_111, %c0_112] : memref<256x32xf32, #tpu.memory_space<vmem>>, vector<256x32xf32>
    %102 = arith.addf %101, %100 : vector<256x32xf32>
    %c0_113 = arith.constant 0 : index
    %c0_114 = arith.constant 0 : index
    %103 = vector.load %arg13[%c0_113, %c0_114] : memref<256x32xf32, #tpu.memory_space<vmem>>, vector<256x32xf32>
    tpu.vector_store %arg13[%c0_113, %c0_114], %102 {strides = array<i32>} : memref<256x32xf32, #tpu.memory_space<vmem>>, vector<256x32xf32>,
    %c2_115 = arith.constant 2 : index
    %c1_116 = arith.constant 1 : index
    %c0_117 = arith.constant 0 : index
    %c0_118 = arith.constant 0 : index
    %104 = vector.load %arg12[%c2_115, %c1_116, %c0_117, %c0_118] : memref<3x18x16x32xf32, #tpu.memory_space<vmem>>, vector<1x16x16x32xf32>
    %105 = vector.shape_cast %104 : vector<1x16x16x32xf32> to vector<16x16x32xf32>
    %106 = vector.shape_cast %105 : vector<16x16x32xf32> to vector<256x32xf32>
    %107 = arith.truncf %106 : vector<256x32xf32> to vector<256x32xbf16>
    %c1_119 = arith.constant 1 : index
    %c2_120 = arith.constant 2 : index
    %c0_121 = arith.constant 0 : index
    %c0_122 = arith.constant 0 : index
    %108 = vector.load %arg5[%c1_119, %c2_120, %c0_121, %c0_122] : memref<3x3x32x32xbf16, #tpu.memory_space<vmem>>, vector<1x1x32x32xbf16>
    %109 = vector.shape_cast %108 : vector<1x1x32x32xbf16> to vector<32x32xbf16>
    %cst_123 = arith.constant dense<0.000000e+00> : vector<256x32xf32>
    %110 = tpu.matmul %107, %109, %cst_123 {dimension_numbers = #tpu.dot_dimension_numbers<[1], [0], [0], [1], [0, 0, 1, 1], [], []>} : vector<256x32xbf16>, vector<32x32xbf16>, vector<256x32xf32> -> vector<256x32xf32>
    %c0_124 = arith.constant 0 : index
    %c0_125 = arith.constant 0 : index
    %111 = vector.load %arg13[%c0_124, %c0_125] : memref<256x32xf32, #tpu.memory_space<vmem>>, vector<256x32xf32>
    %112 = arith.addf %111, %110 : vector<256x32xf32>
    %c0_126 = arith.constant 0 : index
    %c0_127 = arith.constant 0 : index
    %113 = vector.load %arg13[%c0_126, %c0_127] : memref<256x32xf32, #tpu.memory_space<vmem>>, vector<256x32xf32>
    tpu.vector_store %arg13[%c0_126, %c0_127], %112 {strides = array<i32>} : memref<256x32xf32, #tpu.memory_space<vmem>>, vector<256x32xf32>,
    %c0_128 = arith.constant 0 : index
    %c2_129 = arith.constant 2 : index
    %c0_130 = arith.constant 0 : index
    %c0_131 = arith.constant 0 : index
    %114 = vector.load %arg12[%c0_128, %c2_129, %c0_130, %c0_131] : memref<3x18x16x32xf32, #tpu.memory_space<vmem>>, vector<1x16x16x32xf32>
    %115 = vector.shape_cast %114 : vector<1x16x16x32xf32> to vector<16x16x32xf32>
    %116 = vector.shape_cast %115 : vector<16x16x32xf32> to vector<256x32xf32>
    %117 = arith.truncf %116 : vector<256x32xf32> to vector<256x32xbf16>
    %c2_132 = arith.constant 2 : index
    %c0_133 = arith.constant 0 : index
    %c0_134 = arith.constant 0 : index
    %c0_135 = arith.constant 0 : index
    %118 = vector.load %arg5[%c2_132, %c0_133, %c0_134, %c0_135] : memref<3x3x32x32xbf16, #tpu.memory_space<vmem>>, vector<1x1x32x32xbf16>
    %119 = vector.shape_cast %118 : vector<1x1x32x32xbf16> to vector<32x32xbf16>
    %cst_136 = arith.constant dense<0.000000e+00> : vector<256x32xf32>
    %120 = tpu.matmul %117, %119, %cst_136 {dimension_numbers = #tpu.dot_dimension_numbers<[1], [0], [0], [1], [0, 0, 1, 1], [], []>} : vector<256x32xbf16>, vector<32x32xbf16>, vector<256x32xf32> -> vector<256x32xf32>
    %c0_137 = arith.constant 0 : index
    %c0_138 = arith.constant 0 : index
    %121 = vector.load %arg13[%c0_137, %c0_138] : memref<256x32xf32, #tpu.memory_space<vmem>>, vector<256x32xf32>
    %122 = arith.addf %121, %120 : vector<256x32xf32>
    %c0_139 = arith.constant 0 : index
    %c0_140 = arith.constant 0 : index
    %123 = vector.load %arg13[%c0_139, %c0_140] : memref<256x32xf32, #tpu.memory_space<vmem>>, vector<256x32xf32>
    tpu.vector_store %arg13[%c0_139, %c0_140], %122 {strides = array<i32>} : memref<256x32xf32, #tpu.memory_space<vmem>>, vector<256x32xf32>,
    %c1_141 = arith.constant 1 : index
    %c2_142 = arith.constant 2 : index
    %c0_143 = arith.constant 0 : index
    %c0_144 = arith.constant 0 : index
    %124 = vector.load %arg12[%c1_141, %c2_142, %c0_143, %c0_144] : memref<3x18x16x32xf32, #tpu.memory_space<vmem>>, vector<1x16x16x32xf32>
    %125 = vector.shape_cast %124 : vector<1x16x16x32xf32> to vector<16x16x32xf32>
    %126 = vector.shape_cast %125 : vector<16x16x32xf32> to vector<256x32xf32>
    %127 = arith.truncf %126 : vector<256x32xf32> to vector<256x32xbf16>
    %c2_145 = arith.constant 2 : index
    %c1_146 = arith.constant 1 : index
    %c0_147 = arith.constant 0 : index
    %c0_148 = arith.constant 0 : index
    %128 = vector.load %arg5[%c2_145, %c1_146, %c0_147, %c0_148] : memref<3x3x32x32xbf16, #tpu.memory_space<vmem>>, vector<1x1x32x32xbf16>
    %129 = vector.shape_cast %128 : vector<1x1x32x32xbf16> to vector<32x32xbf16>
    %cst_149 = arith.constant dense<0.000000e+00> : vector<256x32xf32>
    %130 = tpu.matmul %127, %129, %cst_149 {dimension_numbers = #tpu.dot_dimension_numbers<[1], [0], [0], [1], [0, 0, 1, 1], [], []>} : vector<256x32xbf16>, vector<32x32xbf16>, vector<256x32xf32> -> vector<256x32xf32>
    %c0_150 = arith.constant 0 : index
    %c0_151 = arith.constant 0 : index
    %131 = vector.load %arg13[%c0_150, %c0_151] : memref<256x32xf32, #tpu.memory_space<vmem>>, vector<256x32xf32>
    %132 = arith.addf %131, %130 : vector<256x32xf32>
    %c0_152 = arith.constant 0 : index
    %c0_153 = arith.constant 0 : index
    %133 = vector.load %arg13[%c0_152, %c0_153] : memref<256x32xf32, #tpu.memory_space<vmem>>, vector<256x32xf32>
    tpu.vector_store %arg13[%c0_152, %c0_153], %132 {strides = array<i32>} : memref<256x32xf32, #tpu.memory_space<vmem>>, vector<256x32xf32>,
    %c2_154 = arith.constant 2 : index
    %c2_155 = arith.constant 2 : index
    %c0_156 = arith.constant 0 : index
    %c0_157 = arith.constant 0 : index
    %134 = vector.load %arg12[%c2_154, %c2_155, %c0_156, %c0_157] : memref<3x18x16x32xf32, #tpu.memory_space<vmem>>, vector<1x16x16x32xf32>
    %135 = vector.shape_cast %134 : vector<1x16x16x32xf32> to vector<16x16x32xf32>
    %136 = vector.shape_cast %135 : vector<16x16x32xf32> to vector<256x32xf32>
    %137 = arith.truncf %136 : vector<256x32xf32> to vector<256x32xbf16>
    %c2_158 = arith.constant 2 : index
    %c2_159 = arith.constant 2 : index
    %c0_160 = arith.constant 0 : index
    %c0_161 = arith.constant 0 : index
    %138 = vector.load %arg5[%c2_158, %c2_159, %c0_160, %c0_161] : memref<3x3x32x32xbf16, #tpu.memory_space<vmem>>, vector<1x1x32x32xbf16>
    %139 = vector.shape_cast %138 : vector<1x1x32x32xbf16> to vector<32x32xbf16>
    %cst_162 = arith.constant dense<0.000000e+00> : vector<256x32xf32>
    %140 = tpu.matmul %137, %139, %cst_162 {dimension_numbers = #tpu.dot_dimension_numbers<[1], [0], [0], [1], [0, 0, 1, 1], [], []>} : vector<256x32xbf16>, vector<32x32xbf16>, vector<256x32xf32> -> vector<256x32xf32>
    %c0_163 = arith.constant 0 : index
    %c0_164 = arith.constant 0 : index
    %141 = vector.load %arg13[%c0_163, %c0_164] : memref<256x32xf32, #tpu.memory_space<vmem>>, vector<256x32xf32>
    %142 = arith.addf %141, %140 : vector<256x32xf32>
    %c0_165 = arith.constant 0 : index
    %c0_166 = arith.constant 0 : index
    %143 = vector.load %arg13[%c0_165, %c0_166] : memref<256x32xf32, #tpu.memory_space<vmem>>, vector<256x32xf32>
    tpu.vector_store %arg13[%c0_165, %c0_166], %142 {strides = array<i32>} : memref<256x32xf32, #tpu.memory_space<vmem>>, vector<256x32xf32>,
    %c0_167 = arith.constant 0 : index
    %c0_168 = arith.constant 0 : index
    %144 = vector.load %arg13[%c0_167, %c0_168] : memref<256x32xf32, #tpu.memory_space<vmem>>, vector<256x32xf32>
    %c0_169 = arith.constant 0 : index
    %c0_170 = arith.constant 0 : index
    %145 = vector.load %arg6[%c0_169, %c0_170] : memref<1x32xf32, #tpu.memory_space<vmem>>, vector<1x32xf32>
    %146 = vector.shape_cast %145 : vector<1x32xf32> to vector<32xf32>
    %147 = vector.shape_cast %146 : vector<32xf32> to vector<1x32xf32>
    %148 = vector.broadcast %147 : vector<1x32xf32> to vector<256x32xf32>
    %149 = arith.mulf %144, %148 : vector<256x32xf32>
    %c0_171 = arith.constant 0 : index
    %c0_172 = arith.constant 0 : index
    %150 = vector.load %arg7[%c0_171, %c0_172] : memref<1x32xf32, #tpu.memory_space<vmem>>, vector<1x32xf32>
    %151 = vector.shape_cast %150 : vector<1x32xf32> to vector<32xf32>
    %152 = vector.shape_cast %151 : vector<32xf32> to vector<1x32xf32>
    %153 = vector.broadcast %152 : vector<1x32xf32> to vector<256x32xf32>
    %154 = arith.addf %149, %153 : vector<256x32xf32>
    %cst_173 = arith.constant 0.000000e+00 : f32
    %155 = vector.broadcast %cst_173 : f32 to vector<256x32xf32>
    %156 = arith.maximumf %154, %155 : vector<256x32xf32>
    %157 = arith.truncf %156 : vector<256x32xf32> to vector<256x32xbf16>
    %c0_174 = arith.constant 0 : index
    %c0_175 = arith.constant 0 : index
    %158 = vector.load %arg8[%c0_174, %c0_175] : memref<32x128xbf16, #tpu.memory_space<vmem>>, vector<32x128xbf16>
    %cst_176 = arith.constant dense<0.000000e+00> : vector<256x128xf32>
    %159 = tpu.matmul %157, %158, %cst_176 {dimension_numbers = #tpu.dot_dimension_numbers<[1], [0], [0], [1], [0, 0, 1, 1], [], []>} : vector<256x32xbf16>, vector<32x128xbf16>, vector<256x128xf32> -> vector<256x128xf32>
    %c0_177 = arith.constant 0 : index
    %c0_178 = arith.constant 0 : index
    %160 = vector.load %arg9[%c0_177, %c0_178] : memref<1x128xf32, #tpu.memory_space<vmem>>, vector<1x128xf32>
    %161 = vector.shape_cast %160 : vector<1x128xf32> to vector<128xf32>
    %162 = vector.shape_cast %161 : vector<128xf32> to vector<1x128xf32>
    %163 = vector.broadcast %162 : vector<1x128xf32> to vector<256x128xf32>
    %164 = arith.mulf %159, %163 : vector<256x128xf32>
    %c0_179 = arith.constant 0 : index
    %c0_180 = arith.constant 0 : index
    %165 = vector.load %arg10[%c0_179, %c0_180] : memref<1x128xf32, #tpu.memory_space<vmem>>, vector<1x128xf32>
    %166 = vector.shape_cast %165 : vector<1x128xf32> to vector<128xf32>
    %167 = vector.shape_cast %166 : vector<128xf32> to vector<1x128xf32>
    %168 = vector.broadcast %167 : vector<1x128xf32> to vector<256x128xf32>
    %169 = arith.addf %164, %168 : vector<256x128xf32>
    %c0_181 = arith.constant 0 : index
    %c0_182 = arith.constant 0 : index
    %c0_183 = arith.constant 0 : index
    %c0_184 = arith.constant 0 : index
    %170 = vector.load %arg1[%c0_181, %c0_182, %c0_183, %c0_184] : memref<1x16x16x128xf32, #tpu.memory_space<vmem>>, vector<1x16x16x128xf32>
    %171 = vector.shape_cast %170 : vector<1x16x16x128xf32> to vector<16x16x128xf32>
    %172 = vector.shape_cast %171 : vector<16x16x128xf32> to vector<256x128xf32>
    %173 = arith.addf %169, %172 : vector<256x128xf32>
    %cst_185 = arith.constant 0.000000e+00 : f32
    %174 = vector.broadcast %cst_185 : f32 to vector<256x128xf32>
    %175 = arith.maximumf %173, %174 : vector<256x128xf32>
    %176 = vector.shape_cast %175 : vector<256x128xf32> to vector<16x16x128xf32>
    %c0_186 = arith.constant 0 : index
    %c0_187 = arith.constant 0 : index
    %c0_188 = arith.constant 0 : index
    %c0_189 = arith.constant 0 : index
    %177 = vector.load %arg11[%c0_186, %c0_187, %c0_188, %c0_189] : memref<1x16x16x128xf32, #tpu.memory_space<vmem>>, vector<1x16x16x128xf32>
    %178 = vector.shape_cast %177 : vector<1x16x16x128xf32> to vector<16x16x128xf32>
    %179 = vector.shape_cast %176 : vector<16x16x128xf32> to vector<1x16x16x128xf32>
    tpu.vector_store %arg11[%c0_186, %c0_187, %c0_188, %c0_189], %179 {strides = array<i32>} : memref<1x16x16x128xf32, #tpu.memory_space<vmem>>, vector<1x16x16x128xf32>,
    return
  }
  func.func @transform_0(%arg0: i32) -> (i32, i32, i32, i32) {
    %c0_i32 = arith.constant 0 : i32
    %c0_i32_0 = arith.constant 0 : i32
    %c0_i32_1 = arith.constant 0 : i32
    %c0_i32_2 = arith.constant 0 : i32
    return %arg0, %c0_i32, %c0_i32_0, %c0_i32_1 : i32, i32, i32, i32
  }
  func.func @transform_1(%arg0: i32) -> (i32, i32) {
    %c0_i32 = arith.constant 0 : i32
    %c0_i32_0 = arith.constant 0 : i32
    %c0_i32_1 = arith.constant 0 : i32
    return %c0_i32, %c0_i32_0 : i32, i32
  }
  func.func @transform_2(%arg0: i32) -> (i32, i32) {
    %c0_i32 = arith.constant 0 : i32
    %c0_i32_0 = arith.constant 0 : i32
    %c0_i32_1 = arith.constant 0 : i32
    return %c0_i32, %c0_i32_0 : i32, i32
  }
  func.func @transform_3(%arg0: i32) -> (i32, i32) {
    %c0_i32 = arith.constant 0 : i32
    %c0_i32_0 = arith.constant 0 : i32
    %c0_i32_1 = arith.constant 0 : i32
    return %c0_i32, %c0_i32_0 : i32, i32
  }
  func.func @transform_4(%arg0: i32) -> (i32, i32, i32, i32) {
    %c0_i32 = arith.constant 0 : i32
    %c0_i32_0 = arith.constant 0 : i32
    %c0_i32_1 = arith.constant 0 : i32
    %c0_i32_2 = arith.constant 0 : i32
    %c0_i32_3 = arith.constant 0 : i32
    return %c0_i32, %c0_i32_0, %c0_i32_1, %c0_i32_2 : i32, i32, i32, i32
  }
  func.func @transform_5(%arg0: i32) -> (i32, i32) {
    %c0_i32 = arith.constant 0 : i32
    %c0_i32_0 = arith.constant 0 : i32
    %c0_i32_1 = arith.constant 0 : i32
    return %c0_i32, %c0_i32_0 : i32, i32
  }
  func.func @transform_6(%arg0: i32) -> (i32, i32) {
    %c0_i32 = arith.constant 0 : i32
    %c0_i32_0 = arith.constant 0 : i32
    %c0_i32_1 = arith.constant 0 : i32
    return %c0_i32, %c0_i32_0 : i32, i32
  }
  func.func @transform_7(%arg0: i32) -> (i32, i32) {
    %c0_i32 = arith.constant 0 : i32
    %c0_i32_0 = arith.constant 0 : i32
    %c0_i32_1 = arith.constant 0 : i32
    return %c0_i32, %c0_i32_0 : i32, i32
  }
  func.func @transform_8(%arg0: i32) -> (i32, i32) {
    %c0_i32 = arith.constant 0 : i32
    %c0_i32_0 = arith.constant 0 : i32
    %c0_i32_1 = arith.constant 0 : i32
    return %c0_i32, %c0_i32_0 : i32, i32
  }
  func.func @transform_9(%arg0: i32) -> (i32, i32) {
    %c0_i32 = arith.constant 0 : i32
    %c0_i32_0 = arith.constant 0 : i32
    %c0_i32_1 = arith.constant 0 : i32
    return %c0_i32, %c0_i32_0 : i32, i32
  }
  func.func @transform_10(%arg0: i32) -> (i32, i32, i32, i32) {
    %c0_i32 = arith.constant 0 : i32
    %c0_i32_0 = arith.constant 0 : i32
    %c0_i32_1 = arith.constant 0 : i32
    %c0_i32_2 = arith.constant 0 : i32
    return %arg0, %c0_i32, %c0_i32_0, %c0_i32_1 : i32, i32, i32, i32
  }
}

</mosaic_0001>

<bundles_post_ra>
// kernel: tpu_custom_call.1
= control target key start
LH: loop header
LB: loop body
LE: loop exit
PB: predicated region body
PF: predicated region fallthrough
CT: control target
= control target key end

     0   :  { %s7665_s0 = inlined_call_operand.hbm [shape: f32[2,16,16,128], index: 0, kind: input, shape index: {}]   ;;  %s7666_s1 = inlined_call_operand.vmem [shape: bf16[128,32], index: 1, kind: input, shape index: {}]   ;;  %s7667_s2 = inlined_call_operand.vmem [shape: f32[1,32], index: 2, kind: input, shape index: {}]   ;;  %s7668_s3 = inlined_call_operand.vmem [shape: f32[1,32], index: 3, kind: input, shape index: {}]   ;;  %s7669_s4 = inlined_call_operand.hbm [shape: bf16[3,3,32,32], index: 4, kind: input, shape index: {}]   ;;  %s7670_s5 = inlined_call_operand.vmem [shape: f32[1,32], index: 5, kind: input, shape index: {}]   ;;  %s7671_s6 = inlined_call_operand.vmem [shape: f32[1,32], index: 6, kind: input, shape index: {}]   ;;  %s7672_s7 = inlined_call_operand.vmem [shape: bf16[32,128], index: 7, kind: input, shape index: {}]   ;;  %s7673_s8 = inlined_call_operand.vmem [shape: f32[1,128], index: 8, kind: input, shape index: {}]   ;;  %s7674_s9 = inlined_call_operand.vmem [shape: f32[1,128], index: 9, kind: input, shape index: {}]   ;;  %s7675_s10 = inlined_call_operand.hbm [shape: f32[2,16,16,128], index: 10, kind: output, shape index: {}]  }
   0x1   :  { %7684 = sst [smem:[#allocation16_spill]] %s7669_s4 }
   0x2   :  { %15 = vsyncpa [#allocation5], 0 }
   0x3   :  { %17 = vsyncpa [#allocation5 + $0x1], 0 }
   0x4   :  { %18 = vsyncpa [#allocation8], 0 }
   0x5   :  { %19 = vsyncpa [#allocation6], 0 }
   0x6   :  { %21 = vsyncpa [#allocation6 + $0x1], 0  ;;  %s5992_s13 = smov 0   ;;  %s5994_s14 = smov 0  }
   0x7   :  { %s5996_s15 = smov 0   ;;  %s5998_s16 = smov 0  }
   0x8 LB: > { %7685 = sst [smem:[#allocation13_spill]] %s5913_s13  ;;  %s6013_s17 = sadd.s32 4294967295, %s5925_s16   ;;  %s5925_s16 = sphi %s5998_s16, %s7705_s16   ;;  %s5921_s15 = sphi %s5996_s15, %s7708_s15   ;;  %s5917_s14 = sphi %s5994_s14, %s7707_s14   ;;  %s5913_s13 = sphi %s5992_s13, %s7706_s13  }
   0x9   : > { %s4883_s18 = sadd.s32 4294967294, %s5925_s16   ;;  %p47_p0 = scmp.ne.s32.totalorder %s5917_s14, %s5913_s13 }
   0xa   : > { %p7680_p1 = scmp.eq.s32.totalorder %s6013_s17, 0  ;;  %p266_p3 = scmp.eq.s32.totalorder %s4883_s18, 1 }
   0xb   : > { %p4884_p5 = scmp.ge.s32.totalorder %s5925_s16, 1  ;;  %p273_p7 = scmp.lt.s32.totalorder %s5925_s16, 3 }
   0xc   : > { %p6022_p4 = por %p7680_p1, %p47_p0  ;;  %p6027_p6 = por %p266_p3, %p47_p0 }
   0xd   : > { %p6032_p8 = pnand %p4884_p5, %p273_p7  ;;  %s5927_s22 = smov [#allocation7]  }
   0xe   : > { %s7686_s19 = scalar_select %p6022_p4, 1, 0 }
   0xf   : > { %s7687_s20 = scalar_select %p6027_p6, 1, 0 }
  0x10   : > { %s7689_s21 = scalar_select %p6032_p8, 1, 0 }
  0x11   : > { %7688 = sst [smem:[#allocation14_spill]] %s7687_s20  ;;  %s294_s23 = sshll.u32 %s5927_s22, 4  ;;  %s295_s23 = int_to_ptr.vmem [resolvable:$true] %s294_s23 }
  0x12   : > { %p5719_p9 = pneg %p6032_p8  ;;  %s6046_s25 = sadd.s32 1, %s5925_s16  }
  0x13   : > { %7691 = sst [smem:[#allocation15_spill]] %s6046_s25  ;;  %s34_s26 = sadd.s32 1, %s5921_s15 }
  0x14   : > { %p6041_p11 = pnand %p5719_p9, %p7680_p1  ;;  %s31_s27 = ssub.s32 %s5925_s16, %s6046_s25 }
  0x15   : > { %s5814_s28 = scalar_lea.vmem %s295_s23, 2304  ;;  %p5822_p5 = scmp.lt.s32.totalorder %s295_s23, %s295_s23 }
  0x16   : > { %p5805_p12 = pneg %p6041_p11  ;;  %p5815_p13 = scmp.ne.s32.totalorder %s295_s23, %s5814_s28 }
  0x17   : > { %p5823_p7 = scmp.lt.s32.totalorder %s5814_s28, %s5814_s28 }
  0x18   : > { %p5817_p0 = pnand %p5815_p13, %p5805_p12 }
  0x19   : > { %p5824_p10 = por %p5823_p7, %p5822_p5 }
  0x1a   : > { %p5818_p3 = pneg %p5817_p0 }
  0x1c   : > { %p5825_p2 = pnand %p5824_p10, %p5818_p3 }
  0x1e   : > { %5828 = shalt.err (!%p5825_p2)
}
  0x1f   : > { %s5928_s29 = smov 64   ;;  %s5929_s30 = smov 4  }
  0x20   : > { %s7692_s4 = sld [smem:[#allocation16_spill]]  ;;  %p32_p9 = scmp.eq.s32.totalorder %s31_s27, 0 }
  0x21   : > { %p41_p12 = scmp.ne.s32.totalorder %s5921_s15, %s5917_s14  ;;  %p42_p10 = scmp.eq.s32.totalorder %s5925_s16, 0 }
  0x22   : > { %p5732_p2 = scmp.lt.s32.totalorder %s5925_s16, 2  ;;  %p7693_p0 = scmp.eq.s32.totalorder %s6013_s17, 1 }
  0x23   : > { %s6063_s18 = scalar_select %p32_p9, %s5921_s15, %s34_s26  }
  0x24   : > { %p43_p13 = por %p42_p10, %p41_p12  ;;  %p6067_p3 = por %p7693_p0, %p41_p12 }
  0x25   : > { %s323_s28 = sand.u32 1, %s5921_s15   ;;  %s5093_s25 = sshll.u32 %s5925_s16, 12 }
  0x26   : > { %5722 = dma.hbm_to_vmem [thread:$0]  (!%p6041_p11), %s7692_s4, 2304, %s295_s23, [#allocation8], %s5928_s29, %s5928_s29, %s5929_s30  }
  0x27   : > { %s7694_s22 = scalar_select %p6067_p3, 1, 0 }
  0x28   : > { %s4887_s20 = sshll.u32 %s323_s28, 8  ;;  %s6076_s11 = scalar_lea.hbm %s7665_s0, %s5093_s25 }
  0x29   : > { %s327_s23 = scalar_lea.vmem [#allocation4], %s4887_s20  ;;  %p6078_p11 = pnand %p5732_p2, %p43_p13 }
  0x2a   : > { %s334_s26 = sshll.u32 %s327_s23, 4  ;;  %s6084_s29 = scalar_lea.sflag [#allocation5], %s323_s28  ;;  %s6082_s26 = int_to_ptr.vmem [resolvable:$true] %s334_s26 }
  0x2b   : > { %s5829_s30 = scalar_lea.hbm %s6076_s11, 4096  ;;  %p5831_p7 = pneg %p6078_p11 }
  0x2c   : > { %p5830_p5 = scmp.ne.s32.totalorder %s6076_s11, %s5829_s30  ;;  %s5834_s20 = scalar_lea.hbm %s7665_s0, 8192 }
  0x2d   : > { %p5835_p10 = scmp.lt.s32.totalorder %s6076_s11, %s7665_s0  ;;  %p5836_p2 = scmp.lt.s32.totalorder %s5834_s20, %s5829_s30 }
  0x2e   : > { %p5832_p9 = pnand %p5831_p7, %p5830_p5 }
  0x2f   : > { %p5837_p13 = por %p5836_p2, %p5835_p10 }
  0x30   : > { %p5833_p12 = pneg %p5832_p9 }
  0x32   : > { %p5838_p0 = pnand %p5837_p13, %p5833_p12 }
  0x34   : > { %5841 = shalt.err (!%p5838_p0)
}
  0x35   : > { %s5842_s28 = scalar_lea.vmem %s6082_s26, 4096  ;;  %s5930_s23 = smov [#allocation4]  }
  0x36   : > { %p5843_p1 = scmp.ne.s32.totalorder %s6082_s26, %s5842_s28  ;;  %s5847_s4 = sshll.u32 %s5930_s23, 4  ;;  %s5848_s4 = int_to_ptr.vmem [resolvable:$false] %s5847_s4 }
  0x37   : > { %s5849_s13 = scalar_lea.vmem %s5848_s4, 8192  ;;  %p5850_p9 = scmp.lt.s32.totalorder %s6082_s26, %s5848_s4 }
  0x38   : > { %p5845_p6 = pnand %p5843_p1, %p5831_p7  ;;  %p5851_p3 = scmp.lt.s32.totalorder %s5849_s13, %s5842_s28 }
  0x3a   : > { %p5846_p5 = pneg %p5845_p6  ;;  %p5852_p4 = por %p5851_p3, %p5850_p9 }
  0x3c   : > { %p5853_p8 = pnand %p5852_p4, %p5846_p5 }
  0x3e   : > { %5856 = shalt.err (!%p5853_p8)
}
  0x3f   : > { %s5931_s30 = smov 128   ;;  %s5932_s25 = smov 8  }
  0x40   : > { %5726 = dma.hbm_to_vmem [thread:$0]  (!%p6078_p11), %s6076_s11, 4096, %s6082_s26, %s6084_s29, %s5931_s30, %s5931_s30, %s5932_s25  }
  0x41   : > { %p7696_p1 = scmp.ne.s32.totalorder %s7689_s21, 0 }
  0x42   : > { %s6108_s20 = sand.u32 (!%p7696_p1), 1, %s5917_s14   ;;  %p7697_p4 = scmp.ne.s32.totalorder (!%p7696_p1), %s7686_s19, 0 }
  0x43   : > { %346 = sbr.rel (%p7696_p1) target bundleno = 1086 (0x43e), region = 60  ;;  %s4891_s4 = sshll.u32 (!%p7696_p1), %s6108_s20, 8 }
  0x44   : > { %s349_s12 = scalar_lea.sflag (!%p7696_p1), [#allocation5], %s6108_s20  ;;  %s6114_s24 = scalar_lea.vmem (!%p7696_p1), [#allocation4], %s4891_s4 }
  0x48   : > { %5900 = dma.done.wait (%p7697_p4), %s349_s12, 4096  }
  0x49   : > { %5902 = vsyncadd (%p7697_p4), %s349_s12, 4294963200  ;;  %p7698_p6 = scmp.eq.s32.totalorder %s6013_s17, 0 }
  0x4b   : > { %5904 = dma.done.wait (%p7698_p6), [#allocation8], 2304   ;;  %p7699_p8 = pmov %p7698_p6 }
  0x4c   : > { %v5775_v0 = vld [vmem:[%s7666_s1 + $0x38] sm:$0xff]   ;;  %v5776_v1 = vld [vmem:[%s7666_s1 + $0x30] sm:$0xff]   ;;  %v5777_v2 = vld [vmem:[%s7666_s1 + $0x28] sm:$0xff]   ;;  %vm777_vm0 = vcmask 261120   ;;  %vm796_vm1 = vcmask 253952   ;;  %v5933_v56 = vmov 0.0  }
  0x4d   : > { %5906 = vsyncadd (%p7699_p8), [#allocation8], 4294964992  ;;  %5299 = vmatprep.subr.bf16.mxu0 %v5775_v0  ;;  %v5778_v3 = vld [vmem:[%s7666_s1 + $0x20] sm:$0xff]   ;;  %v395_v5 = vld [vmem:[%s6114_s24 + $0x8] sm:$0xff]  ;;  %778 = vst.msk [vmem:[#allocation2] sm:$0xff] %vm777_vm0, %v5933_v56  ;;  %vm896_vm2 = vcmask 261121  }
  0x4e   : > { %5300 = vmatpush3.bf16.msra.mxu0 %v5775_v0  ;;  %v394_v4 = vld [vmem:[%s6114_s24] sm:$0xff]  ;;  %v5779_v7 = vld [vmem:[%s7666_s1 + $0x18] sm:$0xff]   ;;  %v5780_v8 = vld [vmem:[%s7666_s1 + $0x10] sm:$0xff]   ;;  %779 = vst.msk [vmem:[#allocation2 + $0x8] sm:$0xff] %vm777_vm0, %v5933_v56  ;;  %vm864_vm3 = vcmask 260096   ;;  %s7496_s13 = scalar_lea.vmem [#allocation9], %s4891_s4 }
  0x4f   : > { %5301 = vmatprep.subr.bf16.mxu0 %v5776_v1  ;;  %v426_v6 = vpack.c.bf16 %v395_v5, %v394_v4  ;;  %v5781_v9 = vld [vmem:[%s7666_s1 + $0x8] sm:$0xff]   ;;  %v5782_v10 = vld [vmem:[%s7666_s1] sm:$0xff]   ;;  %v396_v11 = vld [vmem:[%s6114_s24 + $0x10] sm:$0xff]  ;;  %781 = vst.msk [vmem:[#allocation2 + $0x110] sm:$0xff] %vm777_vm0, %v5933_v56  ;;  %s5094_s4 = sshll.u32 %s6013_s17, 12  ;;  %s4800_s30 = sshll.u32 %s7496_s13, 4  ;;  %s7620_s30 = int_to_ptr.vmem [resolvable:$true] %s4800_s30 }
  0x50   : > { %v397_v12 = vld [vmem:[%s6114_s24 + $0x18] sm:$0xff]  ;;  %v398_v13 = vld [vmem:[%s6114_s24 + $0x20] sm:$0xff]  ;;  %v399_v14 = vld [vmem:[%s6114_s24 + $0x28] sm:$0xff]  ;;  %782 = vst.msk [vmem:[#allocation2 + $0x118] sm:$0xff] %vm777_vm0, %v5933_v56  ;;  %s7618_s21 = scalar_lea.hbm %s7675_s10, %s5094_s4  ;;  %s5857_s11 = scalar_lea.vmem %s7620_s30, 4096 }
  0x51   : > { %5315 = vmatprep.mubr.bf16.mxu0 %v426_v6  ;;  %v427_v15 = vpack.c.bf16 %v397_v12, %v396_v11  ;;  %v428_v16 = vpack.c.bf16 %v399_v14, %v398_v13  ;;  %v400_v17 = vld [vmem:[%s6114_s24 + $0x30] sm:$0xff]  ;;  %v401_v18 = vld [vmem:[%s6114_s24 + $0x38] sm:$0xff]  ;;  %v402_v19 = vld [vmem:[%s6114_s24 + $0x40] sm:$0xff]  ;;  %784 = vst.msk [vmem:[#allocation2 + $0x120] sm:$0xff] %vm777_vm0, %v5933_v56  ;;  %p5858_p3 = scmp.ne.s32.totalorder %s7620_s30, %s5857_s11  ;;  %p7700_p11 = scmp.ne.s32.totalorder %s7694_s22, 0 }
  0x52   : > { %5302 = vmatpush3.bf16.msra.mxu0 %v5776_v1  ;;  %v403_v20 = vld [vmem:[%s6114_s24 + $0x48] sm:$0xff]  ;;  %v429_v21 = vpack.c.bf16 %v401_v18, %v400_v17  ;;  %v404_v23 = vld [vmem:[%s6114_s24 + $0x50] sm:$0xff]  ;;  %v405_v24 = vld [vmem:[%s6114_s24 + $0x58] sm:$0xff]  ;;  %785 = vst.msk [vmem:[#allocation2 + $0x128] sm:$0xff] %vm777_vm0, %v5933_v56  ;;  %s5934_s17 = smov [#allocation9]  }
  0x53   : > { %5303 = vmatprep.subr.bf16.mxu0 %v5777_v2  ;;  %v430_v22 = vpack.c.bf16 %v403_v20, %v402_v19  ;;  %v406_v25 = vld [vmem:[%s6114_s24 + $0x60] sm:$0xff]  ;;  %v407_v26 = vld [vmem:[%s6114_s24 + $0x68] sm:$0xff]  ;;  %v431_v27 = vpack.c.bf16 %v405_v24, %v404_v23  ;;  %v408_v29 = vld [vmem:[%s6114_s24 + $0x70] sm:$0xff]  ;;  %787 = vst.msk [vmem:[#allocation2 + $0x230] sm:$0xff] %vm777_vm0, %v5933_v56  ;;  %p5859_p7 = pnand %p5858_p3, %p7700_p11  ;;  %s5861_s26 = sshll.u32 %s5934_s17, 4  ;;  %s5862_s26 = int_to_ptr.vmem [resolvable:$false] %s5861_s26 }
  0x54   : > { %v432_v28 = vpack.c.bf16 %v407_v26, %v406_v25  ;;  %v409_v30 = vld [vmem:[%s6114_s24 + $0x78] sm:$0xff]  ;;  %v410_v31 = vld [vmem:[%s6114_s24 + $0x80] sm:$0xff]  ;;  %v411_v32 = vld [vmem:[%s6114_s24 + $0x88] sm:$0xff]  ;;  %788 = vst.msk [vmem:[#allocation2 + $0x238] sm:$0xff] %vm777_vm0, %v5933_v56  ;;  %s5863_s27 = scalar_lea.vmem %s5862_s26, 8192  ;;  %p5864_p10 = scmp.lt.s32.totalorder %s7620_s30, %s5862_s26 }
  0x55   : > { %v433_v33 = vpack.c.bf16 %v409_v30, %v408_v29  ;;  %v434_v34 = vpack.c.bf16 %v411_v32, %v410_v31  ;;  %v412_v35 = vld [vmem:[%s6114_s24 + $0x90] sm:$0xff]  ;;  %v413_v36 = vld [vmem:[%s6114_s24 + $0x98] sm:$0xff]  ;;  %v414_v37 = vld [vmem:[%s6114_s24 + $0xa0] sm:$0xff]  ;;  %790 = vst.msk [vmem:[#allocation2 + $0x240] sm:$0xff] %vm777_vm0, %v5933_v56  ;;  %p5860_p12 = pneg %p5859_p7  ;;  %p5865_p2 = scmp.lt.s32.totalorder %s5863_s27, %s5857_s11 }
  0x56   : > { %5304 = vmatpush3.bf16.msra.mxu0 %v5777_v2  ;;  %v415_v38 = vld [vmem:[%s6114_s24 + $0xa8] sm:$0xff]  ;;  %v435_v39 = vpack.c.bf16 %v413_v36, %v412_v35  ;;  %v416_v41 = vld [vmem:[%s6114_s24 + $0xb0] sm:$0xff]  ;;  %v417_v42 = vld [vmem:[%s6114_s24 + $0xb8] sm:$0xff]  ;;  %791 = vst.msk [vmem:[#allocation2 + $0x248] sm:$0xff] %vm777_vm0, %v5933_v56 }
  0x57   : > { %5305 = vmatprep.subr.bf16.mxu0 %v5778_v3  ;;  %v436_v40 = vpack.c.bf16 %v415_v38, %v414_v37  ;;  %v418_v43 = vld [vmem:[%s6114_s24 + $0xc0] sm:$0xff]  ;;  %v419_v44 = vld [vmem:[%s6114_s24 + $0xc8] sm:$0xff]  ;;  %v437_v45 = vpack.c.bf16 %v417_v42, %v416_v41  ;;  %v420_v47 = vld [vmem:[%s6114_s24 + $0xd0] sm:$0xff]  ;;  %793 = vst.msk [vmem:[#allocation2 + $0x350] sm:$0xff] %vm777_vm0, %v5933_v56  ;;  %p5866_p13 = por %p5865_p2, %p5864_p10 }
  0x58   : > { %v438_v46 = vpack.c.bf16 %v419_v44, %v418_v43  ;;  %v421_v48 = vld [vmem:[%s6114_s24 + $0xd8] sm:$0xff]  ;;  %v422_v49 = vld [vmem:[%s6114_s24 + $0xe0] sm:$0xff]  ;;  %v423_v50 = vld [vmem:[%s6114_s24 + $0xe8] sm:$0xff]  ;;  %794 = vst.msk [vmem:[#allocation2 + $0x358] sm:$0xff] %vm777_vm0, %v5933_v56 }
  0x59   : > { %v439_v51 = vpack.c.bf16 %v421_v48, %v420_v47  ;;  %v440_v52 = vpack.c.bf16 %v423_v50, %v422_v49  ;;  %v424_v53 = vld [vmem:[%s6114_s24 + $0xf0] sm:$0xff]  ;;  %v425_v54 = vld [vmem:[%s6114_s24 + $0xf8] sm:$0xff]  ;;  %797 = vst.msk [vmem:[#allocation2 + $0x10] sm:$0x1] %vm796_vm1, %v5933_v56  ;;  %798 = vst.msk [vmem:[#allocation2 + $0x20] sm:$0x1] %vm796_vm1, %v5933_v56  ;;  %p5867_p0 = pnand %p5866_p13, %p5860_p12 }
  0x5a   : > { %5306 = vmatpush3.bf16.msra.mxu0 %v5778_v3  ;;  %v441_v55 = vpack.c.bf16 %v425_v54, %v424_v53  ;;  %799 = vst.msk [vmem:[#allocation2 + $0x30] sm:$0x1] %vm796_vm1, %v5933_v56  ;;  %800 = vst.msk [vmem:[#allocation2 + $0x40] sm:$0x1] %vm796_vm1, %v5933_v56  ;;  %v5783_v57 = vld [vmem:[#allocation7 + $0x8] sm:$0xff]   ;;  %v5784_v58 = vld [vmem:[#allocation7] sm:$0xff]  }
  0x5b   : > { %5307 = vmatprep.subr.bf16.mxu0 %v5779_v7  ;;  %801 = vst.msk [vmem:[#allocation2 + $0x50] sm:$0x1] %vm796_vm1, %v5933_v56  ;;  %802 = vst.msk [vmem:[#allocation2 + $0x60] sm:$0x1] %vm796_vm1, %v5933_v56  ;;  %5707 = vmatprep.subr.bf16.mxu1 %v5783_v57  ;;  %v929_v59 = vld [vmem:[#allocation2] sm:$0xff]  ;;  %v930_v60 = vld [vmem:[#allocation2 + $0x8] sm:$0xff] }
  0x5c   : > { %803 = vst.msk [vmem:[#allocation2 + $0x70] sm:$0x1] %vm796_vm1, %v5933_v56  ;;  %804 = vst.msk [vmem:[#allocation2 + $0x80] sm:$0x1] %vm796_vm1, %v5933_v56  ;;  %5709 = vmatpush3.bf16.msra.mxu1 %v5783_v57  ;;  %v961_v61 = vpack.c.bf16 %v930_v60, %v929_v59  ;;  %v6225_v62 = vld [vmem:[#allocation7 + $0x28] sm:$0xff]   ;;  %v6228_v63 = vld [vmem:[#allocation7 + $0x18] sm:$0xff]  }
  0x5d   : > { %805 = vst.msk [vmem:[#allocation2 + $0x90] sm:$0x1] %vm796_vm1, %v5933_v56  ;;  %806 = vst.msk [vmem:[#allocation2 + $0xa0] sm:$0x1] %vm796_vm1, %v5933_v56  ;;  %5708 = vmatprep.subr.bf16.mxu1 %v5784_v58  ;;  %v6234_v0 = vld [vmem:[%s7667_s2] ss:$0 sm:$0xff] }
  0x5e   : > { %5308 = vmatpush3.bf16.msra.mxu0 %v5779_v7  ;;  %807 = vst.msk [vmem:[#allocation2 + $0xb0] sm:$0x1] %vm796_vm1, %v5933_v56  ;;  %808 = vst.msk [vmem:[#allocation2 + $0xc0] sm:$0x1] %vm796_vm1, %v5933_v56  ;;  %v6239_v2 = vld [vmem:[%s7668_s3] ss:$0 sm:$0xff] }
  0x5f   : > { %5309 = vmatprep.subr.bf16.mxu0 %v5780_v8  ;;  %809 = vst.msk [vmem:[#allocation2 + $0xd0] sm:$0x1] %vm796_vm1, %v5933_v56  ;;  %810 = vst.msk [vmem:[#allocation2 + $0xe0] sm:$0x1] %vm796_vm1, %v5933_v56  ;;  %v5786_v48 = vld [vmem:[#allocation7 + $0x20] sm:$0xff]   ;;  %v1605_v59 = vld [vmem:[#allocation2 + $0x248] sm:$0xff] }
  0x60   : > { %811 = vst.msk [vmem:[#allocation2 + $0xf0] sm:$0x1] %vm796_vm1, %v5933_v56  ;;  %812 = vst.msk [vmem:[#allocation2 + $0x100] sm:$0x1] %vm796_vm1, %v5933_v56  ;;  %5710 = vmatpush3.bf16.msra.mxu1 %v5784_v58  ;;  %v6305_v60 = vld [vmem:[#allocation7 + $0x48] sm:$0xff]  }
  0x61   : > { %814 = vst.msk [vmem:[#allocation2 + $0x25f] sm:$0x1] %vm796_vm1, %v5933_v56  ;;  %815 = vst.msk [vmem:[#allocation2 + $0x26f] sm:$0x1] %vm796_vm1, %v5933_v56  ;;  %5383 = vmatprep.subr.bf16.mxu1 %v6228_v63 }
  0x62   : > { %5310 = vmatpush3.bf16.msra.mxu0 %v5780_v8  ;;  %816 = vst.msk [vmem:[#allocation2 + $0x27f] sm:$0x1] %vm796_vm1, %v5933_v56  ;;  %817 = vst.msk [vmem:[#allocation2 + $0x28f] sm:$0x1] %vm796_vm1, %v5933_v56 }
  0x63   : > { %5311 = vmatprep.subr.bf16.mxu0 %v5781_v9  ;;  %818 = vst.msk [vmem:[#allocation2 + $0x29f] sm:$0x1] %vm796_vm1, %v5933_v56  ;;  %819 = vst.msk [vmem:[#allocation2 + $0x2af] sm:$0x1] %vm796_vm1, %v5933_v56 }
  0x64   : > { %820 = vst.msk [vmem:[#allocation2 + $0x2bf] sm:$0x1] %vm796_vm1, %v5933_v56  ;;  %821 = vst.msk [vmem:[#allocation2 + $0x2cf] sm:$0x1] %vm796_vm1, %v5933_v56 }
  0x65   : > { %822 = vst.msk [vmem:[#allocation2 + $0x2df] sm:$0x1] %vm796_vm1, %v5933_v56  ;;  %823 = vst.msk [vmem:[#allocation2 + $0x2ef] sm:$0x1] %vm796_vm1, %v5933_v56 }
  0x66   : > { %5312 = vmatpush3.bf16.msra.mxu0 %v5781_v9  ;;  %824 = vst.msk [vmem:[#allocation2 + $0x2ff] sm:$0x1] %vm796_vm1, %v5933_v56  ;;  %825 = vst.msk [vmem:[#allocation2 + $0x30f] sm:$0x1] %vm796_vm1, %v5933_v56 }
  0x67   : > { %5313 = vmatprep.subr.bf16.mxu0 %v5782_v10  ;;  %826 = vst.msk [vmem:[#allocation2 + $0x31f] sm:$0x1] %vm796_vm1, %v5933_v56  ;;  %827 = vst.msk [vmem:[#allocation2 + $0x32f] sm:$0x1] %vm796_vm1, %v5933_v56 }
  0x68   : > { %828 = vst.msk [vmem:[#allocation2 + $0x33f] sm:$0x1] %vm796_vm1, %v5933_v56  ;;  %829 = vst.msk [vmem:[#allocation2 + $0x34f] sm:$0x1] %vm796_vm1, %v5933_v56 }
  0x6a   : > { %5314 = vmatpush3.bf16.msra.mxu0 %v5782_v10 }
  0x6b   : > { %5347 = vmatprep.subr.bf16.mxu0 %v5783_v57 }
  0x6d   : > { %5316 = vmatmul.mubr.bf16.vlgmr.msra.gmra.mxu0 %v427_v15 }
  0x6e   : > { %5319 = vmatprep.mubr.bf16.mxu0 %v428_v16  ;;  %5348 = vmatpush3.bf16.msra.mxu0 %v5783_v57 }
  0x6f   : > { %5349 = vmatprep.subr.bf16.mxu0 %v5784_v58 }
  0x72   : > { %5350 = vmatpush3.bf16.msra.mxu0 %v5784_v58  ;;  %v1604_v58 = vld [vmem:[#allocation2 + $0x240] sm:$0xff] }
  0x73   : > { %5419 = vmatprep.subr.bf16.mxu0 %v6225_v62 }
  0x75   : > { %5320 = vmatmul.mubr.bf16.gmra.mxu0 %v429_v21 }
  0x76   : > { %5323 = vmatprep.mubr.bf16.mxu0 %v430_v22 }
  0x7d   : > { %5324 = vmatmul.mubr.bf16.gmra.mxu0 %v431_v27 }
  0x7e   : > { %5327 = vmatprep.mubr.bf16.mxu0 %v432_v28 }
  0x85   : > { %5328 = vmatmul.mubr.bf16.gmra.mxu0 %v433_v33 }
  0x86   : > { %5331 = vmatprep.mubr.bf16.mxu0 %v434_v34 }
  0x8d   : > { %5332 = vmatmul.mubr.bf16.gmra.mxu0 %v435_v39 }
  0x8e   : > { %5335 = vmatprep.mubr.bf16.mxu0 %v436_v40 }
  0x95   : > { %5336 = vmatmul.mubr.bf16.gmra.mxu0 %v437_v45 }
  0x96   : > { %5339 = vmatprep.mubr.bf16.mxu0 %v438_v46 }
  0x9d   : > { %5340 = vmatmul.mubr.bf16.gmra.mxu0 %v439_v51 }
  0x9e   : > { %5343 = vmatprep.mubr.bf16.mxu0 %v440_v52 }
  0xa5   : > { %5344 = vmatmul.mubr.bf16.gmra.mxu0 %v441_v55 }
  0xa6   : > { %5351 = vmatprep.mubr.msk.bf16.mxu0 %vm777_vm0, %v961_v61 }
 0x12d   : > { %v5317_v1 = vpop.f32.mrf.mxu0 }
 0x12e   : > { %v676_v3 = vmul.f32 %v5317_v1, %v6234_v0 }
 0x12f   : > { %v540_v4 = vpop.f32.mrf.mxu0 }
 0x130   : > { %v715_v5 = vadd.f32 %v6239_v2, %v676_v3  ;;  %v674_v6 = vmul.f32 %v6234_v0, %v540_v4 }
 0x131   : > { %v5318_v7 = vpop.f32.mrf.mxu0 }
 0x132   : > { %v747_v8 = vmax.f32 %v715_v5, 0.0  ;;  %v713_v9 = vadd.f32 %v6239_v2, %v674_v6  ;;  %v677_v10 = vmul.f32 %v5318_v7, %v6234_v0 }
 0x133   : > { %v543_v11 = vpop.f32.mrf.mxu0 }
 0x134   : > { %833 = vst.msk [vmem:[#allocation2 + $0x140] sm:$0xff] %vm777_vm0, %v747_v8  ;;  %866 = vst.msk [vmem:[#allocation2 + $0x21] sm:$0xff] %vm777_vm0, %v747_v8  ;;  %v745_v12 = vmax.f32 %v713_v9, 0.0  ;;  %v716_v13 = vadd.f32 %v6239_v2, %v677_v10  ;;  %v675_v14 = vmul.f32 %v6234_v0, %v543_v11  ;;  %v1636_v10 = vpack.c.bf16 %v1605_v59, %v1604_v58 }
 0x135   : > { %899 = vst.msk [vmem:[#allocation2 + $0x25f] sm:$0xfe] %vm896_vm2, %v747_v8  ;;  %v5321_v15 = vpop.f32.mrf.mxu0 }
 0x136   : > { %831 = vst.msk [vmem:[#allocation2 + $0x130] sm:$0xff] %vm777_vm0, %v745_v12  ;;  %863 = vst.msk [vmem:[#allocation2 + $0x11] sm:$0xff] %vm777_vm0, %v745_v12  ;;  %v748_v16 = vmax.f32 %v716_v13, 0.0  ;;  %v714_v17 = vadd.f32 %v6239_v2, %v675_v14  ;;  %v680_v18 = vmul.f32 %v5321_v15, %v6234_v0 }
 0x137   : > { %897 = vst.msk [vmem:[#allocation2 + $0x24f] sm:$0xfe] %vm896_vm2, %v745_v12  ;;  %v556_v19 = vpop.f32.mrf.mxu0 }
 0x138   : > { %834 = vst.msk [vmem:[#allocation2 + $0x148] sm:$0xff] %vm777_vm0, %v748_v16  ;;  %900 = vst.msk [vmem:[#allocation2 + $0x267] sm:$0xff] %vm777_vm0, %v748_v16  ;;  %v746_v20 = vmax.f32 %v714_v17, 0.0  ;;  %v719_v21 = vadd.f32 %v6239_v2, %v680_v18  ;;  %v678_v22 = vmul.f32 %v6234_v0, %v556_v19 }
 0x139   : > { %867 = vst.msk [vmem:[#allocation2 + $0x29] sm:$0x7f] %vm864_vm3, %v748_v16  ;;  %v5322_v23 = vpop.f32.mrf.mxu0 }
 0x13a   : > { %832 = vst.msk [vmem:[#allocation2 + $0x138] sm:$0xff] %vm777_vm0, %v746_v20  ;;  %898 = vst.msk [vmem:[#allocation2 + $0x257] sm:$0xff] %vm777_vm0, %v746_v20  ;;  %v751_v24 = vmax.f32 %v719_v21, 0.0  ;;  %v717_v25 = vadd.f32 %v6239_v2, %v678_v22  ;;  %v681_v26 = vmul.f32 %v5322_v23, %v6234_v0 }
 0x13b   : > { %865 = vst.msk [vmem:[#allocation2 + $0x19] sm:$0x7f] %vm864_vm3, %v746_v20  ;;  %v559_v27 = vpop.f32.mrf.mxu0  ;;  %v933_v47 = vld [vmem:[#allocation2 + $0x20] sm:$0xff] }
 0x13c   : > { %837 = vst.msk [vmem:[#allocation2 + $0x160] sm:$0xff] %vm777_vm0, %v751_v24  ;;  %870 = vst.msk [vmem:[#allocation2 + $0x41] sm:$0xff] %vm777_vm0, %v751_v24  ;;  %v749_v28 = vmax.f32 %v717_v25, 0.0  ;;  %v720_v29 = vadd.f32 %v6239_v2, %v681_v26  ;;  %v679_v30 = vmul.f32 %v6234_v0, %v559_v27 }
 0x13d   : > { %903 = vst.msk [vmem:[#allocation2 + $0x27f] sm:$0xfe] %vm896_vm2, %v751_v24  ;;  %v5325_v31 = vpop.f32.mrf.mxu0  ;;  %v931_v41 = vld [vmem:[#allocation2 + $0x10] sm:$0xff] }
 0x13e   : > { %835 = vst.msk [vmem:[#allocation2 + $0x150] sm:$0xff] %vm777_vm0, %v749_v28  ;;  %868 = vst.msk [vmem:[#allocation2 + $0x31] sm:$0xff] %vm777_vm0, %v749_v28  ;;  %v752_v32 = vmax.f32 %v720_v29, 0.0  ;;  %v718_v33 = vadd.f32 %v6239_v2, %v679_v30  ;;  %v684_v34 = vmul.f32 %v5325_v31, %v6234_v0 }
 0x13f   : > { %901 = vst.msk [vmem:[#allocation2 + $0x26f] sm:$0xfe] %vm896_vm2, %v749_v28  ;;  %v572_v35 = vpop.f32.mrf.mxu0  ;;  %v1608_v30 = vld [vmem:[#allocation2 + $0x260] sm:$0xff] }
 0x140   : > { %838 = vst.msk [vmem:[#allocation2 + $0x168] sm:$0xff] %vm777_vm0, %v752_v32  ;;  %904 = vst.msk [vmem:[#allocation2 + $0x287] sm:$0xff] %vm777_vm0, %v752_v32  ;;  %v750_v36 = vmax.f32 %v718_v33, 0.0  ;;  %v723_v37 = vadd.f32 %v6239_v2, %v684_v34  ;;  %v682_v38 = vmul.f32 %v6234_v0, %v572_v35  ;;  %v934_v39 = vld [vmem:[#allocation2 + $0x28] sm:$0xff] }
 0x141   : > { %871 = vst.msk [vmem:[#allocation2 + $0x49] sm:$0x7f] %vm864_vm3, %v752_v32  ;;  %v5326_v40 = vpop.f32.mrf.mxu0  ;;  %v6288_v50 = vpack.c.bf16 %v934_v39, %v933_v47  ;;  %v1606_v23 = vld [vmem:[#allocation2 + $0x250] sm:$0xff]  ;;  %v1607_v24 = vld [vmem:[#allocation2 + $0x258] sm:$0xff]  ;;  %v1609_v35 = vld [vmem:[#allocation2 + $0x268] sm:$0xff] }
 0x142   : > { %v932_v42 = vld [vmem:[#allocation2 + $0x18] sm:$0xff]  ;;  %836 = vst.msk [vmem:[#allocation2 + $0x158] sm:$0xff] %vm777_vm0, %v750_v36  ;;  %902 = vst.msk [vmem:[#allocation2 + $0x277] sm:$0xff] %vm777_vm0, %v750_v36  ;;  %v755_v43 = vmax.f32 %v723_v37, 0.0  ;;  %v721_v44 = vadd.f32 %v6239_v2, %v682_v38  ;;  %v685_v45 = vmul.f32 %v5326_v40, %v6234_v0  ;;  %v6342_v34 = vpack.c.bf16 %v1607_v24, %v1606_v23 }
 0x143   : > { %869 = vst.msk [vmem:[#allocation2 + $0x39] sm:$0x7f] %vm864_vm3, %v750_v36  ;;  %v6286_v46 = vpack.c.bf16 %v932_v42, %v931_v41  ;;  %v575_v49 = vpop.f32.mrf.mxu0  ;;  %v937_v1 = vld [vmem:[#allocation2 + $0x40] sm:$0xff]  ;;  %v5788_v41 = vld [vmem:[#allocation7 + $0x10] sm:$0xff]  }
 0x144   : > { %841 = vst.msk [vmem:[#allocation2 + $0x180] sm:$0xff] %vm777_vm0, %v755_v43  ;;  %874 = vst.msk [vmem:[#allocation2 + $0x61] sm:$0xff] %vm777_vm0, %v755_v43  ;;  %v753_v51 = vmax.f32 %v721_v44, 0.0  ;;  %v724_v52 = vadd.f32 %v6239_v2, %v685_v45  ;;  %v683_v53 = vmul.f32 %v6234_v0, %v575_v49  ;;  %v5791_v49 = vld [vmem:[#allocation7 + $0x40] sm:$0xff]  }
 0x145   : > { %907 = vst.msk [vmem:[#allocation2 + $0x29f] sm:$0xfe] %vm896_vm2, %v755_v43  ;;  %5352 = vmatmul.mubr.msk.bf16.vlgmr.msra.gmra.mxu0 %vm777_vm0, %v6286_v46  ;;  %v5329_v54 = vpop.f32.mrf.mxu0  ;;  %v935_v8 = vld [vmem:[#allocation2 + $0x30] sm:$0xff] }
 0x146   : > { %5355 = vmatprep.mubr.msk.bf16.mxu0 %vm777_vm0, %v6288_v50  ;;  %5420 = vmatpush3.bf16.msra.mxu0 %v6225_v62  ;;  %839 = vst.msk [vmem:[#allocation2 + $0x170] sm:$0xff] %vm777_vm0, %v753_v51  ;;  %872 = vst.msk [vmem:[#allocation2 + $0x51] sm:$0xff] %vm777_vm0, %v753_v51  ;;  %v756_v55 = vmax.f32 %v724_v52, 0.0  ;;  %v722_v56 = vadd.f32 %v6239_v2, %v683_v53  ;;  %v688_v57 = vmul.f32 %v5329_v54, %v6234_v0 }
 0x147   : > { %905 = vst.msk [vmem:[#allocation2 + $0x28f] sm:$0xfe] %vm896_vm2, %v753_v51  ;;  %5421 = vmatprep.subr.bf16.mxu0 %v5786_v48  ;;  %v588_v61 = vpop.f32.mrf.mxu0 }
 0x148   : > { %v938_v3 = vld [vmem:[#allocation2 + $0x48] sm:$0xff]  ;;  %842 = vst.msk [vmem:[#allocation2 + $0x188] sm:$0xff] %vm777_vm0, %v756_v55  ;;  %908 = vst.msk [vmem:[#allocation2 + $0x2a7] sm:$0xff] %vm777_vm0, %v756_v55  ;;  %v754_v62 = vmax.f32 %v722_v56, 0.0  ;;  %v727_v4 = vadd.f32 %v6239_v2, %v688_v57  ;;  %v686_v5 = vmul.f32 %v6234_v0, %v588_v61  ;;  %v6374_v56 = vld [vmem:[#allocation7 + $0x38] sm:$0xff]  }
 0x149   : > { %875 = vst.msk [vmem:[#allocation2 + $0x69] sm:$0x7f] %vm864_vm3, %v756_v55  ;;  %v6312_v6 = vpack.c.bf16 %v938_v3, %v937_v1  ;;  %v5330_v7 = vpop.f32.mrf.mxu0  ;;  %v1610_v55 = vld [vmem:[#allocation2 + $0x270] sm:$0xff]  ;;  %v1612_v3 = vld [vmem:[#allocation2 + $0x280] sm:$0xff] }
 0x14a   : > { %v936_v9 = vld [vmem:[#allocation2 + $0x38] sm:$0xff]  ;;  %5422 = vmatpush3.bf16.msra.mxu0 %v5786_v48  ;;  %840 = vst.msk [vmem:[#allocation2 + $0x178] sm:$0xff] %vm777_vm0, %v754_v62  ;;  %906 = vst.msk [vmem:[#allocation2 + $0x297] sm:$0xff] %vm777_vm0, %v754_v62  ;;  %v759_v11 = vmax.f32 %v727_v4, 0.0  ;;  %v725_v12 = vadd.f32 %v6239_v2, %v686_v5  ;;  %v689_v13 = vmul.f32 %v5330_v7, %v6234_v0 }
 0x14b   : > { %873 = vst.msk [vmem:[#allocation2 + $0x59] sm:$0x7f] %vm864_vm3, %v754_v62  ;;  %5359 = vmatprep.mubr.msk.bf16.mxu1 %vm777_vm0, %v6312_v6  ;;  %v6321_v14 = vpack.c.bf16 %v936_v9, %v935_v8  ;;  %5491 = vmatprep.subr.bf16.mxu0 %v6305_v60  ;;  %v591_v15 = vpop.f32.mrf.mxu0  ;;  %v941_v40 = vld [vmem:[#allocation2 + $0x60] sm:$0xff]  ;;  %v6362_v48 = vpack.c.bf16 %v1609_v35, %v1608_v30  ;;  %v1613_v62 = vld [vmem:[#allocation2 + $0x288] sm:$0xff] }
 0x14c   : > { %845 = vst.msk [vmem:[#allocation2 + $0x1a0] sm:$0xff] %vm777_vm0, %v759_v11  ;;  %878 = vst.msk [vmem:[#allocation2 + $0x81] sm:$0xff] %vm777_vm0, %v759_v11  ;;  %v757_v16 = vmax.f32 %v725_v12, 0.0  ;;  %v728_v17 = vadd.f32 %v6239_v2, %v689_v13  ;;  %v687_v18 = vmul.f32 %v6234_v0, %v591_v15  ;;  %v6392_v13 = vld [vmem:[#allocation7 + $0x68] sm:$0xff]  }
 0x14d   : > { %911 = vst.msk [vmem:[#allocation2 + $0x2bf] sm:$0xfe] %vm896_vm2, %v759_v11  ;;  %5356 = vmatmul.mubr.msk.bf16.gmra.mxu0 %vm777_vm0, %v6321_v14  ;;  %v5333_v19 = vpop.f32.mrf.mxu0  ;;  %v939_v32 = vld [vmem:[#allocation2 + $0x50] sm:$0xff] }
 0x14e   : > { %5423 = vmatprep.mubr.msk.bf16.mxu0 %vm777_vm0, %v1636_v10  ;;  %843 = vst.msk [vmem:[#allocation2 + $0x190] sm:$0xff] %vm777_vm0, %v757_v16  ;;  %876 = vst.msk [vmem:[#allocation2 + $0x71] sm:$0xff] %vm777_vm0, %v757_v16  ;;  %v760_v20 = vmax.f32 %v728_v17, 0.0  ;;  %v726_v21 = vadd.f32 %v6239_v2, %v687_v18  ;;  %v692_v22 = vmul.f32 %v5333_v19, %v6234_v0 }
 0x14f   : > { %909 = vst.msk [vmem:[#allocation2 + $0x2af] sm:$0xfe] %vm896_vm2, %v757_v16  ;;  %v604_v25 = vpop.f32.mrf.mxu0  ;;  %v6396_v17 = vpack.c.bf16 %v1613_v62, %v1612_v3 }
 0x150   : > { %846 = vst.msk [vmem:[#allocation2 + $0x1a8] sm:$0xff] %vm777_vm0, %v760_v20  ;;  %912 = vst.msk [vmem:[#allocation2 + $0x2c7] sm:$0xff] %vm777_vm0, %v760_v20  ;;  %v758_v26 = vmax.f32 %v726_v21, 0.0  ;;  %v731_v27 = vadd.f32 %v6239_v2, %v692_v22  ;;  %v690_v28 = vmul.f32 %v6234_v0, %v604_v25  ;;  %v942_v29 = vld [vmem:[#allocation2 + $0x68] sm:$0xff] }
 0x151   : > { %879 = vst.msk [vmem:[#allocation2 + $0x89] sm:$0x7f] %vm864_vm3, %v760_v20  ;;  %v5334_v31 = vpop.f32.mrf.mxu0  ;;  %v6351_v43 = vpack.c.bf16 %v942_v29, %v941_v40  ;;  %v1614_v25 = vld [vmem:[#allocation2 + $0x290] sm:$0xff] }
 0x152   : > { %v940_v33 = vld [vmem:[#allocation2 + $0x58] sm:$0xff]  ;;  %844 = vst.msk [vmem:[#allocation2 + $0x198] sm:$0xff] %vm777_vm0, %v758_v26  ;;  %910 = vst.msk [vmem:[#allocation2 + $0x2b7] sm:$0xff] %vm777_vm0, %v758_v26  ;;  %v763_v36 = vmax.f32 %v731_v27, 0.0  ;;  %v729_v37 = vadd.f32 %v6239_v2, %v690_v28  ;;  %v693_v38 = vmul.f32 %v5334_v31, %v6234_v0 }
 0x153   : > { %877 = vst.msk [vmem:[#allocation2 + $0x79] sm:$0x7f] %vm864_vm3, %v758_v26  ;;  %v6349_v39 = vpack.c.bf16 %v940_v33, %v939_v32  ;;  %v607_v42 = vpop.f32.mrf.mxu0  ;;  %v945_v12 = vld [vmem:[#allocation2 + $0x80] sm:$0xff]  ;;  %v1615_v26 = vld [vmem:[#allocation2 + $0x298] sm:$0xff]  ;;  %v1617_v33 = vld [vmem:[#allocation2 + $0x2a8] sm:$0xff] }
 0x154   : > { %849 = vst.msk [vmem:[#allocation2 + $0x1c0] sm:$0xff] %vm777_vm0, %v763_v36  ;;  %882 = vst.msk [vmem:[#allocation2 + $0xa1] sm:$0xff] %vm777_vm0, %v763_v36  ;;  %v761_v44 = vmax.f32 %v729_v37, 0.0  ;;  %v732_v45 = vadd.f32 %v6239_v2, %v693_v38  ;;  %v691_v47 = vmul.f32 %v6234_v0, %v607_v42  ;;  %v1616_v32 = vld [vmem:[#allocation2 + $0x2a0] sm:$0xff]  ;;  %v6422_v38 = vpack.c.bf16 %v1615_v26, %v1614_v25 }
 0x155   : > { %915 = vst.msk [vmem:[#allocation2 + $0x2df] sm:$0xfe] %vm896_vm2, %v763_v36  ;;  %5360 = vmatmul.mubr.msk.bf16.vlgmr.msra.gmra.mxu1 %vm777_vm0, %v6349_v39  ;;  %5424 = vmatmul.mubr.msk.bf16.vlgmr.msra.gmra.mxu0 %vm777_vm0, %v6342_v34  ;;  %v5337_v51 = vpop.f32.mrf.mxu0  ;;  %v943_v5 = vld [vmem:[#allocation2 + $0x70] sm:$0xff] }
 0x156   : > { %5384 = vmatpush3.bf16.msra.mxu1 %v6228_v63  ;;  %5363 = vmatprep.mubr.msk.bf16.mxu1 %vm777_vm0, %v6351_v43  ;;  %847 = vst.msk [vmem:[#allocation2 + $0x1b0] sm:$0xff] %vm777_vm0, %v761_v44  ;;  %880 = vst.msk [vmem:[#allocation2 + $0x91] sm:$0xff] %vm777_vm0, %v761_v44  ;;  %v764_v52 = vmax.f32 %v732_v45, 0.0  ;;  %v730_v53 = vadd.f32 %v6239_v2, %v691_v47  ;;  %v696_v54 = vmul.f32 %v5337_v51, %v6234_v0  ;;  %v1611_v63 = vld [vmem:[#allocation2 + $0x278] sm:$0xff] }
 0x157   : > { %913 = vst.msk [vmem:[#allocation2 + $0x2cf] sm:$0xfe] %vm896_vm2, %v761_v44  ;;  %5427 = vmatprep.mubr.msk.bf16.mxu0 %vm777_vm0, %v6362_v48  ;;  %5385 = vmatprep.subr.bf16.mxu1 %v5788_v41  ;;  %v620_v57 = vpop.f32.mrf.mxu0  ;;  %v6382_v8 = vpack.c.bf16 %v1611_v63, %v1610_v55  ;;  %v6433_v51 = vpack.c.bf16 %v1617_v33, %v1616_v32 }
 0x158   : > { %5492 = vmatpush3.bf16.msra.mxu0 %v6305_v60  ;;  %850 = vst.msk [vmem:[#allocation2 + $0x1c8] sm:$0xff] %vm777_vm0, %v764_v52  ;;  %916 = vst.msk [vmem:[#allocation2 + $0x2e7] sm:$0xff] %vm777_vm0, %v764_v52  ;;  %v762_v58 = vmax.f32 %v730_v53, 0.0  ;;  %v735_v59 = vadd.f32 %v6239_v2, %v696_v54  ;;  %v694_v61 = vmul.f32 %v6234_v0, %v620_v57  ;;  %v946_v1 = vld [vmem:[#allocation2 + $0x88] sm:$0xff] }
 0x159   : > { %883 = vst.msk [vmem:[#allocation2 + $0xa9] sm:$0x7f] %vm864_vm3, %v764_v52  ;;  %5493 = vmatprep.subr.bf16.mxu0 %v5791_v49  ;;  %v5338_v4 = vpop.f32.mrf.mxu0  ;;  %v6394_v16 = vpack.c.bf16 %v946_v1, %v945_v12 }
 0x15a   : > { %v944_v7 = vld [vmem:[#allocation2 + $0x78] sm:$0xff]  ;;  %5386 = vmatpush3.bf16.msra.mxu1 %v5788_v41  ;;  %848 = vst.msk [vmem:[#allocation2 + $0x1b8] sm:$0xff] %vm777_vm0, %v762_v58  ;;  %914 = vst.msk [vmem:[#allocation2 + $0x2d7] sm:$0xff] %vm777_vm0, %v762_v58  ;;  %v767_v60 = vmax.f32 %v735_v59, 0.0  ;;  %v733_v9 = vadd.f32 %v6239_v2, %v694_v61  ;;  %v697_v10 = vmul.f32 %v5338_v4, %v6234_v0  ;;  %v1618_v59 = vld [vmem:[#allocation2 + $0x2b0] sm:$0xff] }
 0x15b   : > { %881 = vst.msk [vmem:[#allocation2 + $0x99] sm:$0x7f] %vm864_vm3, %v762_v58  ;;  %v6389_v11 = vpack.c.bf16 %v944_v7, %v943_v5  ;;  %5455 = vmatprep.subr.bf16.mxu1 %v6374_v56  ;;  %v623_v15 = vpop.f32.mrf.mxu0  ;;  %v949_v45 = vld [vmem:[#allocation2 + $0xa0] sm:$0xff]  ;;  %v1619_v61 = vld [vmem:[#allocation2 + $0x2b8] sm:$0xff] }
 0x15c   : > { %5494 = vmatpush3.bf16.msra.mxu0 %v5791_v49  ;;  %853 = vst.msk [vmem:[#allocation2 + $0x1e0] sm:$0xff] %vm777_vm0, %v767_v60  ;;  %886 = vst.msk [vmem:[#allocation2 + $0xc1] sm:$0xff] %vm777_vm0, %v767_v60  ;;  %v765_v18 = vmax.f32 %v733_v9, 0.0  ;;  %v736_v19 = vadd.f32 %v6239_v2, %v697_v10  ;;  %v695_v20 = vmul.f32 %v6234_v0, %v623_v15  ;;  %v1620_v7 = vld [vmem:[#allocation2 + $0x2c0] sm:$0xff] }
 0x15d   : > { %919 = vst.msk [vmem:[#allocation2 + $0x2ff] sm:$0xfe] %vm896_vm2, %v767_v60  ;;  %5364 = vmatmul.mubr.msk.bf16.gmra.mxu1 %vm777_vm0, %v6389_v11  ;;  %5428 = vmatmul.mubr.msk.bf16.gmra.mxu0 %vm777_vm0, %v6382_v8  ;;  %v5341_v21 = vpop.f32.mrf.mxu0  ;;  %v947_v36 = vld [vmem:[#allocation2 + $0x90] sm:$0xff]  ;;  %v1621_v60 = vld [vmem:[#allocation2 + $0x2c8] sm:$0xff]  ;;  %v6458_v15 = vpack.c.bf16 %v1619_v61, %v1618_v59 }
 0x15e   : > { %5367 = vmatprep.mubr.msk.bf16.mxu1 %vm777_vm0, %v6394_v16  ;;  %5431 = vmatprep.mubr.msk.bf16.mxu0 %vm777_vm0, %v6396_v17  ;;  %851 = vst.msk [vmem:[#allocation2 + $0x1d0] sm:$0xff] %vm777_vm0, %v765_v18  ;;  %884 = vst.msk [vmem:[#allocation2 + $0xb1] sm:$0xff] %vm777_vm0, %v765_v18  ;;  %v768_v22 = vmax.f32 %v736_v19, 0.0  ;;  %v734_v23 = vadd.f32 %v6239_v2, %v695_v20  ;;  %v700_v24 = vmul.f32 %v5341_v21, %v6234_v0 }
 0x15f   : > { %917 = vst.msk [vmem:[#allocation2 + $0x2ef] sm:$0xfe] %vm896_vm2, %v765_v18  ;;  %5563 = vmatprep.subr.bf16.mxu0 %v6392_v13  ;;  %v636_v27 = vpop.f32.mrf.mxu0  ;;  %v6469_v25 = vpack.c.bf16 %v1621_v60, %v1620_v7  ;;  %v1239_v60 = vld [vmem:[#allocation2 + $0x148] sm:$0xff] }
 0x160   : > { %854 = vst.msk [vmem:[#allocation2 + $0x1e8] sm:$0xff] %vm777_vm0, %v768_v22  ;;  %920 = vst.msk [vmem:[#allocation2 + $0x307] sm:$0xff] %vm777_vm0, %v768_v22  ;;  %v766_v28 = vmax.f32 %v734_v23, 0.0  ;;  %v739_v29 = vadd.f32 %v6239_v2, %v700_v24  ;;  %v698_v30 = vmul.f32 %v6234_v0, %v636_v27  ;;  %v950_v31 = vld [vmem:[#allocation2 + $0xa8] sm:$0xff] }
 0x161   : > { %887 = vst.msk [vmem:[#allocation2 + $0xc9] sm:$0x7f] %vm864_vm3, %v768_v22  ;;  %v5342_v35 = vpop.f32.mrf.mxu0  ;;  %v6431_v49 = vpack.c.bf16 %v950_v31, %v949_v45  ;;  %v1623_v31 = vld [vmem:[#allocation2 + $0x2d8] sm:$0xff] }
 0x162   : > { %v948_v37 = vld [vmem:[#allocation2 + $0x98] sm:$0xff]  ;;  %852 = vst.msk [vmem:[#allocation2 + $0x1d8] sm:$0xff] %vm777_vm0, %v766_v28  ;;  %918 = vst.msk [vmem:[#allocation2 + $0x2f7] sm:$0xff] %vm777_vm0, %v766_v28  ;;  %v771_v40 = vmax.f32 %v739_v29, 0.0  ;;  %v737_v41 = vadd.f32 %v6239_v2, %v698_v30  ;;  %v701_v42 = vmul.f32 %v5342_v35, %v6234_v0  ;;  %v1622_v30 = vld [vmem:[#allocation2 + $0x2d0] sm:$0xff] }
 0x163   : > { %885 = vst.msk [vmem:[#allocation2 + $0xb9] sm:$0x7f] %vm864_vm3, %v766_v28  ;;  %v6429_v44 = vpack.c.bf16 %v948_v37, %v947_v36  ;;  %v639_v47 = vpop.f32.mrf.mxu0  ;;  %v953_v22 = vld [vmem:[#allocation2 + $0xc0] sm:$0xff]  ;;  %v1625_v36 = vld [vmem:[#allocation2 + $0x2e8] sm:$0xff] }
 0x164   : > { %857 = vst.msk [vmem:[#allocation2 + $0x200] sm:$0xff] %vm777_vm0, %v771_v40  ;;  %890 = vst.msk [vmem:[#allocation2 + $0xe1] sm:$0xff] %vm777_vm0, %v771_v40  ;;  %v769_v52 = vmax.f32 %v737_v41, 0.0  ;;  %v740_v53 = vadd.f32 %v6239_v2, %v701_v42  ;;  %v699_v54 = vmul.f32 %v6234_v0, %v639_v47  ;;  %v1624_v35 = vld [vmem:[#allocation2 + $0x2e0] sm:$0xff]  ;;  %v6496_v41 = vpack.c.bf16 %v1623_v31, %v1622_v30  ;;  %v1243_v30 = vld [vmem:[#allocation2 + $0x168] sm:$0xff] }
 0x165   : > { %923 = vst.msk [vmem:[#allocation2 + $0x31f] sm:$0xfe] %vm896_vm2, %v771_v40  ;;  %5368 = vmatmul.mubr.msk.bf16.gmra.mxu1 %vm777_vm0, %v6429_v44  ;;  %5432 = vmatmul.mubr.msk.bf16.gmra.mxu0 %vm777_vm0, %v6422_v38  ;;  %v5345_v55 = vpop.f32.mrf.mxu0  ;;  %v951_v10 = vld [vmem:[#allocation2 + $0xb0] sm:$0xff]  ;;  %v6500_v47 = vpack.c.bf16 %v1625_v36, %v1624_v35  ;;  %v1242_v35 = vld [vmem:[#allocation2 + $0x160] sm:$0xff]  ;;  %v1245_v36 = vld [vmem:[#allocation2 + $0x178] sm:$0xff] }
 0x166   : > { %5371 = vmatprep.mubr.msk.bf16.mxu1 %vm777_vm0, %v6431_v49  ;;  %5435 = vmatprep.mubr.msk.bf16.mxu0 %vm777_vm0, %v6433_v51  ;;  %855 = vst.msk [vmem:[#allocation2 + $0x1f0] sm:$0xff] %vm777_vm0, %v769_v52  ;;  %888 = vst.msk [vmem:[#allocation2 + $0xd1] sm:$0xff] %vm777_vm0, %v769_v52  ;;  %v772_v63 = vmax.f32 %v740_v53, 0.0  ;;  %v738_v57 = vadd.f32 %v6239_v2, %v699_v54  ;;  %v704_v58 = vmul.f32 %v5345_v55, %v6234_v0  ;;  %v1235_v53 = vld [vmem:[#allocation2 + $0x128] sm:$0xff]  ;;  %v1240_v31 = vld [vmem:[#allocation2 + $0x150] sm:$0xff] }
 0x167   : > { %921 = vst.msk [vmem:[#allocation2 + $0x30f] sm:$0xfe] %vm896_vm2, %v769_v52  ;;  %v652_v1 = vpop.f32.mrf.mxu0  ;;  %v1234_v52 = vld [vmem:[#allocation2 + $0x120] sm:$0xff] }
 0x168   : > { %858 = vst.msk [vmem:[#allocation2 + $0x208] sm:$0xff] %vm777_vm0, %v772_v63  ;;  %924 = vst.msk [vmem:[#allocation2 + $0x327] sm:$0xff] %vm777_vm0, %v772_v63  ;;  %v770_v3 = vmax.f32 %v738_v57, 0.0  ;;  %v743_v62 = vadd.f32 %v6239_v2, %v704_v58  ;;  %v702_v4 = vmul.f32 %v6234_v0, %v652_v1  ;;  %v954_v5 = vld [vmem:[#allocation2 + $0xc8] sm:$0xff]  ;;  %v1266_v61 = vpack.c.bf16 %v1235_v53, %v1234_v52  ;;  %v1246_v52 = vld [vmem:[#allocation2 + $0x180] sm:$0xff] }
 0x169   : > { %891 = vst.msk [vmem:[#allocation2 + $0xe9] sm:$0x7f] %vm864_vm3, %v772_v63  ;;  %v5346_v9 = vpop.f32.mrf.mxu0  ;;  %v6467_v24 = vpack.c.bf16 %v954_v5, %v953_v22  ;;  %v1626_v54 = vld [vmem:[#allocation2 + $0x2f0] sm:$0xff]  ;;  %v1627_v55 = vld [vmem:[#allocation2 + $0x2f8] sm:$0xff]  ;;  %v1628_v63 = vld [vmem:[#allocation2 + $0x300] sm:$0xff] }
 0x16a   : > { %v952_v12 = vld [vmem:[#allocation2 + $0xb8] sm:$0xff]  ;;  %856 = vst.msk [vmem:[#allocation2 + $0x1f8] sm:$0xff] %vm777_vm0, %v770_v3  ;;  %922 = vst.msk [vmem:[#allocation2 + $0x317] sm:$0xff] %vm777_vm0, %v770_v3  ;;  %v775_v18 = vmax.f32 %v743_v62, 0.0  ;;  %v741_v19 = vadd.f32 %v6239_v2, %v702_v4  ;;  %v705_v20 = vmul.f32 %v5346_v9, %v6234_v0  ;;  %v1629_v57 = vld [vmem:[#allocation2 + $0x308] sm:$0xff] }
 0x16b   : > { %889 = vst.msk [vmem:[#allocation2 + $0xd9] sm:$0x7f] %vm864_vm3, %v770_v3  ;;  %v6465_v21 = vpack.c.bf16 %v952_v12, %v951_v10  ;;  %v655_v23 = vpop.f32.mrf.mxu0  ;;  %v957_v42 = vld [vmem:[#allocation2 + $0xe0] sm:$0xff]  ;;  %v6512_v3 = vpack.c.bf16 %v1627_v55, %v1626_v54  ;;  %v6514_v62 = vpack.c.bf16 %v1629_v57, %v1628_v63  ;;  %v1237_v4 = vld [vmem:[#allocation2 + $0x138] sm:$0xff]  ;;  %v1236_v9 = vld [vmem:[#allocation2 + $0x130] sm:$0xff] }
 0x16c   : > { %861 = vst.msk [vmem:[#allocation2 + $0x220] sm:$0xff] %vm777_vm0, %v775_v18  ;;  %894 = vst.msk [vmem:[#allocation2 + $0x101] sm:$0xff] %vm777_vm0, %v775_v18  ;;  %v773_v26 = vmax.f32 %v741_v19, 0.0  ;;  %v744_v27 = vadd.f32 %v6239_v2, %v705_v20  ;;  %v703_v28 = vmul.f32 %v6234_v0, %v655_v23  ;;  %v1238_v20 = vld [vmem:[#allocation2 + $0x140] sm:$0xff]  ;;  %v5792_v22 = vld [vmem:[#allocation7 + $0x30] sm:$0xff]  }
 0x16d   : > { %927 = vst.msk [vmem:[#allocation2 + $0x33f] sm:$0xfe] %vm896_vm2, %v775_v18  ;;  %5372 = vmatmul.mubr.msk.bf16.gmra.mxu1 %vm777_vm0, %v6465_v21  ;;  %5436 = vmatmul.mubr.msk.bf16.gmra.mxu0 %vm777_vm0, %v6458_v15  ;;  %v955_v37 = vld [vmem:[#allocation2 + $0xd0] sm:$0xff]  ;;  %v1267_v18 = vpack.c.bf16 %v1237_v4, %v1236_v9  ;;  %v6525_v23 = vpack.c.bf16 %v1239_v60, %v1238_v20  ;;  %v5795_v54 = vld [vmem:[#allocation7 + $0x60] sm:$0xff]   ;;  %v1249_v55 = vld [vmem:[#allocation2 + $0x198] sm:$0xff] }
 0x16e   : > { %5375 = vmatprep.mubr.msk.bf16.mxu1 %vm777_vm0, %v6467_v24  ;;  %5439 = vmatprep.mubr.msk.bf16.mxu0 %vm777_vm0, %v6469_v25  ;;  %859 = vst.msk [vmem:[#allocation2 + $0x210] sm:$0xff] %vm777_vm0, %v773_v26  ;;  %892 = vst.msk [vmem:[#allocation2 + $0xf1] sm:$0xff] %vm777_vm0, %v773_v26  ;;  %v776_v29 = vmax.f32 %v744_v27, 0.0  ;;  %v742_v0 = vadd.f32 %v6239_v2, %v703_v28  ;;  %v6537_v27 = vld [vmem:[#allocation7 + $0x58] sm:$0xff]   ;;  %v6556_v63 = vld [vmem:[#allocation7 + $0x88] sm:$0xff]  }
 0x16f   : > { %925 = vst.msk [vmem:[#allocation2 + $0x32f] sm:$0xfe] %vm896_vm2, %v773_v26  ;;  %v1632_v10 = vld [vmem:[#allocation2 + $0x320] sm:$0xff]  ;;  %v1633_v12 = vld [vmem:[#allocation2 + $0x328] sm:$0xff]  ;;  %v1241_v28 = vld [vmem:[#allocation2 + $0x158] sm:$0xff] }
 0x170   : > { %862 = vst.msk [vmem:[#allocation2 + $0x228] sm:$0xff] %vm777_vm0, %v776_v29  ;;  %928 = vst.msk [vmem:[#allocation2 + $0x347] sm:$0xff] %vm777_vm0, %v776_v29  ;;  %v774_v32 = vmax.f32 %v742_v0, 0.0  ;;  %v958_v33 = vld [vmem:[#allocation2 + $0xe8] sm:$0xff]  ;;  %v6530_v26 = vpack.c.bf16 %v1633_v12, %v1632_v10  ;;  %v1254_v9 = vld [vmem:[#allocation2 + $0x1c0] sm:$0xff] }
 0x171   : > { %895 = vst.msk [vmem:[#allocation2 + $0x109] sm:$0x7f] %vm864_vm3, %v776_v29  ;;  %v6498_v45 = vpack.c.bf16 %v958_v33, %v957_v42  ;;  %v1630_v5 = vld [vmem:[#allocation2 + $0x310] sm:$0xff]  ;;  %v1631_v7 = vld [vmem:[#allocation2 + $0x318] sm:$0xff]  ;;  %v1251_v57 = vld [vmem:[#allocation2 + $0x1a8] sm:$0xff] }
 0x172   : > { %v956_v40 = vld [vmem:[#allocation2 + $0xd8] sm:$0xff]  ;;  %860 = vst.msk [vmem:[#allocation2 + $0x218] sm:$0xff] %vm777_vm0, %v774_v32  ;;  %926 = vst.msk [vmem:[#allocation2 + $0x337] sm:$0xff] %vm777_vm0, %v774_v32  ;;  %v6523_v19 = vpack.c.bf16 %v1631_v7, %v1630_v5  ;;  %v1255_v5 = vld [vmem:[#allocation2 + $0x1c8] sm:$0xff] }
 0x173   : > { %893 = vst.msk [vmem:[#allocation2 + $0xf9] sm:$0x7f] %vm864_vm3, %v774_v32  ;;  %v6494_v2 = vpack.c.bf16 %v956_v40, %v955_v37  ;;  %v1269_v32 = vpack.c.bf16 %v1241_v28, %v1240_v31  ;;  %v1247_v37 = vld [vmem:[#allocation2 + $0x188] sm:$0xff]  ;;  %v1244_v40 = vld [vmem:[#allocation2 + $0x170] sm:$0xff]  ;;  %v1276_v10 = vpack.c.bf16 %v1255_v5, %v1254_v9  ;;  %v1257_v12 = vld [vmem:[#allocation2 + $0x1d8] sm:$0xff] }
 0x174   : > { %v1271_v42 = vpack.c.bf16 %v1245_v36, %v1244_v40  ;;  %v1272_v53 = vpack.c.bf16 %v1247_v37, %v1246_v52  ;;  %v1252_v7 = vld [vmem:[#allocation2 + $0x1b0] sm:$0xff]  ;;  %v1258_v28 = vld [vmem:[#allocation2 + $0x1e0] sm:$0xff] }
 0x175   : > { %5376 = vmatmul.mubr.msk.bf16.gmra.mxu1 %vm777_vm0, %v6494_v2  ;;  %5440 = vmatmul.mubr.msk.bf16.gmra.mxu0 %vm777_vm0, %v6496_v41  ;;  %v959_v58 = vld [vmem:[#allocation2 + $0xf0] sm:$0xff] }
 0x176   : > { %5379 = vmatprep.mubr.msk.bf16.mxu1 %vm777_vm0, %v6498_v45  ;;  %5443 = vmatprep.mubr.msk.bf16.mxu0 %vm777_vm0, %v6500_v47  ;;  %v1256_v20 = vld [vmem:[#allocation2 + $0x1d0] sm:$0xff] }
 0x177   : > { %v1260_v31 = vld [vmem:[#allocation2 + $0x1f0] sm:$0xff] }
 0x178   : > { %v1264_v40 = vld [vmem:[#allocation2 + $0x210] sm:$0xff] }
 0x179   : > { %v1634_v29 = vld [vmem:[#allocation2 + $0x330] sm:$0xff]  ;;  %v1635_v0 = vld [vmem:[#allocation2 + $0x338] sm:$0xff] }
 0x17a   : > { %v960_v59 = vld [vmem:[#allocation2 + $0xf8] sm:$0xff]  ;;  %v6539_v33 = vpack.c.bf16 %v1635_v0, %v1634_v29  ;;  %v5796_v52 = vld [vmem:[#allocation7 + $0x50] sm:$0xff]  }
 0x17b   : > { %v6510_v1 = vpack.c.bf16 %v960_v59, %v959_v58  ;;  %v1248_v58 = vld [vmem:[#allocation2 + $0x190] sm:$0xff]  ;;  %v1261_v0 = vld [vmem:[#allocation2 + $0x1f8] sm:$0xff] }
 0x17c   : > { %v1273_v59 = vpack.c.bf16 %v1249_v55, %v1248_v58  ;;  %v1265_v37 = vld [vmem:[#allocation2 + $0x218] sm:$0xff]  ;;  %v2374_v55 = vld [vmem:[#allocation2 + $0x220] sm:$0xff] }
 0x17d   : > { %5380 = vmatmul.mubr.msk.bf16.gmra.mxu1 %vm777_vm0, %v6510_v1  ;;  %5444 = vmatmul.mubr.msk.bf16.gmra.mxu0 %vm777_vm0, %v6512_v3 }
 0x17e   : > { %5447 = vmatprep.mubr.msk.bf16.mxu0 %vm777_vm0, %v6514_v62  ;;  %5387 = vmatprep.mubr.msk.bf16.mxu1 %vm777_vm0, %v1266_v61  ;;  %v1250_v61 = vld [vmem:[#allocation2 + $0x1a0] sm:$0xff] }
 0x17f   : > { %v1274_v4 = vpack.c.bf16 %v1251_v57, %v1250_v61 }
 0x185   : > { %5388 = vmatmul.mubr.msk.bf16.vlgmr.msra.gmra.mxu1 %vm777_vm0, %v1267_v18  ;;  %5448 = vmatmul.mubr.msk.bf16.gmra.mxu0 %vm777_vm0, %v6523_v19 }
 0x186   : > { %5456 = vmatpush3.bf16.msra.mxu1 %v6374_v56  ;;  %5391 = vmatprep.mubr.msk.bf16.mxu1 %vm777_vm0, %v6525_v23  ;;  %v6542_v56 = vpack.c.bf16 %v1243_v30, %v1242_v35  ;;  %v1263_v30 = vld [vmem:[#allocation2 + $0x208] sm:$0xff]  ;;  %v1262_v35 = vld [vmem:[#allocation2 + $0x200] sm:$0xff] }
 0x187   : > { %5451 = vmatprep.mubr.msk.bf16.mxu0 %vm777_vm0, %v6530_v26  ;;  %5457 = vmatprep.subr.bf16.mxu1 %v5792_v22  ;;  %v1280_v36 = vpack.c.bf16 %v1263_v30, %v1262_v35 }
 0x18a   : > { %5458 = vmatpush3.bf16.msra.mxu1 %v5792_v22  ;;  %v1277_v22 = vpack.c.bf16 %v1257_v12, %v1256_v20 }
 0x18b   : > { %5527 = vmatprep.subr.bf16.mxu1 %v6537_v27 }
 0x18d   : > { %5392 = vmatmul.mubr.msk.bf16.gmra.mxu1 %vm777_vm0, %v1269_v32  ;;  %5452 = vmatmul.mubr.msk.bf16.gmra.mxu0 %vm777_vm0, %v6539_v33 }
 0x18e   : > { %5395 = vmatprep.mubr.msk.bf16.mxu1 %vm777_vm0, %v6542_v56  ;;  %5495 = vmatprep.mubr.msk.bf16.mxu0 %vm777_vm0, %v1267_v18  ;;  %v1259_v18 = vld [vmem:[#allocation2 + $0x1e8] sm:$0xff] }
 0x18f   : > { %v1278_v29 = vpack.c.bf16 %v1259_v18, %v1258_v28 }
 0x195   : > { %5396 = vmatmul.mubr.msk.bf16.gmra.mxu1 %vm777_vm0, %v1271_v42  ;;  %5496 = vmatmul.mubr.msk.bf16.vlgmr.msra.gmra.mxu0 %vm777_vm0, %v6525_v23 }
 0x196   : > { %5399 = vmatprep.mubr.msk.bf16.mxu1 %vm777_vm0, %v1272_v53  ;;  %5499 = vmatprep.mubr.msk.bf16.mxu0 %vm777_vm0, %v1269_v32  ;;  %v1279_v32 = vpack.c.bf16 %v1261_v0, %v1260_v31 }
 0x197   : > { %5564 = vmatpush3.bf16.msra.mxu0 %v6392_v13  ;;  %v1253_v13 = vld [vmem:[#allocation2 + $0x1b8] sm:$0xff] }
 0x198   : > { %5565 = vmatprep.subr.bf16.mxu0 %v5795_v54  ;;  %v1275_v60 = vpack.c.bf16 %v1253_v13, %v1252_v7 }
 0x19b   : > { %5566 = vmatpush3.bf16.msra.mxu0 %v5795_v54  ;;  %v2375_v54 = vld [vmem:[#allocation2 + $0x228] sm:$0xff] }
 0x19c   : > { %5635 = vmatprep.subr.bf16.mxu0 %v6556_v63 }
 0x19d   : > { %5400 = vmatmul.mubr.msk.bf16.gmra.mxu1 %vm777_vm0, %v1273_v59  ;;  %5500 = vmatmul.mubr.msk.bf16.gmra.mxu0 %vm777_vm0, %v6542_v56 }
 0x19e   : > { %5403 = vmatprep.mubr.msk.bf16.mxu1 %vm777_vm0, %v1274_v4  ;;  %5503 = vmatprep.mubr.msk.bf16.mxu0 %vm777_vm0, %v1271_v42  ;;  %v1281_v42 = vpack.c.bf16 %v1265_v37, %v1264_v40 }
 0x1a5   : > { %5404 = vmatmul.mubr.msk.bf16.gmra.mxu1 %vm777_vm0, %v1275_v60  ;;  %5504 = vmatmul.mubr.msk.bf16.gmra.mxu0 %vm777_vm0, %v1272_v53  ;;  %v5797_v53 = vld [vmem:[#allocation7 + $0x78] sm:$0xff]  }
 0x1a6   : > { %5407 = vmatprep.mubr.msk.bf16.mxu1 %vm777_vm0, %v1276_v10  ;;  %5507 = vmatprep.mubr.msk.bf16.mxu0 %vm777_vm0, %v1273_v59 }
 0x1ad   : > { %5408 = vmatmul.mubr.msk.bf16.gmra.mxu1 %vm777_vm0, %v1277_v22  ;;  %5508 = vmatmul.mubr.msk.bf16.gmra.mxu0 %vm777_vm0, %v1274_v4 }
 0x1ae   : > { %5411 = vmatprep.mubr.msk.bf16.mxu1 %vm777_vm0, %v1278_v29  ;;  %5511 = vmatprep.mubr.msk.bf16.mxu0 %vm777_vm0, %v1275_v60 }
 0x1b5   : > { %5412 = vmatmul.mubr.msk.bf16.gmra.mxu1 %vm777_vm0, %v1279_v32  ;;  %5512 = vmatmul.mubr.msk.bf16.gmra.mxu0 %vm777_vm0, %v1276_v10 }
 0x1b6   : > { %5415 = vmatprep.mubr.msk.bf16.mxu1 %vm777_vm0, %v1280_v36  ;;  %5515 = vmatprep.mubr.msk.bf16.mxu0 %vm777_vm0, %v1277_v22 }
 0x1bd   : > { %5416 = vmatmul.mubr.msk.bf16.gmra.mxu1 %vm777_vm0, %v1281_v42  ;;  %5516 = vmatmul.mubr.msk.bf16.gmra.mxu0 %vm777_vm0, %v1278_v29 }
 0x1be   : > { %5459 = vmatprep.mubr.msk.bf16.mxu1 %vm777_vm0, %v6286_v46  ;;  %5519 = vmatprep.mubr.msk.bf16.mxu0 %vm777_vm0, %v1279_v32  ;;  %v2391_v46 = vpack.c.bf16 %v2375_v54, %v2374_v55 }
 0x1c5   : > { %5460 = vmatmul.mubr.msk.bf16.vlgmr.msra.gmra.mxu1 %vm777_vm0, %v6288_v50  ;;  %5520 = vmatmul.mubr.msk.bf16.gmra.mxu0 %vm777_vm0, %v1280_v36 }
 0x1c6   : > { %5528 = vmatpush3.bf16.msra.mxu1 %v6537_v27  ;;  %5463 = vmatprep.mubr.msk.bf16.mxu1 %vm777_vm0, %v6321_v14  ;;  %v5799_v27 = vld [vmem:[#allocation7 + $0x80] sm:$0xff]  }
 0x1c7   : > { %5523 = vmatprep.mubr.msk.bf16.mxu0 %vm777_vm0, %v1281_v42  ;;  %5529 = vmatprep.subr.bf16.mxu1 %v5796_v52 }
 0x1ca   : > { %5530 = vmatpush3.bf16.msra.mxu1 %v5796_v52  ;;  %v2744_v52 = vld [vmem:[#allocation2 + $0x340] sm:$0xff] }
 0x1cb   : > { %5599 = vmatprep.subr.bf16.mxu1 %v5797_v53 }
 0x1cd   : > { %5464 = vmatmul.mubr.msk.bf16.gmra.mxu1 %vm777_vm0, %v6312_v6  ;;  %5524 = vmatmul.mubr.msk.bf16.gmra.mxu0 %vm777_vm0, %v2391_v46 }
 0x1ce   : > { %5467 = vmatprep.mubr.msk.bf16.mxu1 %vm777_vm0, %v6349_v39  ;;  %5567 = vmatprep.mubr.msk.bf16.mxu0 %vm777_vm0, %v6288_v50  ;;  %v2005_v50 = vld [vmem:[#allocation2 + $0x108] sm:$0xff] }
 0x1d5   : > { %5468 = vmatmul.mubr.msk.bf16.gmra.mxu1 %vm777_vm0, %v6351_v43  ;;  %5568 = vmatmul.mubr.msk.bf16.vlgmr.msra.gmra.mxu0 %vm777_vm0, %v6321_v14 }
 0x1d6   : > { %5471 = vmatprep.mubr.msk.bf16.mxu1 %vm777_vm0, %v6389_v11  ;;  %5571 = vmatprep.mubr.msk.bf16.mxu0 %vm777_vm0, %v6312_v6  ;;  %v2004_v6 = vld [vmem:[#allocation2 + $0x100] sm:$0xff] }
 0x1d7   : > { %5636 = vmatpush3.bf16.msra.mxu0 %v6556_v63  ;;  %v2021_v14 = vpack.c.bf16 %v2005_v50, %v2004_v6 }
 0x1d8   : > { %5637 = vmatprep.subr.bf16.mxu0 %v5799_v27 }
 0x1db   : > { %5638 = vmatpush3.bf16.msra.mxu0 %v5799_v27 }
 0x1dd   : > { %5472 = vmatmul.mubr.msk.bf16.gmra.mxu1 %vm777_vm0, %v6394_v16  ;;  %5572 = vmatmul.mubr.msk.bf16.gmra.mxu0 %vm777_vm0, %v6349_v39  ;;  %v5800_v39 = vld [vmem:[#allocation7 + $0x70] sm:$0xff]  }
 0x1de   : > { %5475 = vmatprep.mubr.msk.bf16.mxu1 %vm777_vm0, %v6429_v44  ;;  %5575 = vmatprep.mubr.msk.bf16.mxu0 %vm777_vm0, %v6351_v43 }
 0x1e5   : > { %5476 = vmatmul.mubr.msk.bf16.gmra.mxu1 %vm777_vm0, %v6431_v49  ;;  %5576 = vmatmul.mubr.msk.bf16.gmra.mxu0 %vm777_vm0, %v6389_v11  ;;  %v3115_v11 = vld [vmem:[#allocation2 + $0x110] sm:$0xff] }
 0x1e6   : > { %5479 = vmatprep.mubr.msk.bf16.mxu1 %vm777_vm0, %v6465_v21  ;;  %5579 = vmatprep.mubr.msk.bf16.mxu0 %vm777_vm0, %v6394_v16  ;;  %v3116_v16 = vld [vmem:[#allocation2 + $0x118] sm:$0xff] }
 0x1ed   : > { %5480 = vmatmul.mubr.msk.bf16.gmra.mxu1 %vm777_vm0, %v6467_v24  ;;  %5580 = vmatmul.mubr.msk.bf16.gmra.mxu0 %vm777_vm0, %v6429_v44 }
 0x1ee   : > { %5483 = vmatprep.mubr.msk.bf16.mxu1 %vm777_vm0, %v6494_v2  ;;  %5583 = vmatprep.mubr.msk.bf16.mxu0 %vm777_vm0, %v6431_v49  ;;  %v3132_v49 = vpack.c.bf16 %v3116_v16, %v3115_v11 }
 0x1f5   : > { %5484 = vmatmul.mubr.msk.bf16.gmra.mxu1 %vm777_vm0, %v6498_v45  ;;  %5584 = vmatmul.mubr.msk.bf16.gmra.mxu0 %vm777_vm0, %v6465_v21 }
 0x1f6   : > { %5487 = vmatprep.mubr.msk.bf16.mxu1 %vm777_vm0, %v6510_v1  ;;  %5587 = vmatprep.mubr.msk.bf16.mxu0 %vm777_vm0, %v6467_v24 }
 0x1fd   : > { %5488 = vmatmul.mubr.msk.bf16.gmra.mxu1 %vm777_vm0, %v2021_v14  ;;  %5588 = vmatmul.mubr.msk.bf16.gmra.mxu0 %vm777_vm0, %v6494_v2 }
 0x1fe   : > { %5531 = vmatprep.mubr.msk.bf16.mxu1 %vm777_vm0, %v6342_v34  ;;  %5591 = vmatprep.mubr.msk.bf16.mxu0 %vm777_vm0, %v6498_v45 }
 0x205   : > { %v5353_v43 = vpop.f32.mrf.mxu0  ;;  %5532 = vmatmul.mubr.msk.bf16.vlgmr.msra.gmra.mxu1 %vm777_vm0, %v6362_v48  ;;  %5592 = vmatmul.mubr.msk.bf16.gmra.mxu0 %vm777_vm0, %v6510_v1 }
 0x206   : > { %1204 = vst.msk [vmem:[#allocation3 + $0x10] sm:$0xff] %vm777_vm0, %v5353_v43  ;;  %5600 = vmatpush3.bf16.msra.mxu1 %v5797_v53  ;;  %5535 = vmatprep.mubr.msk.bf16.mxu1 %vm777_vm0, %v6382_v8  ;;  %v2745_v53 = vld [vmem:[#allocation2 + $0x348] sm:$0xff]  ;;  %v3854_v43 = vld [vmem:[#allocation2 + $0x338] sm:$0xff] }
 0x207   : > { %5595 = vmatprep.mubr.msk.bf16.mxu0 %vm777_vm0, %v2021_v14  ;;  %v1075_v34 = vpop.f32.mrf.mxu0  ;;  %5601 = vmatprep.subr.bf16.mxu1 %v5800_v39  ;;  %v2761_v27 = vpack.c.bf16 %v2745_v53, %v2744_v52  ;;  %v3459_v14 = vld [vmem:[#allocation2 + $0x158] sm:$0xff] }
 0x208   : > { %1202 = vst.msk [vmem:[#allocation3] sm:$0xff] %vm777_vm0, %v1075_v34 }
 0x209   : > { %v5354_v44 = vpop.f32.mrf.mxu0 }
 0x20a   : > { %1205 = vst.msk [vmem:[#allocation3 + $0x18] sm:$0xff] %vm777_vm0, %v5354_v44  ;;  %5602 = vmatpush3.bf16.msra.mxu1 %v5800_v39  ;;  %v3853_v39 = vld [vmem:[#allocation2 + $0x330] sm:$0xff] }
 0x20b   : > { %v1078_v21 = vpop.f32.mrf.mxu0 }
 0x20c   : > { %1203 = vst.msk [vmem:[#allocation3 + $0x8] sm:$0xff] %vm777_vm0, %v1078_v21 }
 0x20d   : > { %v5357_v24 = vpop.f32.mrf.mxu0  ;;  %5536 = vmatmul.mubr.msk.bf16.gmra.mxu1 %vm777_vm0, %v6396_v17  ;;  %5596 = vmatmul.mubr.msk.bf16.gmra.mxu0 %vm777_vm0, %v3132_v49  ;;  %v3872_v49 = vpack.c.bf16 %v3854_v43, %v3853_v39  ;;  %v1510_v21 = vld [vmem:[#allocation3 + $0x10] sm:$0xff]  ;;  %v3467_v43 = vld [vmem:[#allocation2 + $0x198] sm:$0xff] }
 0x20e   : > { %1208 = vst.msk [vmem:[#allocation3 + $0x30] sm:$0xff] %vm777_vm0, %v5357_v24  ;;  %5539 = vmatprep.mubr.msk.bf16.mxu1 %vm777_vm0, %v6422_v38  ;;  %5639 = vmatprep.mubr.msk.bf16.mxu0 %vm777_vm0, %v6362_v48 }
 0x20f   : > { %v1091_v2 = vpop.f32.mrf.mxu0 }
 0x210   : > { %1206 = vst.msk [vmem:[#allocation3 + $0x20] sm:$0xff] %vm777_vm0, %v1091_v2 }
 0x211   : > { %v5358_v45 = vpop.f32.mrf.mxu0 }
 0x212   : > { %1209 = vst.msk [vmem:[#allocation3 + $0x38] sm:$0xff] %vm777_vm0, %v5358_v45  ;;  %v3857_v45 = vld [vmem:[#allocation2 + $0x350] sm:$0xff] }
 0x213   : > { %v1094_v1 = vpop.f32.mrf.mxu0 }
 0x214   : > { %1207 = vst.msk [vmem:[#allocation3 + $0x28] sm:$0xff] %vm777_vm0, %v1094_v1  ;;  %v3858_v1 = vld [vmem:[#allocation2 + $0x358] sm:$0xff] }
 0x215   : > { %v5361_v63 = vpop.f32.mrf.mxu1  ;;  %v6665_v57 = vpop.f32.mrf.mxu0  ;;  %5540 = vmatmul.mubr.msk.bf16.gmra.mxu1 %vm777_vm0, %v6433_v51  ;;  %5640 = vmatmul.mubr.msk.bf16.vlgmr.msra.gmra.mxu0 %vm777_vm0, %v6382_v8  ;;  %v1514_v53 = vld [vmem:[#allocation3 + $0x30] sm:$0xff] }
 0x216   : > { %1212 = vst.msk [vmem:[#allocation3 + $0x50] sm:$0xff] %vm777_vm0, %v5361_v63  ;;  %5543 = vmatprep.mubr.msk.bf16.mxu1 %vm777_vm0, %v6458_v15  ;;  %5643 = vmatprep.mubr.msk.bf16.mxu0 %vm777_vm0, %v6396_v17 }
 0x217   : > { %v1107_v48 = vpop.f32.mrf.mxu1  ;;  %v6676_v58 = vpop.f32.mrf.mxu0 }
 0x218   : > { %1210 = vst.msk [vmem:[#allocation3 + $0x40] sm:$0xff] %vm777_vm0, %v1107_v48  ;;  %v1508_v48 = vld [vmem:[#allocation3] sm:$0xff] }
 0x219   : > { %v5362_v59 = vpop.f32.mrf.mxu1  ;;  %v6679_v61 = vpop.f32.mrf.mxu0 }
 0x21a   : > { %1213 = vst.msk [vmem:[#allocation3 + $0x58] sm:$0xff] %vm777_vm0, %v5362_v59 }
 0x21b   : > { %v1110_v4 = vpop.f32.mrf.mxu1  ;;  %v6682_v8 = vpop.f32.mrf.mxu0 }
 0x21c   : > { %1211 = vst.msk [vmem:[#allocation3 + $0x48] sm:$0xff] %vm777_vm0, %v1110_v4 }
 0x21d   : > { %v5365_v13 = vpop.f32.mrf.mxu1  ;;  %v6685_v5 = vpop.f32.mrf.mxu0  ;;  %5544 = vmatmul.mubr.msk.bf16.gmra.mxu1 %vm777_vm0, %v6469_v25  ;;  %5644 = vmatmul.mubr.msk.bf16.gmra.mxu0 %vm777_vm0, %v6422_v38 }
 0x21e   : > { %1216 = vst.msk [vmem:[#allocation3 + $0x70] sm:$0xff] %vm777_vm0, %v5365_v13  ;;  %5547 = vmatprep.mubr.msk.bf16.mxu1 %vm777_vm0, %v6496_v41  ;;  %5647 = vmatprep.mubr.msk.bf16.mxu0 %vm777_vm0, %v6433_v51  ;;  %v3463_v13 = vld [vmem:[#allocation2 + $0x178] sm:$0xff] }
 0x21f   : > { %v1123_v17 = vpop.f32.mrf.mxu1  ;;  %v6696_v7 = vpop.f32.mrf.mxu0 }
 0x220   : > { %1214 = vst.msk [vmem:[#allocation3 + $0x60] sm:$0xff] %vm777_vm0, %v1123_v17 }
 0x221   : > { %v5366_v60 = vpop.f32.mrf.mxu1  ;;  %v6699_v9 = vpop.f32.mrf.mxu0 }
 0x222   : > { %1217 = vst.msk [vmem:[#allocation3 + $0x78] sm:$0xff] %vm777_vm0, %v5366_v60  ;;  %v1511_v60 = vld [vmem:[#allocation3 + $0x18] sm:$0xff] }
 0x223   : > { %v1126_v10 = vpop.f32.mrf.mxu1  ;;  %v6702_v38 = vpop.f32.mrf.mxu0 }
 0x224   : > { %1215 = vst.msk [vmem:[#allocation3 + $0x68] sm:$0xff] %vm777_vm0, %v1126_v10 }
 0x225   : > { %v5369_v12 = vpop.f32.mrf.mxu1  ;;  %v6705_v18 = vpop.f32.mrf.mxu0  ;;  %5548 = vmatmul.mubr.msk.bf16.gmra.mxu1 %vm777_vm0, %v6500_v47  ;;  %5648 = vmatmul.mubr.msk.bf16.gmra.mxu0 %vm777_vm0, %v6458_v15 }
 0x226   : > { %1220 = vst.msk [vmem:[#allocation3 + $0x90] sm:$0xff] %vm777_vm0, %v5369_v12  ;;  %5551 = vmatprep.mubr.msk.bf16.mxu1 %vm777_vm0, %v6512_v3  ;;  %5651 = vmatprep.mubr.msk.bf16.mxu0 %vm777_vm0, %v6469_v25  ;;  %v3465_v12 = vld [vmem:[#allocation2 + $0x188] sm:$0xff] }
 0x227   : > { %v1139_v51 = vpop.f32.mrf.mxu1  ;;  %v6716_v20 = vpop.f32.mrf.mxu0 }
 0x228   : > { %1218 = vst.msk [vmem:[#allocation3 + $0x80] sm:$0xff] %vm777_vm0, %v1139_v51  ;;  %v3874_v51 = vpack.c.bf16 %v3858_v1, %v3857_v45 }
 0x229   : > { %v5370_v22 = vpop.f32.mrf.mxu1  ;;  %v6719_v28 = vpop.f32.mrf.mxu0 }
 0x22a   : > { %1221 = vst.msk [vmem:[#allocation3 + $0x98] sm:$0xff] %vm777_vm0, %v5370_v22  ;;  %v3462_v22 = vld [vmem:[#allocation2 + $0x170] sm:$0xff] }
 0x22b   : > { %v1142_v29 = vpop.f32.mrf.mxu1  ;;  %v6722_v15 = vpop.f32.mrf.mxu0 }
 0x22c   : > { %1219 = vst.msk [vmem:[#allocation3 + $0x88] sm:$0xff] %vm777_vm0, %v1142_v29 }
 0x22d   : > { %v5373_v0 = vpop.f32.mrf.mxu1  ;;  %v6725_v30 = vpop.f32.mrf.mxu0  ;;  %5552 = vmatmul.mubr.msk.bf16.gmra.mxu1 %vm777_vm0, %v6514_v62  ;;  %5652 = vmatmul.mubr.msk.bf16.gmra.mxu0 %vm777_vm0, %v6496_v41 }
 0x22e   : > { %1224 = vst.msk [vmem:[#allocation3 + $0xb0] sm:$0xff] %vm777_vm0, %v5373_v0  ;;  %5555 = vmatprep.mubr.msk.bf16.mxu1 %vm777_vm0, %v6523_v19  ;;  %5655 = vmatprep.mubr.msk.bf16.mxu0 %vm777_vm0, %v6500_v47  ;;  %v1509_v0 = vld [vmem:[#allocation3 + $0x8] sm:$0xff] }
 0x22f   : > { %v1155_v25 = vpop.f32.mrf.mxu1  ;;  %v6736_v31 = vpop.f32.mrf.mxu0 }
 0x230   : > { %1222 = vst.msk [vmem:[#allocation3 + $0xa0] sm:$0xff] %vm777_vm0, %v1155_v25 }
 0x231   : > { %v5374_v32 = vpop.f32.mrf.mxu1  ;;  %v6739_v35 = vpop.f32.mrf.mxu0 }
 0x232   : > { %1225 = vst.msk [vmem:[#allocation3 + $0xb8] sm:$0xff] %vm777_vm0, %v5374_v32  ;;  %v3491_v32 = vpack.c.bf16 %v3463_v13, %v3462_v22 }
 0x233   : > { %v1158_v36 = vpop.f32.mrf.mxu1  ;;  %v6742_v41 = vpop.f32.mrf.mxu0 }
 0x234   : > { %1223 = vst.msk [vmem:[#allocation3 + $0xa8] sm:$0xff] %vm777_vm0, %v1158_v36  ;;  %v3464_v36 = vld [vmem:[#allocation2 + $0x180] sm:$0xff] }
 0x235   : > { %v5377_v37 = vpop.f32.mrf.mxu1  ;;  %v6745_v40 = vpop.f32.mrf.mxu0  ;;  %5556 = vmatmul.mubr.msk.bf16.gmra.mxu1 %vm777_vm0, %v6530_v26  ;;  %5656 = vmatmul.mubr.msk.bf16.gmra.mxu0 %vm777_vm0, %v6512_v3 }
 0x236   : > { %1228 = vst.msk [vmem:[#allocation3 + $0xd0] sm:$0xff] %vm777_vm0, %v5377_v37  ;;  %5559 = vmatprep.mubr.msk.bf16.mxu1 %vm777_vm0, %v6539_v33  ;;  %5659 = vmatprep.mubr.msk.bf16.mxu0 %vm777_vm0, %v6514_v62 }
 0x237   : > { %v1171_v47 = vpop.f32.mrf.mxu1  ;;  %v6756_v42 = vpop.f32.mrf.mxu0 }
 0x238   : > { %1226 = vst.msk [vmem:[#allocation3 + $0xc0] sm:$0xff] %vm777_vm0, %v1171_v47  ;;  %v3492_v47 = vpack.c.bf16 %v3465_v12, %v3464_v36  ;;  %v1516_v36 = vld [vmem:[#allocation3 + $0x40] sm:$0xff] }
 0x239   : > { %v5378_v54 = vpop.f32.mrf.mxu1  ;;  %v6759_v55 = vpop.f32.mrf.mxu0 }
 0x23a   : > { %1229 = vst.msk [vmem:[#allocation3 + $0xd8] sm:$0xff] %vm777_vm0, %v5378_v54 }
 0x23b   : > { %v1174_v3 = vpop.f32.mrf.mxu1  ;;  %v6762_v46 = vpop.f32.mrf.mxu0 }
 0x23c   : > { %1227 = vst.msk [vmem:[#allocation3 + $0xc8] sm:$0xff] %vm777_vm0, %v1174_v3 }
 0x23d   : > { %v5381_v33 = vpop.f32.mrf.mxu1  ;;  %v6765_v62 = vpop.f32.mrf.mxu0  ;;  %5560 = vmatmul.mubr.msk.bf16.gmra.mxu1 %vm777_vm0, %v2761_v27  ;;  %5660 = vmatmul.mubr.msk.bf16.gmra.mxu0 %vm777_vm0, %v6523_v19  ;;  %v3458_v19 = vld [vmem:[#allocation2 + $0x150] sm:$0xff] }
 0x23e   : > { %1232 = vst.msk [vmem:[#allocation3 + $0xf0] sm:$0xff] %vm777_vm0, %v5381_v33  ;;  %5603 = vmatprep.mubr.msk.bf16.mxu1 %vm777_vm0, %v6525_v23  ;;  %5663 = vmatprep.mubr.msk.bf16.mxu0 %vm777_vm0, %v6530_v26  ;;  %v3489_v23 = vpack.c.bf16 %v3459_v14, %v3458_v19  ;;  %v1512_v33 = vld [vmem:[#allocation3 + $0x20] sm:$0xff] }
 0x23f   : > { %v1187_v50 = vpop.f32.mrf.mxu1  ;;  %v6775_v6 = vpop.f32.mrf.mxu0 }
 0x240   : > { %1230 = vst.msk [vmem:[#allocation3 + $0xe0] sm:$0xff] %vm777_vm0, %v1187_v50 }
 0x241   : > { %v5382_v11 = vpop.f32.mrf.mxu1  ;;  %v6778_v16 = vpop.f32.mrf.mxu0 }
 0x242   : > { %1233 = vst.msk [vmem:[#allocation3 + $0xf8] sm:$0xff] %vm777_vm0, %v5382_v11 }
 0x243   : > { %v1190_v34 = vpop.f32.mrf.mxu1  ;;  %v6781_v44 = vpop.f32.mrf.mxu0 }
 0x244   : > { %1231 = vst.msk [vmem:[#allocation3 + $0xe8] sm:$0xff] %vm777_vm0, %v1190_v34  ;;  %v1515_v34 = vld [vmem:[#allocation3 + $0x38] sm:$0xff] }
 0x245   : > { %v5389_v26 = vpop.f32.mrf.mxu1  ;;  %v6784_v24 = vpop.f32.mrf.mxu0  ;;  %5604 = vmatmul.mubr.msk.bf16.vlgmr.msra.gmra.mxu1 %vm777_vm0, %v3489_v23  ;;  %5664 = vmatmul.mubr.msk.bf16.gmra.mxu0 %vm777_vm0, %v3872_v49  ;;  %v3469_v49 = vld [vmem:[#allocation2 + $0x1a8] sm:$0xff] }
 0x246   : > { %v1542_v2 = vadd.f32 %v5389_v26, %v1510_v21  ;;  %5607 = vmatprep.mubr.msk.bf16.mxu1 %vm777_vm0, %v6542_v56  ;;  %5667 = vmatprep.mubr.msk.bf16.mxu0 %vm777_vm0, %v2761_v27 }
 0x247   : > { %v1381_v63 = vpop.f32.mrf.mxu1  ;;  %v6791_v59 = vpop.f32.mrf.mxu0 }
 0x248   : > { %1574 = vst.msk [vmem:[#allocation3 + $0x10] sm:$0xff] %vm777_vm0, %v1542_v2  ;;  %v1540_v4 = vadd.f32 %v1508_v48, %v1381_v63  ;;  %v3466_v2 = vld [vmem:[#allocation2 + $0x190] sm:$0xff]  ;;  %v1513_v63 = vld [vmem:[#allocation3 + $0x28] sm:$0xff] }
 0x249   : > { %v5390_v17 = vpop.f32.mrf.mxu1  ;;  %v6794_v10 = vpop.f32.mrf.mxu0 }
 0x24a   : > { %1572 = vst.msk [vmem:[#allocation3] sm:$0xff] %vm777_vm0, %v1540_v4  ;;  %v1543_v56 = vadd.f32 %v5390_v17, %v1511_v60  ;;  %v3493_v4 = vpack.c.bf16 %v3467_v43, %v3466_v2  ;;  %v3470_v43 = vld [vmem:[#allocation2 + $0x1b0] sm:$0xff] }
 0x24b   : > { %v1384_v29 = vpop.f32.mrf.mxu1  ;;  %v6797_v25 = vpop.f32.mrf.mxu0 }
 0x24c   : > { %1575 = vst.msk [vmem:[#allocation3 + $0x18] sm:$0xff] %vm777_vm0, %v1543_v56  ;;  %v1541_v37 = vadd.f32 %v1509_v0, %v1384_v29  ;;  %v1518_v56 = vld [vmem:[#allocation3 + $0x50] sm:$0xff] }
 0x24d   : > { %v5393_v52 = vpop.f32.mrf.mxu1  ;;  %v6800_v54 = vpop.f32.mrf.mxu0  ;;  %5608 = vmatmul.mubr.msk.bf16.gmra.mxu1 %vm777_vm0, %v3491_v32  ;;  %5668 = vmatmul.mubr.msk.bf16.gmra.mxu0 %vm777_vm0, %v3874_v51 }
 0x24e   : > { %1573 = vst.msk [vmem:[#allocation3 + $0x8] sm:$0xff] %vm777_vm0, %v1541_v37  ;;  %v1546_v3 = vadd.f32 %v5393_v52, %v1514_v53  ;;  %5611 = vmatprep.mubr.msk.bf16.mxu1 %vm777_vm0, %v3492_v47  ;;  %v3471_v52 = vld [vmem:[#allocation2 + $0x1b8] sm:$0xff] }
 0x24f   : > { %v1397_v27 = vpop.f32.mrf.mxu1  ;;  %v6806_v50 = vpop.f32.mrf.mxu0  ;;  %v1880_v14 = vld [vmem:[#allocation3 + $0x10] sm:$0xff] }
 0x250   : > { %1578 = vst.msk [vmem:[#allocation3 + $0x30] sm:$0xff] %vm777_vm0, %v1546_v3  ;;  %v1544_v39 = vadd.f32 %v1512_v33, %v1397_v27  ;;  %v1912_v11 = vadd.f32 %v6665_v57, %v1880_v14  ;;  %v3468_v57 = vld [vmem:[#allocation2 + $0x1a0] sm:$0xff]  ;;  %v1519_v27 = vld [vmem:[#allocation3 + $0x58] sm:$0xff]  ;;  %v3473_v14 = vld [vmem:[#allocation2 + $0x1c8] sm:$0xff] }
 0x251   : > { %v5394_v19 = vpop.f32.mrf.mxu1  ;;  %v6810_v23 = vpop.f32.mrf.mxu0  ;;  %v1878_v26 = vld [vmem:[#allocation3] sm:$0xff]  ;;  %v3494_v60 = vpack.c.bf16 %v3469_v49, %v3468_v57 }
 0x252   : > { %1576 = vst.msk [vmem:[#allocation3 + $0x20] sm:$0xff] %vm777_vm0, %v1544_v39  ;;  %v1547_v21 = vadd.f32 %v5394_v19, %v1515_v34  ;;  %1944 = vst.msk [vmem:[#allocation3 + $0x10] sm:$0xff] %vm777_vm0, %v1912_v11  ;;  %v1910_v45 = vadd.f32 %v1878_v26, %v6676_v58  ;;  %v1517_v34 = vld [vmem:[#allocation3 + $0x48] sm:$0xff]  ;;  %v3495_v26 = vpack.c.bf16 %v3471_v52, %v3470_v43  ;;  %v3474_v52 = vld [vmem:[#allocation2 + $0x1d0] sm:$0xff] }
 0x253   : > { %v1400_v1 = vpop.f32.mrf.mxu1  ;;  %v6815_v48 = vpop.f32.mrf.mxu0  ;;  %v1881_v13 = vld [vmem:[#allocation3 + $0x18] sm:$0xff] }
 0x254   : > { %1579 = vst.msk [vmem:[#allocation3 + $0x38] sm:$0xff] %vm777_vm0, %v1547_v21  ;;  %v1545_v17 = vadd.f32 %v1513_v63, %v1400_v1  ;;  %1942 = vst.msk [vmem:[#allocation3] sm:$0xff] %vm777_vm0, %v1910_v45  ;;  %v1913_v12 = vadd.f32 %v6679_v61, %v1881_v13 }
 0x255   : > { %v5397_v51 = vpop.f32.mrf.mxu1  ;;  %v6820_v22 = vpop.f32.mrf.mxu0  ;;  %5612 = vmatmul.mubr.msk.bf16.gmra.mxu1 %vm777_vm0, %v3493_v4  ;;  %v1879_v58 = vld [vmem:[#allocation3 + $0x8] sm:$0xff]  ;;  %v1522_v4 = vld [vmem:[#allocation3 + $0x70] sm:$0xff] }
 0x256   : > { %1577 = vst.msk [vmem:[#allocation3 + $0x28] sm:$0xff] %vm777_vm0, %v1545_v17  ;;  %v1550_v29 = vadd.f32 %v5397_v51, %v1518_v56  ;;  %5615 = vmatprep.mubr.msk.bf16.mxu1 %vm777_vm0, %v3494_v60  ;;  %1945 = vst.msk [vmem:[#allocation3 + $0x18] sm:$0xff] %vm777_vm0, %v1913_v12  ;;  %v1911_v0 = vadd.f32 %v1879_v58, %v6682_v8  ;;  %v1520_v12 = vld [vmem:[#allocation3 + $0x60] sm:$0xff]  ;;  %v3475_v58 = vld [vmem:[#allocation2 + $0x1d8] sm:$0xff] }
 0x257   : > { %v1413_v32 = vpop.f32.mrf.mxu1  ;;  %v6827_v37 = vpop.f32.mrf.mxu0  ;;  %v1884_v61 = vld [vmem:[#allocation3 + $0x30] sm:$0xff] }
 0x258   : > { %1582 = vst.msk [vmem:[#allocation3 + $0x50] sm:$0xff] %vm777_vm0, %v1550_v29  ;;  %v1548_v47 = vadd.f32 %v1516_v36, %v1413_v32  ;;  %1943 = vst.msk [vmem:[#allocation3 + $0x8] sm:$0xff] %vm777_vm0, %v1911_v0  ;;  %v1916_v53 = vadd.f32 %v6685_v5, %v1884_v61  ;;  %v3472_v5 = vld [vmem:[#allocation2 + $0x1c0] sm:$0xff]  ;;  %v1523_v32 = vld [vmem:[#allocation3 + $0x78] sm:$0xff] }
 0x259   : > { %v5398_v3 = vpop.f32.mrf.mxu1  ;;  %v6832_v33 = vpop.f32.mrf.mxu0  ;;  %v1882_v39 = vld [vmem:[#allocation3 + $0x20] sm:$0xff]  ;;  %v3496_v45 = vpack.c.bf16 %v3473_v14, %v3472_v5  ;;  %v3477_v61 = vld [vmem:[#allocation2 + $0x1e8] sm:$0xff] }
 0x25a   : > { %1580 = vst.msk [vmem:[#allocation3 + $0x40] sm:$0xff] %vm777_vm0, %v1548_v47  ;;  %v1551_v8 = vadd.f32 %v5398_v3, %v1519_v27  ;;  %1948 = vst.msk [vmem:[#allocation3 + $0x30] sm:$0xff] %vm777_vm0, %v1916_v53  ;;  %v1914_v11 = vadd.f32 %v1882_v39, %v6696_v7  ;;  %v1521_v27 = vld [vmem:[#allocation3 + $0x68] sm:$0xff]  ;;  %v3497_v39 = vpack.c.bf16 %v3475_v58, %v3474_v52  ;;  %v3478_v58 = vld [vmem:[#allocation2 + $0x1f0] sm:$0xff] }
 0x25b   : > { %v1416_v19 = vpop.f32.mrf.mxu1  ;;  %v6837_v49 = vpop.f32.mrf.mxu0  ;;  %v1885_v21 = vld [vmem:[#allocation3 + $0x38] sm:$0xff] }
 0x25c   : > { %1583 = vst.msk [vmem:[#allocation3 + $0x58] sm:$0xff] %vm777_vm0, %v1551_v8  ;;  %v1549_v2 = vadd.f32 %v1517_v34, %v1416_v19  ;;  %1946 = vst.msk [vmem:[#allocation3 + $0x20] sm:$0xff] %vm777_vm0, %v1914_v11  ;;  %v1917_v1 = vadd.f32 %v6699_v9, %v1885_v21 }
 0x25d   : > { %v5401_v63 = vpop.f32.mrf.mxu1  ;;  %v6842_v57 = vpop.f32.mrf.mxu0  ;;  %5616 = vmatmul.mubr.msk.bf16.gmra.mxu1 %vm777_vm0, %v3495_v26  ;;  %v1883_v7 = vld [vmem:[#allocation3 + $0x28] sm:$0xff]  ;;  %v1526_v26 = vld [vmem:[#allocation3 + $0x90] sm:$0xff] }
 0x25e   : > { %1581 = vst.msk [vmem:[#allocation3 + $0x48] sm:$0xff] %vm777_vm0, %v1549_v2  ;;  %v1554_v13 = vadd.f32 %v5401_v63, %v1522_v4  ;;  %5619 = vmatprep.mubr.msk.bf16.mxu1 %vm777_vm0, %v3496_v45  ;;  %1949 = vst.msk [vmem:[#allocation3 + $0x38] sm:$0xff] %vm777_vm0, %v1917_v1  ;;  %v1915_v17 = vadd.f32 %v1883_v7, %v6702_v38  ;;  %v1524_v1 = vld [vmem:[#allocation3 + $0x80] sm:$0xff]  ;;  %v3479_v7 = vld [vmem:[#allocation2 + $0x1f8] sm:$0xff] }
 0x25f   : > { %v1429_v60 = vpop.f32.mrf.mxu1  ;;  %v6849_v51 = vpop.f32.mrf.mxu0  ;;  %v1888_v9 = vld [vmem:[#allocation3 + $0x50] sm:$0xff] }
 0x260   : > { %1586 = vst.msk [vmem:[#allocation3 + $0x70] sm:$0xff] %vm777_vm0, %v1554_v13  ;;  %v1552_v56 = vadd.f32 %v1520_v12, %v1429_v60  ;;  %1947 = vst.msk [vmem:[#allocation3 + $0x28] sm:$0xff] %vm777_vm0, %v1915_v17  ;;  %v1920_v29 = vadd.f32 %v6705_v18, %v1888_v9  ;;  %v3476_v18 = vld [vmem:[#allocation2 + $0x1e0] sm:$0xff]  ;;  %v1527_v60 = vld [vmem:[#allocation3 + $0x98] sm:$0xff] }
 0x261   : > { %v5402_v0 = vpop.f32.mrf.mxu1  ;;  %v6854_v36 = vpop.f32.mrf.mxu0  ;;  %v1886_v47 = vld [vmem:[#allocation3 + $0x40] sm:$0xff]  ;;  %v3498_v11 = vpack.c.bf16 %v3477_v61, %v3476_v18  ;;  %v3481_v9 = vld [vmem:[#allocation2 + $0x208] sm:$0xff] }
 0x262   : > { %1584 = vst.msk [vmem:[#allocation3 + $0x60] sm:$0xff] %vm777_vm0, %v1552_v56  ;;  %v1555_v38 = vadd.f32 %v5402_v0, %v1523_v32  ;;  %1952 = vst.msk [vmem:[#allocation3 + $0x50] sm:$0xff] %vm777_vm0, %v1920_v29  ;;  %v1918_v53 = vadd.f32 %v1886_v47, %v6716_v20  ;;  %v5801_v0 = vld [vmem:[%s7672_s7 + $0x8] sm:$0xff]   ;;  %v3499_v47 = vpack.c.bf16 %v3479_v7, %v3478_v58 }
 0x263   : > { %v1432_v3 = vpop.f32.mrf.mxu1  ;;  %v6859_v14 = vpop.f32.mrf.mxu0  ;;  %v1889_v8 = vld [vmem:[#allocation3 + $0x58] sm:$0xff]  ;;  %5671 = vmatprep.subr.bf16.mxu1 %v5801_v0 }
 0x264   : > { %1587 = vst.msk [vmem:[#allocation3 + $0x78] sm:$0xff] %vm777_vm0, %v1555_v38  ;;  %v1553_v43 = vadd.f32 %v1521_v27, %v1432_v3  ;;  %1950 = vst.msk [vmem:[#allocation3 + $0x40] sm:$0xff] %vm777_vm0, %v1918_v53  ;;  %v1921_v19 = vadd.f32 %v6719_v28, %v1889_v8  ;;  %v3480_v38 = vld [vmem:[#allocation2 + $0x200] sm:$0xff]  ;;  %5672 = vmatpush3.bf16.msra.mxu1 %v5801_v0 }
 0x265   : > { %v5405_v34 = vpop.f32.mrf.mxu1  ;;  %v6864_v5 = vpop.f32.mrf.mxu0  ;;  %5620 = vmatmul.mubr.msk.bf16.gmra.mxu1 %vm777_vm0, %v3497_v39  ;;  %v1887_v20 = vld [vmem:[#allocation3 + $0x48] sm:$0xff]  ;;  %v3500_v3 = vpack.c.bf16 %v3481_v9, %v3480_v38  ;;  %v1530_v39 = vld [vmem:[#allocation3 + $0xb0] sm:$0xff] }
 0x266   : > { %1585 = vst.msk [vmem:[#allocation3 + $0x68] sm:$0xff] %vm777_vm0, %v1553_v43  ;;  %v1558_v21 = vadd.f32 %v5405_v34, %v1526_v26  ;;  %5623 = vmatprep.mubr.msk.bf16.mxu1 %vm777_vm0, %v3498_v11  ;;  %1953 = vst.msk [vmem:[#allocation3 + $0x58] sm:$0xff] %vm777_vm0, %v1921_v19  ;;  %v1919_v2 = vadd.f32 %v1887_v20, %v6722_v15  ;;  %v1529_v9 = vld [vmem:[#allocation3 + $0xa8] sm:$0xff] }
 0x267   : > { %v1445_v45 = vpop.f32.mrf.mxu1  ;;  %v6871_v63 = vpop.f32.mrf.mxu0  ;;  %v1892_v28 = vld [vmem:[#allocation3 + $0x70] sm:$0xff] }
 0x268   : > { %1590 = vst.msk [vmem:[#allocation3 + $0x90] sm:$0xff] %vm777_vm0, %v1558_v21  ;;  %v1556_v4 = vadd.f32 %v1524_v1, %v1445_v45  ;;  %1951 = vst.msk [vmem:[#allocation3 + $0x48] sm:$0xff] %vm777_vm0, %v1919_v2  ;;  %v1924_v13 = vadd.f32 %v6725_v30, %v1892_v28  ;;  %v1525_v30 = vld [vmem:[#allocation3 + $0x88] sm:$0xff]  ;;  %v3483_v21 = vld [vmem:[#allocation2 + $0x218] sm:$0xff] }
 0x269   : > { %v5406_v17 = vpop.f32.mrf.mxu1  ;;  %v6876_v12 = vpop.f32.mrf.mxu0  ;;  %v1890_v56 = vld [vmem:[#allocation3 + $0x60] sm:$0xff]  ;;  %v1531_v1 = vld [vmem:[#allocation3 + $0xb8] sm:$0xff] }
 0x26a   : > { %1588 = vst.msk [vmem:[#allocation3 + $0x80] sm:$0xff] %vm777_vm0, %v1556_v4  ;;  %v1559_v15 = vadd.f32 %v5406_v17, %v1527_v60  ;;  %1956 = vst.msk [vmem:[#allocation3 + $0x70] sm:$0xff] %vm777_vm0, %v1924_v13  ;;  %v1922_v29 = vadd.f32 %v1890_v56, %v6736_v31  ;;  %v3485_v4 = vld [vmem:[#allocation2 + $0x228] sm:$0xff]  ;;  %v3482_v13 = vld [vmem:[#allocation2 + $0x210] sm:$0xff] }
 0x26b   : > { %v1448_v32 = vpop.f32.mrf.mxu1  ;;  %v6884_v61 = vpop.f32.mrf.mxu0  ;;  %v1893_v52 = vld [vmem:[#allocation3 + $0x78] sm:$0xff] }
 0x26c   : > { %1591 = vst.msk [vmem:[#allocation3 + $0x98] sm:$0xff] %vm777_vm0, %v1559_v15  ;;  %v1557_v53 = vadd.f32 %v1525_v30, %v1448_v32  ;;  %1954 = vst.msk [vmem:[#allocation3 + $0x60] sm:$0xff] %vm777_vm0, %v1922_v29  ;;  %v1925_v27 = vadd.f32 %v6739_v35, %v1893_v52  ;;  %v1528_v35 = vld [vmem:[#allocation3 + $0xa0] sm:$0xff]  ;;  %v3501_v15 = vpack.c.bf16 %v3483_v21, %v3482_v13 }
 0x26d   : > { %v5409_v31 = vpop.f32.mrf.mxu1  ;;  %v6889_v18 = vpop.f32.mrf.mxu0  ;;  %5624 = vmatmul.mubr.msk.bf16.gmra.mxu1 %vm777_vm0, %v3499_v47  ;;  %v1891_v8 = vld [vmem:[#allocation3 + $0x68] sm:$0xff]  ;;  %v1534_v47 = vld [vmem:[#allocation3 + $0xd0] sm:$0xff] }
 0x26e   : > { %1589 = vst.msk [vmem:[#allocation3 + $0x88] sm:$0xff] %vm777_vm0, %v1557_v53  ;;  %v1562_v43 = vadd.f32 %v5409_v31, %v1530_v39  ;;  %5627 = vmatprep.mubr.msk.bf16.mxu1 %vm777_vm0, %v3500_v3  ;;  %1957 = vst.msk [vmem:[#allocation3 + $0x78] sm:$0xff] %vm777_vm0, %v1925_v27  ;;  %v1923_v11 = vadd.f32 %v1891_v8, %v6742_v41  ;;  %v3486_v53 = vld [vmem:[#allocation2 + $0x230] sm:$0xff]  ;;  %v3487_v3 = vld [vmem:[#allocation2 + $0x238] sm:$0xff] }
 0x26f   : > { %v1461_v19 = vpop.f32.mrf.mxu1  ;;  %v6896_v34 = vpop.f32.mrf.mxu0  ;;  %v1896_v26 = vld [vmem:[#allocation3 + $0x90] sm:$0xff] }
 0x270   : > { %1594 = vst.msk [vmem:[#allocation3 + $0xb0] sm:$0xff] %vm777_vm0, %v1562_v43  ;;  %v1560_v20 = vadd.f32 %v1528_v35, %v1461_v19  ;;  %1955 = vst.msk [vmem:[#allocation3 + $0x68] sm:$0xff] %vm777_vm0, %v1923_v11  ;;  %v1928_v2 = vadd.f32 %v6745_v40, %v1896_v26  ;;  %v3484_v40 = vld [vmem:[#allocation2 + $0x220] sm:$0xff]  ;;  %v1535_v35 = vld [vmem:[#allocation3 + $0xd8] sm:$0xff] }
 0x271   : > { %v5410_v45 = vpop.f32.mrf.mxu1  ;;  %v6901_v28 = vpop.f32.mrf.mxu0  ;;  %v1894_v41 = vld [vmem:[#allocation3 + $0x80] sm:$0xff]  ;;  %v3502_v0 = vpack.c.bf16 %v3485_v4, %v3484_v40 }
 0x272   : > { %1592 = vst.msk [vmem:[#allocation3 + $0xa0] sm:$0xff] %vm777_vm0, %v1560_v20  ;;  %v1563_v7 = vadd.f32 %v5410_v45, %v1531_v1  ;;  %1960 = vst.msk [vmem:[#allocation3 + $0x90] sm:$0xff] %vm777_vm0, %v1928_v2  ;;  %v1926_v17 = vadd.f32 %v1894_v41, %v6756_v42  ;;  %v3503_v20 = vpack.c.bf16 %v3487_v3, %v3486_v53  ;;  %v1533_v1 = vld [vmem:[#allocation3 + $0xc8] sm:$0xff] }
 0x273   : > { %v1464_v60 = vpop.f32.mrf.mxu1  ;;  %v6906_v56 = vpop.f32.mrf.mxu0  ;;  %v1897_v58 = vld [vmem:[#allocation3 + $0x98] sm:$0xff] }
 0x274   : > { %1595 = vst.msk [vmem:[#allocation3 + $0xb8] sm:$0xff] %vm777_vm0, %v1563_v7  ;;  %v1561_v29 = vadd.f32 %v1529_v9, %v1464_v60  ;;  %1958 = vst.msk [vmem:[#allocation3 + $0x80] sm:$0xff] %vm777_vm0, %v1926_v17  ;;  %v1929_v32 = vadd.f32 %v6759_v55, %v1897_v58  ;;  %v1532_v55 = vld [vmem:[#allocation3 + $0xc0] sm:$0xff]  ;;  %v1538_v17 = vld [vmem:[#allocation3 + $0xf0] sm:$0xff] }
 0x275   : > { %v5413_v30 = vpop.f32.mrf.mxu1  ;;  %v6911_v38 = vpop.f32.mrf.mxu0  ;;  %5628 = vmatmul.mubr.msk.bf16.gmra.mxu1 %vm777_vm0, %v3501_v15  ;;  %v1895_v42 = vld [vmem:[#allocation3 + $0x88] sm:$0xff]  ;;  %v1536_v58 = vld [vmem:[#allocation3 + $0xe0] sm:$0xff] }
 0x276   : > { %1593 = vst.msk [vmem:[#allocation3 + $0xa8] sm:$0xff] %vm777_vm0, %v1561_v29  ;;  %v1566_v52 = vadd.f32 %v5413_v30, %v1534_v47  ;;  %5631 = vmatprep.mubr.msk.bf16.mxu1 %vm777_vm0, %v3502_v0  ;;  %1961 = vst.msk [vmem:[#allocation3 + $0x98] sm:$0xff] %vm777_vm0, %v1929_v32  ;;  %v1927_v27 = vadd.f32 %v1895_v42, %v6762_v46  ;;  %v1539_v47 = vld [vmem:[#allocation3 + $0xf8] sm:$0xff] }
 0x277   : > { %v1477_v31 = vpop.f32.mrf.mxu1  ;;  %v6918_v39 = vpop.f32.mrf.mxu0  ;;  %v1900_v8 = vld [vmem:[#allocation3 + $0xb0] sm:$0xff] }
 0x278   : > { %1598 = vst.msk [vmem:[#allocation3 + $0xd0] sm:$0xff] %vm777_vm0, %v1566_v52  ;;  %v1564_v43 = vadd.f32 %v1532_v55, %v1477_v31  ;;  %1959 = vst.msk [vmem:[#allocation3 + $0x88] sm:$0xff] %vm777_vm0, %v1927_v27  ;;  %v1932_v11 = vadd.f32 %v6765_v62, %v1900_v8  ;;  %v1537_v27 = vld [vmem:[#allocation3 + $0xe8] sm:$0xff] }
 0x279   : > { %v5414_v19 = vpop.f32.mrf.mxu1  ;;  %v6923_v26 = vpop.f32.mrf.mxu0  ;;  %v1898_v21 = vld [vmem:[#allocation3 + $0xa0] sm:$0xff] }
 0x27a   : > { %1596 = vst.msk [vmem:[#allocation3 + $0xc0] sm:$0xff] %vm777_vm0, %v1564_v43  ;;  %v1567_v46 = vadd.f32 %v5414_v19, %v1535_v35  ;;  %1964 = vst.msk [vmem:[#allocation3 + $0xb0] sm:$0xff] %vm777_vm0, %v1932_v11  ;;  %v1930_v2 = vadd.f32 %v1898_v21, %v6775_v6  ;;  %v2250_v11 = vld [vmem:[#allocation3 + $0x10] sm:$0xff] }
 0x27b   : > { %v1480_v45 = vpop.f32.mrf.mxu1  ;;  %v6928_v4 = vpop.f32.mrf.mxu0  ;;  %v1901_v41 = vld [vmem:[#allocation3 + $0xb8] sm:$0xff] }
 0x27c   : > { %1599 = vst.msk [vmem:[#allocation3 + $0xd8] sm:$0xff] %vm777_vm0, %v1567_v46  ;;  %v1565_v62 = vadd.f32 %v1533_v1, %v1480_v45  ;;  %1962 = vst.msk [vmem:[#allocation3 + $0xa0] sm:$0xff] %vm777_vm0, %v1930_v2  ;;  %v1933_v7 = vadd.f32 %v6778_v16, %v1901_v41  ;;  %v2248_v46 = vld [vmem:[#allocation3] sm:$0xff] }
 0x27d   : > { %v5417_v13 = vpop.f32.mrf.mxu1  ;;  %v6933_v60 = vpop.f32.mrf.mxu0  ;;  %5632 = vmatmul.mubr.msk.bf16.gmra.mxu1 %vm777_vm0, %v3503_v20  ;;  %v1899_v9 = vld [vmem:[#allocation3 + $0xa8] sm:$0xff] }
 0x27e   : > { %1597 = vst.msk [vmem:[#allocation3 + $0xc8] sm:$0xff] %vm777_vm0, %v1565_v62  ;;  %v1570_v6 = vadd.f32 %v5417_v13, %v1538_v17  ;;  %1965 = vst.msk [vmem:[#allocation3 + $0xb8] sm:$0xff] %vm777_vm0, %v1933_v7  ;;  %v1931_v15 = vadd.f32 %v1899_v9, %v6781_v44  ;;  %v2251_v62 = vld [vmem:[#allocation3 + $0x18] sm:$0xff] }
 0x27f   : > { %v1493_v40 = vpop.f32.mrf.mxu1  ;;  %v6939_v29 = vpop.f32.mrf.mxu0  ;;  %v1904_v0 = vld [vmem:[#allocation3 + $0xd0] sm:$0xff] }
 0x280   : > { %1602 = vst.msk [vmem:[#allocation3 + $0xf0] sm:$0xff] %vm777_vm0, %v1570_v6  ;;  %v1568_v16 = vadd.f32 %v1536_v58, %v1493_v40  ;;  %1963 = vst.msk [vmem:[#allocation3 + $0xa8] sm:$0xff] %vm777_vm0, %v1931_v15  ;;  %v1936_v32 = vadd.f32 %v6784_v24, %v1904_v0  ;;  %v2249_v6 = vld [vmem:[#allocation3 + $0x8] sm:$0xff] }
 0x281   : > { %v5418_v30 = vpop.f32.mrf.mxu1  ;;  %v6944_v42 = vpop.f32.mrf.mxu0  ;;  %v1902_v52 = vld [vmem:[#allocation3 + $0xc0] sm:$0xff] }
 0x282   : > { %1600 = vst.msk [vmem:[#allocation3 + $0xe0] sm:$0xff] %vm777_vm0, %v1568_v16  ;;  %v1571_v44 = vadd.f32 %v5418_v30, %v1539_v47  ;;  %1968 = vst.msk [vmem:[#allocation3 + $0xd0] sm:$0xff] %vm777_vm0, %v1936_v32  ;;  %v1934_v53 = vadd.f32 %v1902_v52, %v6791_v59  ;;  %v2254_v16 = vld [vmem:[#allocation3 + $0x30] sm:$0xff] }
 0x283   : > { %v1496_v3 = vpop.f32.mrf.mxu1  ;;  %v6949_v31 = vpop.f32.mrf.mxu0  ;;  %v1905_v55 = vld [vmem:[#allocation3 + $0xd8] sm:$0xff] }
 0x284   : > { %1603 = vst.msk [vmem:[#allocation3 + $0xf8] sm:$0xff] %vm777_vm0, %v1571_v44  ;;  %v1569_v24 = vadd.f32 %v1537_v27, %v1496_v3  ;;  %1966 = vst.msk [vmem:[#allocation3 + $0xc0] sm:$0xff] %vm777_vm0, %v1934_v53  ;;  %v1937_v8 = vadd.f32 %v6794_v10, %v1905_v55  ;;  %v2252_v44 = vld [vmem:[#allocation3 + $0x20] sm:$0xff] }
 0x285   : > { %v5461_v43 = vpop.f32.mrf.mxu1  ;;  %v6954_v19 = vpop.f32.mrf.mxu0  ;;  %v1903_v35 = vld [vmem:[#allocation3 + $0xc8] sm:$0xff] }
 0x286   : > { %1601 = vst.msk [vmem:[#allocation3 + $0xe8] sm:$0xff] %vm777_vm0, %v1569_v24  ;;  %v2282_v59 = vadd.f32 %v5461_v43, %v2250_v11  ;;  %1969 = vst.msk [vmem:[#allocation3 + $0xd8] sm:$0xff] %vm777_vm0, %v1937_v8  ;;  %v1935_v20 = vadd.f32 %v1903_v35, %v6797_v25  ;;  %v2255_v24 = vld [vmem:[#allocation3 + $0x38] sm:$0xff] }
 0x287   : > { %v2121_v21 = vpop.f32.mrf.mxu1  ;;  %v6959_v2 = vpop.f32.mrf.mxu0  ;;  %v1908_v45 = vld [vmem:[#allocation3 + $0xf0] sm:$0xff] }
 0x288   : > { %2314 = vst.msk [vmem:[#allocation3 + $0x10] sm:$0xff] %vm777_vm0, %v2282_v59  ;;  %v2280_v10 = vadd.f32 %v2248_v46, %v2121_v21  ;;  %1967 = vst.msk [vmem:[#allocation3 + $0xc8] sm:$0xff] %vm777_vm0, %v1935_v20  ;;  %v1940_v1 = vadd.f32 %v6800_v54, %v1908_v45  ;;  %v2253_v59 = vld [vmem:[#allocation3 + $0x28] sm:$0xff]  ;;  %v5802_v45 = vld [vmem:[%s7672_s7] sm:$0xff]  }
 0x289   : > { %v5462_v41 = vpop.f32.mrf.mxu1  ;;  %v6964_v7 = vpop.f32.mrf.mxu0  ;;  %v1906_v13 = vld [vmem:[#allocation3 + $0xe0] sm:$0xff]  ;;  %5673 = vmatprep.subr.bf16.mxu1 %v5802_v45 }
 0x28a   : > { %2312 = vst.msk [vmem:[#allocation3] sm:$0xff] %vm777_vm0, %v2280_v10  ;;  %v2283_v25 = vadd.f32 %v5462_v41, %v2251_v62  ;;  %1972 = vst.msk [vmem:[#allocation3 + $0xf0] sm:$0xff] %vm777_vm0, %v1940_v1  ;;  %v1938_v17 = vadd.f32 %v1906_v13, %v6806_v50  ;;  %v2258_v1 = vld [vmem:[#allocation3 + $0x50] sm:$0xff]  ;;  %5674 = vmatpush3.bf16.msra.mxu1 %v5802_v45 }
 0x28b   : > { %v2124_v9 = vpop.f32.mrf.mxu1  ;;  %v6969_v15 = vpop.f32.mrf.mxu0  ;;  %v1909_v40 = vld [vmem:[#allocation3 + $0xf8] sm:$0xff] }
 0x28c   : > { %2315 = vst.msk [vmem:[#allocation3 + $0x18] sm:$0xff] %vm777_vm0, %v2283_v25  ;;  %v2281_v54 = vadd.f32 %v2249_v6, %v2124_v9  ;;  %1970 = vst.msk [vmem:[#allocation3 + $0xe0] sm:$0xff] %vm777_vm0, %v1938_v17  ;;  %v1941_v58 = vadd.f32 %v6810_v23, %v1909_v40  ;;  %v2256_v17 = vld [vmem:[#allocation3 + $0x40] sm:$0xff] }
 0x28d   : > { %v5465_v0 = vpop.f32.mrf.mxu1  ;;  %v6974_v32 = vpop.f32.mrf.mxu0  ;;  %v1907_v30 = vld [vmem:[#allocation3 + $0xe8] sm:$0xff] }
 0x28e   : > { %2313 = vst.msk [vmem:[#allocation3 + $0x8] sm:$0xff] %vm777_vm0, %v2281_v54  ;;  %v2286_v50 = vadd.f32 %v5465_v0, %v2254_v16  ;;  %1973 = vst.msk [vmem:[#allocation3 + $0xf8] sm:$0xff] %vm777_vm0, %v1941_v58  ;;  %v1939_v47 = vadd.f32 %v1907_v30, %v6815_v48  ;;  %v2259_v58 = vld [vmem:[#allocation3 + $0x58] sm:$0xff] }
 0x28f   : > { %v2137_v52 = vpop.f32.mrf.mxu1  ;;  %v6979_v53 = vpop.f32.mrf.mxu0  ;;  %v2620_v3 = vld [vmem:[#allocation3 + $0x10] sm:$0xff] }
 0x290   : > { %2318 = vst.msk [vmem:[#allocation3 + $0x30] sm:$0xff] %vm777_vm0, %v2286_v50  ;;  %v2284_v23 = vadd.f32 %v2252_v44, %v2137_v52  ;;  %1971 = vst.msk [vmem:[#allocation3 + $0xe8] sm:$0xff] %vm777_vm0, %v1939_v47  ;;  %v2652_v27 = vadd.f32 %v6820_v22, %v2620_v3  ;;  %v2257_v47 = vld [vmem:[#allocation3 + $0x48] sm:$0xff] }
 0x291   : > { %v5466_v55 = vpop.f32.mrf.mxu1  ;;  %v6984_v8 = vpop.f32.mrf.mxu0  ;;  %v2618_v43 = vld [vmem:[#allocation3] sm:$0xff] }
 0x292   : > { %2316 = vst.msk [vmem:[#allocation3 + $0x20] sm:$0xff] %vm777_vm0, %v2284_v23  ;;  %v2287_v48 = vadd.f32 %v5466_v55, %v2255_v24  ;;  %2684 = vst.msk [vmem:[#allocation3 + $0x10] sm:$0xff] %vm777_vm0, %v2652_v27  ;;  %v2650_v11 = vadd.f32 %v2618_v43, %v6827_v37  ;;  %v2262_v27 = vld [vmem:[#allocation3 + $0x70] sm:$0xff] }
 0x293   : > { %v2140_v35 = vpop.f32.mrf.mxu1  ;;  %v6989_v20 = vpop.f32.mrf.mxu0  ;;  %v2621_v21 = vld [vmem:[#allocation3 + $0x18] sm:$0xff] }
 0x294   : > { %2319 = vst.msk [vmem:[#allocation3 + $0x38] sm:$0xff] %vm777_vm0, %v2287_v48  ;;  %v2285_v22 = vadd.f32 %v2253_v59, %v2140_v35  ;;  %2682 = vst.msk [vmem:[#allocation3] sm:$0xff] %vm777_vm0, %v2650_v11  ;;  %v2653_v46 = vadd.f32 %v6832_v33, %v2621_v21  ;;  %v2260_v11 = vld [vmem:[#allocation3 + $0x60] sm:$0xff] }
 0x295   : > { %v5469_v10 = vpop.f32.mrf.mxu1  ;;  %v6997_v41 = vpop.f32.mrf.mxu0  ;;  %v2619_v37 = vld [vmem:[#allocation3 + $0x8] sm:$0xff] }
 0x296   : > { %2317 = vst.msk [vmem:[#allocation3 + $0x28] sm:$0xff] %vm777_vm0, %v2285_v22  ;;  %v2290_v62 = vadd.f32 %v5469_v10, %v2258_v1  ;;  %2685 = vst.msk [vmem:[#allocation3 + $0x18] sm:$0xff] %vm777_vm0, %v2653_v46  ;;  %v2651_v13 = vadd.f32 %v2619_v37, %v6837_v49  ;;  %v2263_v46 = vld [vmem:[#allocation3 + $0x78] sm:$0xff] }
 0x297   : > { %v2153_v25 = vpop.f32.mrf.mxu1  ;;  %v7002_v33 = vpop.f32.mrf.mxu0  ;;  %v2624_v9 = vld [vmem:[#allocation3 + $0x30] sm:$0xff] }
 0x298   : > { %2322 = vst.msk [vmem:[#allocation3 + $0x50] sm:$0xff] %vm777_vm0, %v2290_v62  ;;  %v2288_v6 = vadd.f32 %v2256_v17, %v2153_v25  ;;  %2683 = vst.msk [vmem:[#allocation3 + $0x8] sm:$0xff] %vm777_vm0, %v2651_v13  ;;  %v2656_v40 = vadd.f32 %v6842_v57, %v2624_v9  ;;  %v2261_v62 = vld [vmem:[#allocation3 + $0x68] sm:$0xff] }
 0x299   : > { %v5470_v54 = vpop.f32.mrf.mxu1  ;;  %v7007_v0 = vpop.f32.mrf.mxu0  ;;  %v2622_v16 = vld [vmem:[#allocation3 + $0x20] sm:$0xff] }
 0x29a   : > { %2320 = vst.msk [vmem:[#allocation3 + $0x40] sm:$0xff] %vm777_vm0, %v2288_v6  ;;  %v2291_v49 = vadd.f32 %v5470_v54, %v2259_v58  ;;  %2688 = vst.msk [vmem:[#allocation3 + $0x30] sm:$0xff] %vm777_vm0, %v2656_v40  ;;  %v2654_v30 = vadd.f32 %v2622_v16, %v6849_v51  ;;  %v2266_v6 = vld [vmem:[#allocation3 + $0x90] sm:$0xff] }
 0x29b   : > { %v2156_v50 = vpop.f32.mrf.mxu1  ;;  %v7012_v52 = vpop.f32.mrf.mxu0  ;;  %v2625_v44 = vld [vmem:[#allocation3 + $0x38] sm:$0xff] }
 0x29c   : > { %2323 = vst.msk [vmem:[#allocation3 + $0x58] sm:$0xff] %vm777_vm0, %v2291_v49  ;;  %v2289_v57 = vadd.f32 %v2257_v47, %v2156_v50  ;;  %2686 = vst.msk [vmem:[#allocation3 + $0x20] sm:$0xff] %vm777_vm0, %v2654_v30  ;;  %v2657_v3 = vadd.f32 %v6854_v36, %v2625_v44  ;;  %v2264_v49 = vld [vmem:[#allocation3 + $0x80] sm:$0xff] }
 0x29d   : > { %v5473_v23 = vpop.f32.mrf.mxu1  ;;  %v7017_v55 = vpop.f32.mrf.mxu0  ;;  %v2623_v24 = vld [vmem:[#allocation3 + $0x28] sm:$0xff] }
 0x29e   : > { %2321 = vst.msk [vmem:[#allocation3 + $0x48] sm:$0xff] %vm777_vm0, %v2289_v57  ;;  %v2294_v51 = vadd.f32 %v5473_v23, %v2262_v27  ;;  %2689 = vst.msk [vmem:[#allocation3 + $0x38] sm:$0xff] %vm777_vm0, %v2657_v3  ;;  %v2655_v43 = vadd.f32 %v2623_v24, %v6859_v14  ;;  %v2267_v57 = vld [vmem:[#allocation3 + $0x98] sm:$0xff] }
 0x29f   : > { %v2169_v48 = vpop.f32.mrf.mxu1  ;;  %v7022_v35 = vpop.f32.mrf.mxu0  ;;  %v2628_v59 = vld [vmem:[#allocation3 + $0x50] sm:$0xff] }
 0x2a0   : > { %2326 = vst.msk [vmem:[#allocation3 + $0x70] sm:$0xff] %vm777_vm0, %v2294_v51  ;;  %v2292_v36 = vadd.f32 %v2260_v11, %v2169_v48  ;;  %2687 = vst.msk [vmem:[#allocation3 + $0x28] sm:$0xff] %vm777_vm0, %v2655_v43  ;;  %v2660_v21 = vadd.f32 %v6864_v5, %v2628_v59  ;;  %v2265_v51 = vld [vmem:[#allocation3 + $0x88] sm:$0xff] }
 0x2a1   : > { %v5474_v22 = vpop.f32.mrf.mxu1  ;;  %v7027_v45 = vpop.f32.mrf.mxu0  ;;  %v2626_v10 = vld [vmem:[#allocation3 + $0x40] sm:$0xff] }
 0x2a2   : > { %2324 = vst.msk [vmem:[#allocation3 + $0x60] sm:$0xff] %vm777_vm0, %v2292_v36  ;;  %v2295_v14 = vadd.f32 %v5474_v22, %v2263_v46  ;;  %2692 = vst.msk [vmem:[#allocation3 + $0x50] sm:$0xff] %vm777_vm0, %v2660_v21  ;;  %v2658_v1 = vadd.f32 %v2626_v10, %v6871_v63  ;;  %v2270_v36 = vld [vmem:[#allocation3 + $0xb0] sm:$0xff] }
 0x2a3   : > { %v2172_v37 = vpop.f32.mrf.mxu1  ;;  %v7032_v13 = vpop.f32.mrf.mxu0  ;;  %v2629_v25 = vld [vmem:[#allocation3 + $0x58] sm:$0xff] }
 0x2a4   : > { %2327 = vst.msk [vmem:[#allocation3 + $0x78] sm:$0xff] %vm777_vm0, %v2295_v14  ;;  %v2293_v5 = vadd.f32 %v2261_v62, %v2172_v37  ;;  %2690 = vst.msk [vmem:[#allocation3 + $0x40] sm:$0xff] %vm777_vm0, %v2658_v1  ;;  %v2661_v17 = vadd.f32 %v6876_v12, %v2629_v25  ;;  %v2268_v14 = vld [vmem:[#allocation3 + $0xa0] sm:$0xff] }
 0x2a5   : > { %v5477_v9 = vpop.f32.mrf.mxu1  ;;  %v7037_v40 = vpop.f32.mrf.mxu0  ;;  %v2627_v54 = vld [vmem:[#allocation3 + $0x48] sm:$0xff] }
 0x2a6   : > { %2325 = vst.msk [vmem:[#allocation3 + $0x68] sm:$0xff] %vm777_vm0, %v2293_v5  ;;  %v2298_v63 = vadd.f32 %v5477_v9, %v2266_v6  ;;  %2693 = vst.msk [vmem:[#allocation3 + $0x58] sm:$0xff] %vm777_vm0, %v2661_v17  ;;  %v2659_v58 = vadd.f32 %v2627_v54, %v6884_v61  ;;  %v2271_v5 = vld [vmem:[#allocation3 + $0xb8] sm:$0xff] }
 0x2a7   : > { %v2185_v16 = vpop.f32.mrf.mxu1  ;;  %v7042_v30 = vpop.f32.mrf.mxu0  ;;  %v2632_v50 = vld [vmem:[#allocation3 + $0x70] sm:$0xff] }
 0x2a8   : > { %2330 = vst.msk [vmem:[#allocation3 + $0x90] sm:$0xff] %vm777_vm0, %v2298_v63  ;;  %v2296_v12 = vadd.f32 %v2264_v49, %v2185_v16  ;;  %2691 = vst.msk [vmem:[#allocation3 + $0x48] sm:$0xff] %vm777_vm0, %v2659_v58  ;;  %v2664_v47 = vadd.f32 %v6889_v18, %v2632_v50  ;;  %v2269_v63 = vld [vmem:[#allocation3 + $0xa8] sm:$0xff] }
 0x2a9   : > { %v5478_v44 = vpop.f32.mrf.mxu1  ;;  %v7047_v3 = vpop.f32.mrf.mxu0  ;;  %v2630_v23 = vld [vmem:[#allocation3 + $0x60] sm:$0xff] }
 0x2aa   : > { %2328 = vst.msk [vmem:[#allocation3 + $0x80] sm:$0xff] %vm777_vm0, %v2296_v12  ;;  %v2299_v61 = vadd.f32 %v5478_v44, %v2267_v57  ;;  %2696 = vst.msk [vmem:[#allocation3 + $0x70] sm:$0xff] %vm777_vm0, %v2664_v47  ;;  %v2662_v27 = vadd.f32 %v2630_v23, %v6896_v34  ;;  %v2274_v12 = vld [vmem:[#allocation3 + $0xd0] sm:$0xff] }
 0x2ab   : > { %v2188_v24 = vpop.f32.mrf.mxu1  ;;  %v7052_v43 = vpop.f32.mrf.mxu0  ;;  %v2633_v48 = vld [vmem:[#allocation3 + $0x78] sm:$0xff] }
 0x2ac   : > { %2331 = vst.msk [vmem:[#allocation3 + $0x98] sm:$0xff] %vm777_vm0, %v2299_v61  ;;  %v2297_v18 = vadd.f32 %v2265_v51, %v2188_v24  ;;  %2694 = vst.msk [vmem:[#allocation3 + $0x60] sm:$0xff] %vm777_vm0, %v2662_v27  ;;  %v2665_v11 = vadd.f32 %v6901_v28, %v2633_v48  ;;  %v2272_v61 = vld [vmem:[#allocation3 + $0xc0] sm:$0xff] }
 0x2ad   : > { %v5481_v59 = vpop.f32.mrf.mxu1  ;;  %v7057_v21 = vpop.f32.mrf.mxu0  ;;  %v2631_v22 = vld [vmem:[#allocation3 + $0x68] sm:$0xff] }
 0x2ae   : > { %2329 = vst.msk [vmem:[#allocation3 + $0x88] sm:$0xff] %vm777_vm0, %v2297_v18  ;;  %v2302_v34 = vadd.f32 %v5481_v59, %v2270_v36  ;;  %2697 = vst.msk [vmem:[#allocation3 + $0x78] sm:$0xff] %vm777_vm0, %v2665_v11  ;;  %v2663_v46 = vadd.f32 %v2631_v22, %v6906_v56  ;;  %v2275_v18 = vld [vmem:[#allocation3 + $0xd8] sm:$0xff] }
 0x2af   : > { %v2201_v10 = vpop.f32.mrf.mxu1  ;;  %v7062_v1 = vpop.f32.mrf.mxu0  ;;  %v2636_v37 = vld [vmem:[#allocation3 + $0x90] sm:$0xff] }
 0x2b0   : > { %2334 = vst.msk [vmem:[#allocation3 + $0xb0] sm:$0xff] %vm777_vm0, %v2302_v34  ;;  %v2300_v28 = vadd.f32 %v2268_v14, %v2201_v10  ;;  %2695 = vst.msk [vmem:[#allocation3 + $0x68] sm:$0xff] %vm777_vm0, %v2663_v46  ;;  %v2668_v62 = vadd.f32 %v6911_v38, %v2636_v37  ;;  %v2273_v34 = vld [vmem:[#allocation3 + $0xc8] sm:$0xff] }
 0x2b1   : > { %v5482_v25 = vpop.f32.mrf.mxu1  ;;  %v7067_v17 = vpop.f32.mrf.mxu0  ;;  %v2634_v9 = vld [vmem:[#allocation3 + $0x80] sm:$0xff] }
 0x2b2   : > { %2332 = vst.msk [vmem:[#allocation3 + $0xa0] sm:$0xff] %vm777_vm0, %v2300_v28  ;;  %v2303_v56 = vadd.f32 %v5482_v25, %v2271_v5  ;;  %2700 = vst.msk [vmem:[#allocation3 + $0x90] sm:$0xff] %vm777_vm0, %v2668_v62  ;;  %v2666_v6 = vadd.f32 %v2634_v9, %v6918_v39  ;;  %v2278_v28 = vld [vmem:[#allocation3 + $0xf0] sm:$0xff] }
 0x2b3   : > { %v2204_v54 = vpop.f32.mrf.mxu1  ;;  %v7072_v58 = vpop.f32.mrf.mxu0  ;;  %v2637_v16 = vld [vmem:[#allocation3 + $0x98] sm:$0xff] }
 0x2b4   : > { %2335 = vst.msk [vmem:[#allocation3 + $0xb8] sm:$0xff] %vm777_vm0, %v2303_v56  ;;  %v2301_v38 = vadd.f32 %v2269_v63, %v2204_v54  ;;  %2698 = vst.msk [vmem:[#allocation3 + $0x80] sm:$0xff] %vm777_vm0, %v2666_v6  ;;  %v2669_v49 = vadd.f32 %v6923_v26, %v2637_v16  ;;  %v2276_v56 = vld [vmem:[#allocation3 + $0xe0] sm:$0xff] }
 0x2b5   : > { %v5485_v50 = vpop.f32.mrf.mxu1  ;;  %v7077_v47 = vpop.f32.mrf.mxu0  ;;  %v2635_v44 = vld [vmem:[#allocation3 + $0x88] sm:$0xff] }
 0x2b6   : > { %2333 = vst.msk [vmem:[#allocation3 + $0xa8] sm:$0xff] %vm777_vm0, %v2301_v38  ;;  %v2306_v39 = vadd.f32 %v5485_v50, %v2274_v12  ;;  %2701 = vst.msk [vmem:[#allocation3 + $0x98] sm:$0xff] %vm777_vm0, %v2669_v49  ;;  %v2667_v57 = vadd.f32 %v2635_v44, %v6928_v4  ;;  %v2279_v38 = vld [vmem:[#allocation3 + $0xf8] sm:$0xff] }
 0x2b7   : > { %v2217_v23 = vpop.f32.mrf.mxu1  ;;  %v7082_v27 = vpop.f32.mrf.mxu0  ;;  %v2640_v24 = vld [vmem:[#allocation3 + $0xb0] sm:$0xff] }
 0x2b8   : > { %2338 = vst.msk [vmem:[#allocation3 + $0xd0] sm:$0xff] %vm777_vm0, %v2306_v39  ;;  %v2304_v26 = vadd.f32 %v2272_v61, %v2217_v23  ;;  %2699 = vst.msk [vmem:[#allocation3 + $0x88] sm:$0xff] %vm777_vm0, %v2667_v57  ;;  %v2672_v51 = vadd.f32 %v6933_v60, %v2640_v24  ;;  %v2277_v39 = vld [vmem:[#allocation3 + $0xe8] sm:$0xff] }
 0x2b9   : > { %v5486_v48 = vpop.f32.mrf.mxu1  ;;  %v7087_v11 = vpop.f32.mrf.mxu0  ;;  %v2638_v59 = vld [vmem:[#allocation3 + $0xa0] sm:$0xff] }
 0x2ba   : > { %2336 = vst.msk [vmem:[#allocation3 + $0xc0] sm:$0xff] %vm777_vm0, %v2304_v26  ;;  %v2307_v4 = vadd.f32 %v5486_v48, %v2275_v18  ;;  %2704 = vst.msk [vmem:[#allocation3 + $0xb0] sm:$0xff] %vm777_vm0, %v2672_v51  ;;  %v2670_v36 = vadd.f32 %v2638_v59, %v6939_v29  ;;  %v2990_v26 = vld [vmem:[#allocation3 + $0x10] sm:$0xff] }
 0x2bb   : > { %v2220_v22 = vpop.f32.mrf.mxu1  ;;  %v7092_v46 = vpop.f32.mrf.mxu0  ;;  %v2641_v10 = vld [vmem:[#allocation3 + $0xb8] sm:$0xff] }
 0x2bc   : > { %2339 = vst.msk [vmem:[#allocation3 + $0xd8] sm:$0xff] %vm777_vm0, %v2307_v4  ;;  %v2305_v60 = vadd.f32 %v2273_v34, %v2220_v22  ;;  %2702 = vst.msk [vmem:[#allocation3 + $0xa0] sm:$0xff] %vm777_vm0, %v2670_v36  ;;  %v2673_v14 = vadd.f32 %v6944_v42, %v2641_v10  ;;  %v2988_v4 = vld [vmem:[#allocation3] sm:$0xff] }
 0x2bd   : > { %v5489_v37 = vpop.f32.mrf.mxu1  ;;  %v7097_v62 = vpop.f32.mrf.mxu0  ;;  %v2639_v25 = vld [vmem:[#allocation3 + $0xa8] sm:$0xff] }
 0x2be   : > { %2337 = vst.msk [vmem:[#allocation3 + $0xc8] sm:$0xff] %vm777_vm0, %v2305_v60  ;;  %v2310_v29 = vadd.f32 %v5489_v37, %v2278_v28  ;;  %2705 = vst.msk [vmem:[#allocation3 + $0xb8] sm:$0xff] %vm777_vm0, %v2673_v14  ;;  %v2671_v5 = vadd.f32 %v2639_v25, %v6949_v31  ;;  %v2991_v60 = vld [vmem:[#allocation3 + $0x18] sm:$0xff] }
 0x2bf   : > { %v2233_v9 = vpop.f32.mrf.mxu1  ;;  %v7102_v6 = vpop.f32.mrf.mxu0  ;;  %v2644_v54 = vld [vmem:[#allocation3 + $0xd0] sm:$0xff] }
 0x2c0   : > { %2342 = vst.msk [vmem:[#allocation3 + $0xf0] sm:$0xff] %vm777_vm0, %v2310_v29  ;;  %v2308_v42 = vadd.f32 %v2276_v56, %v2233_v9  ;;  %2703 = vst.msk [vmem:[#allocation3 + $0xa8] sm:$0xff] %vm777_vm0, %v2671_v5  ;;  %v2676_v63 = vadd.f32 %v6954_v19, %v2644_v54  ;;  %v2989_v29 = vld [vmem:[#allocation3 + $0x8] sm:$0xff] }
 0x2c1   : > { %v5490_v16 = vpop.f32.mrf.mxu1  ;;  %v7107_v49 = vpop.f32.mrf.mxu0  ;;  %v2642_v50 = vld [vmem:[#allocation3 + $0xc0] sm:$0xff] }
 0x2c2   : > { %2340 = vst.msk [vmem:[#allocation3 + $0xe0] sm:$0xff] %vm777_vm0, %v2308_v42  ;;  %v2311_v31 = vadd.f32 %v5490_v16, %v2279_v38  ;;  %2708 = vst.msk [vmem:[#allocation3 + $0xd0] sm:$0xff] %vm777_vm0, %v2676_v63  ;;  %v2674_v12 = vadd.f32 %v2642_v50, %v6959_v2  ;;  %v2994_v42 = vld [vmem:[#allocation3 + $0x30] sm:$0xff] }
 0x2c3   : > { %v2236_v44 = vpop.f32.mrf.mxu1  ;;  %v7112_v57 = vpop.f32.mrf.mxu0  ;;  %v2645_v23 = vld [vmem:[#allocation3 + $0xd8] sm:$0xff] }
 0x2c4   : > { %2343 = vst.msk [vmem:[#allocation3 + $0xf8] sm:$0xff] %vm777_vm0, %v2311_v31  ;;  %v2309_v19 = vadd.f32 %v2277_v39, %v2236_v44  ;;  %2706 = vst.msk [vmem:[#allocation3 + $0xc0] sm:$0xff] %vm777_vm0, %v2674_v12  ;;  %v2677_v61 = vadd.f32 %v6964_v7, %v2645_v23  ;;  %v2992_v31 = vld [vmem:[#allocation3 + $0x20] sm:$0xff] }
 0x2c5   : > { %v5533_v24 = vpop.f32.mrf.mxu1  ;;  %v7117_v51 = vpop.f32.mrf.mxu0  ;;  %v2643_v48 = vld [vmem:[#allocation3 + $0xc8] sm:$0xff] }
 0x2c6   : > { %2341 = vst.msk [vmem:[#allocation3 + $0xe8] sm:$0xff] %vm777_vm0, %v2309_v19  ;;  %v3022_v2 = vadd.f32 %v5533_v24, %v2990_v26  ;;  %2709 = vst.msk [vmem:[#allocation3 + $0xd8] sm:$0xff] %vm777_vm0, %v2677_v61  ;;  %v2675_v18 = vadd.f32 %v2643_v48, %v6969_v15  ;;  %v2995_v19 = vld [vmem:[#allocation3 + $0x38] sm:$0xff] }
 0x2c7   : > { %v2861_v59 = vpop.f32.mrf.mxu1  ;;  %v7122_v36 = vpop.f32.mrf.mxu0  ;;  %v2648_v22 = vld [vmem:[#allocation3 + $0xf0] sm:$0xff] }
 0x2c8   : > { %3054 = vst.msk [vmem:[#allocation3 + $0x10] sm:$0xff] %vm777_vm0, %v3022_v2  ;;  %v3020_v7 = vadd.f32 %v2988_v4, %v2861_v59  ;;  %2707 = vst.msk [vmem:[#allocation3 + $0xc8] sm:$0xff] %vm777_vm0, %v2675_v18  ;;  %v2680_v34 = vadd.f32 %v6974_v32, %v2648_v22  ;;  %v2993_v2 = vld [vmem:[#allocation3 + $0x28] sm:$0xff] }
 0x2c9   : > { %v5534_v10 = vpop.f32.mrf.mxu1  ;;  %v7127_v14 = vpop.f32.mrf.mxu0  ;;  %v2646_v37 = vld [vmem:[#allocation3 + $0xe0] sm:$0xff] }
 0x2ca   : > { %3052 = vst.msk [vmem:[#allocation3] sm:$0xff] %vm777_vm0, %v3020_v7  ;;  %v3023_v15 = vadd.f32 %v5534_v10, %v2991_v60  ;;  %2712 = vst.msk [vmem:[#allocation3 + $0xf0] sm:$0xff] %vm777_vm0, %v2680_v34  ;;  %v2678_v28 = vadd.f32 %v2646_v37, %v6979_v53  ;;  %v2998_v7 = vld [vmem:[#allocation3 + $0x50] sm:$0xff] }
 0x2cb   : > { %v2864_v25 = vpop.f32.mrf.mxu1  ;;  %v7132_v5 = vpop.f32.mrf.mxu0  ;;  %v2649_v9 = vld [vmem:[#allocation3 + $0xf8] sm:$0xff] }
 0x2cc   : > { %3055 = vst.msk [vmem:[#allocation3 + $0x18] sm:$0xff] %vm777_vm0, %v3023_v15  ;;  %v3021_v32 = vadd.f32 %v2989_v29, %v2864_v25  ;;  %2710 = vst.msk [vmem:[#allocation3 + $0xe0] sm:$0xff] %vm777_vm0, %v2678_v28  ;;  %v2681_v56 = vadd.f32 %v6984_v8, %v2649_v9  ;;  %v2996_v15 = vld [vmem:[#allocation3 + $0x40] sm:$0xff] }
 0x2cd   : > { %v5537_v54 = vpop.f32.mrf.mxu1  ;;  %v7137_v63 = vpop.f32.mrf.mxu0  ;;  %v2647_v16 = vld [vmem:[#allocation3 + $0xe8] sm:$0xff] }
 0x2ce   : > { %3053 = vst.msk [vmem:[#allocation3 + $0x8] sm:$0xff] %vm777_vm0, %v3021_v32  ;;  %v3026_v53 = vadd.f32 %v5537_v54, %v2994_v42  ;;  %2713 = vst.msk [vmem:[#allocation3 + $0xf8] sm:$0xff] %vm777_vm0, %v2681_v56  ;;  %v2679_v38 = vadd.f32 %v2647_v16, %v6989_v20  ;;  %v2999_v32 = vld [vmem:[#allocation3 + $0x58] sm:$0xff] }
 0x2cf   : > { %v2877_v50 = vpop.f32.mrf.mxu1  ;;  %v7142_v12 = vpop.f32.mrf.mxu0  ;;  %v3361_v44 = vld [vmem:[#allocation3 + $0x10] sm:$0xff] }
 0x2d0   : > { %3058 = vst.msk [vmem:[#allocation3 + $0x30] sm:$0xff] %vm777_vm0, %v3026_v53  ;;  %v3024_v8 = vadd.f32 %v2992_v31, %v2877_v50  ;;  %2711 = vst.msk [vmem:[#allocation3 + $0xe8] sm:$0xff] %vm777_vm0, %v2679_v38  ;;  %v3393_v39 = vadd.f32 %v6997_v41, %v3361_v44  ;;  %v2997_v53 = vld [vmem:[#allocation3 + $0x48] sm:$0xff]  ;;  %v3002_v44 = vld [vmem:[#allocation3 + $0x70] sm:$0xff] }
 0x2d1   : > { %v5538_v23 = vpop.f32.mrf.mxu1  ;;  %v7147_v61 = vpop.f32.mrf.mxu0  ;;  %v3359_v24 = vld [vmem:[#allocation3] sm:$0xff] }
 0x2d2   : > { %3056 = vst.msk [vmem:[#allocation3 + $0x20] sm:$0xff] %vm777_vm0, %v3024_v8  ;;  %v3027_v20 = vadd.f32 %v5538_v23, %v2995_v19  ;;  %3425 = vst.msk [vmem:[#allocation3 + $0x10] sm:$0xff] %vm777_vm0, %v3393_v39  ;;  %v3391_v26 = vadd.f32 %v3359_v24, %v7002_v33  ;;  %v3000_v24 = vld [vmem:[#allocation3 + $0x60] sm:$0xff] }
 0x2d3   : > { %v2880_v48 = vpop.f32.mrf.mxu1  ;;  %v7152_v18 = vpop.f32.mrf.mxu0  ;;  %v3362_v59 = vld [vmem:[#allocation3 + $0x18] sm:$0xff] }
 0x2d4   : > { %3059 = vst.msk [vmem:[#allocation3 + $0x38] sm:$0xff] %vm777_vm0, %v3027_v20  ;;  %v3025_v41 = vadd.f32 %v2993_v2, %v2880_v48  ;;  %3423 = vst.msk [vmem:[#allocation3] sm:$0xff] %vm777_vm0, %v3391_v26  ;;  %v3394_v4 = vadd.f32 %v7007_v0, %v3362_v59  ;;  %v3003_v2 = vld [vmem:[#allocation3 + $0x78] sm:$0xff] }
 0x2d5   : > { %v5541_v22 = vpop.f32.mrf.mxu1  ;;  %v7157_v34 = vpop.f32.mrf.mxu0  ;;  %v3360_v10 = vld [vmem:[#allocation3 + $0x8] sm:$0xff] }
 0x2d6   : > { %3057 = vst.msk [vmem:[#allocation3 + $0x28] sm:$0xff] %vm777_vm0, %v3025_v41  ;;  %v3030_v33 = vadd.f32 %v5541_v22, %v2998_v7  ;;  %3426 = vst.msk [vmem:[#allocation3 + $0x18] sm:$0xff] %vm777_vm0, %v3394_v4  ;;  %v3392_v60 = vadd.f32 %v3360_v10, %v7012_v52  ;;  %v3001_v7 = vld [vmem:[#allocation3 + $0x68] sm:$0xff] }
 0x2d7   : > { %v2893_v37 = vpop.f32.mrf.mxu1  ;;  %v7162_v28 = vpop.f32.mrf.mxu0  ;;  %v3365_v25 = vld [vmem:[#allocation3 + $0x30] sm:$0xff] }
 0x2d8   : > { %3062 = vst.msk [vmem:[#allocation3 + $0x50] sm:$0xff] %vm777_vm0, %v3030_v33  ;;  %v3028_v0 = vadd.f32 %v2996_v15, %v2893_v37  ;;  %3424 = vst.msk [vmem:[#allocation3 + $0x8] sm:$0xff] %vm777_vm0, %v3392_v60  ;;  %v3397_v29 = vadd.f32 %v7017_v55, %v3365_v25  ;;  %v3006_v37 = vld [vmem:[#allocation3 + $0x90] sm:$0xff] }
 0x2d9   : > { %v5542_v9 = vpop.f32.mrf.mxu1  ;;  %v3363_v56 = vld [vmem:[#allocation3 + $0x20] sm:$0xff]  ;;  %v7170_v42 = vpop.f32.mrf.mxu0 }
 0x2da   : > { %3060 = vst.msk [vmem:[#allocation3 + $0x40] sm:$0xff] %vm777_vm0, %v3028_v0  ;;  %v3031_v54 = vadd.f32 %v5542_v9, %v2999_v32  ;;  %3429 = vst.msk [vmem:[#allocation3 + $0x30] sm:$0xff] %vm777_vm0, %v3397_v29  ;;  %v3395_v52 = vadd.f32 %v3363_v56, %v7022_v35  ;;  %v3004_v9 = vld [vmem:[#allocation3 + $0x80] sm:$0xff] }
 0x2db   : > { %v2896_v16 = vpop.f32.mrf.mxu1  ;;  %v3366_v38 = vld [vmem:[#allocation3 + $0x38] sm:$0xff]  ;;  %v7178_v23 = vpop.f32.mrf.mxu0 }
 0x2dc   : > { %3063 = vst.msk [vmem:[#allocation3 + $0x58] sm:$0xff] %vm777_vm0, %v3031_v54  ;;  %v3029_v50 = vadd.f32 %v2997_v53, %v2896_v16  ;;  %3427 = vst.msk [vmem:[#allocation3 + $0x20] sm:$0xff] %vm777_vm0, %v3395_v52  ;;  %v3398_v55 = vadd.f32 %v7027_v45, %v3366_v38  ;;  %v3007_v52 = vld [vmem:[#allocation3 + $0x98] sm:$0xff] }
 0x2dd   : > { %v5545_v31 = vpop.f32.mrf.mxu1  ;;  %v3364_v8 = vld [vmem:[#allocation3 + $0x28] sm:$0xff]  ;;  %v7186_v4 = vpop.f32.mrf.mxu0 }
 0x2de   : > { %3061 = vst.msk [vmem:[#allocation3 + $0x48] sm:$0xff] %vm777_vm0, %v3029_v50  ;;  %v3034_v39 = vadd.f32 %v5545_v31, %v3002_v44  ;;  %3430 = vst.msk [vmem:[#allocation3 + $0x38] sm:$0xff] %vm777_vm0, %v3398_v55  ;;  %v3396_v35 = vadd.f32 %v3364_v8, %v7032_v13  ;;  %v3005_v55 = vld [vmem:[#allocation3 + $0x88] sm:$0xff] }
 0x2df   : > { %v2909_v19 = vpop.f32.mrf.mxu1  ;;  %v3369_v20 = vld [vmem:[#allocation3 + $0x50] sm:$0xff]  ;;  %v7194_v0 = vpop.f32.mrf.mxu0 }
 0x2e0   : > { %3066 = vst.msk [vmem:[#allocation3 + $0x70] sm:$0xff] %vm777_vm0, %v3034_v39  ;;  %v3032_v26 = vadd.f32 %v3000_v24, %v2909_v19  ;;  %3428 = vst.msk [vmem:[#allocation3 + $0x28] sm:$0xff] %vm777_vm0, %v3396_v35  ;;  %v3401_v45 = vadd.f32 %v7037_v40, %v3369_v20  ;;  %v3010_v39 = vld [vmem:[#allocation3 + $0xb0] sm:$0xff] }
 0x2e1   : > { %v5546_v48 = vpop.f32.mrf.mxu1  ;;  %v3367_v59 = vld [vmem:[#allocation3 + $0x40] sm:$0xff]  ;;  %v7202_v38 = vpop.f32.mrf.mxu0 }
 0x2e2   : > { %3064 = vst.msk [vmem:[#allocation3 + $0x60] sm:$0xff] %vm777_vm0, %v3032_v26  ;;  %v3035_v41 = vadd.f32 %v5546_v48, %v3003_v2  ;;  %3433 = vst.msk [vmem:[#allocation3 + $0x50] sm:$0xff] %vm777_vm0, %v3401_v45  ;;  %v3399_v13 = vadd.f32 %v3367_v59, %v7042_v30  ;;  %v3008_v26 = vld [vmem:[#allocation3 + $0xa0] sm:$0xff]  ;;  %v3011_v59 = vld [vmem:[#allocation3 + $0xb8] sm:$0xff] }
 0x2e3   : > { %v2912_v22 = vpop.f32.mrf.mxu1  ;;  %v3370_v10 = vld [vmem:[#allocation3 + $0x58] sm:$0xff]  ;;  %v7210_v24 = vpop.f32.mrf.mxu0 }
 0x2e4   : > { %3067 = vst.msk [vmem:[#allocation3 + $0x78] sm:$0xff] %vm777_vm0, %v3035_v41  ;;  %v3033_v33 = vadd.f32 %v3001_v7, %v2912_v22  ;;  %3431 = vst.msk [vmem:[#allocation3 + $0x40] sm:$0xff] %vm777_vm0, %v3399_v13  ;;  %v3402_v40 = vadd.f32 %v7047_v3, %v3370_v10  ;;  %v3009_v10 = vld [vmem:[#allocation3 + $0xa8] sm:$0xff] }
 0x2e5   : > { %v5549_v60 = vpop.f32.mrf.mxu1  ;;  %v3368_v15 = vld [vmem:[#allocation3 + $0x48] sm:$0xff]  ;;  %v7218_v22 = vpop.f32.mrf.mxu0 }
 0x2e6   : > { %3065 = vst.msk [vmem:[#allocation3 + $0x68] sm:$0xff] %vm777_vm0, %v3033_v33  ;;  %v3038_v25 = vadd.f32 %v5549_v60, %v3006_v37  ;;  %3434 = vst.msk [vmem:[#allocation3 + $0x58] sm:$0xff] %vm777_vm0, %v3402_v40  ;;  %v3400_v30 = vadd.f32 %v3368_v15, %v7052_v43  ;;  %v3014_v37 = vld [vmem:[#allocation3 + $0xd0] sm:$0xff] }
 0x2e7   : > { %v2925_v29 = vpop.f32.mrf.mxu1  ;;  %v3373_v32 = vld [vmem:[#allocation3 + $0x70] sm:$0xff] }
 0x2e8   : > { %3070 = vst.msk [vmem:[#allocation3 + $0x90] sm:$0xff] %vm777_vm0, %v3038_v25  ;;  %v3036_v56 = vadd.f32 %v3004_v9, %v2925_v29  ;;  %3432 = vst.msk [vmem:[#allocation3 + $0x48] sm:$0xff] %vm777_vm0, %v3400_v30  ;;  %v3405_v3 = vadd.f32 %v7057_v21, %v3373_v32  ;;  %v7226_v30 = vpop.f32.mrf.mxu0  ;;  %v3012_v9 = vld [vmem:[#allocation3 + $0xc0] sm:$0xff] }
 0x2e9   : > { %v5550_v54 = vpop.f32.mrf.mxu1  ;;  %v3371_v16 = vld [vmem:[#allocation3 + $0x60] sm:$0xff] }
 0x2ea   : > { %3068 = vst.msk [vmem:[#allocation3 + $0x80] sm:$0xff] %vm777_vm0, %v3036_v56  ;;  %v3039_v53 = vadd.f32 %v5550_v54, %v3007_v52  ;;  %3437 = vst.msk [vmem:[#allocation3 + $0x70] sm:$0xff] %vm777_vm0, %v3405_v3  ;;  %v3403_v43 = vadd.f32 %v3371_v16, %v7062_v1  ;;  %v3015_v54 = vld [vmem:[#allocation3 + $0xd8] sm:$0xff] }
 0x2eb   : > { %v2928_v50 = vpop.f32.mrf.mxu1  ;;  %v3374_v31 = vld [vmem:[#allocation3 + $0x78] sm:$0xff] }
 0x2ec   : > { %3071 = vst.msk [vmem:[#allocation3 + $0x98] sm:$0xff] %vm777_vm0, %v3039_v53  ;;  %v3037_v44 = vadd.f32 %v3005_v55, %v2928_v50  ;;  %3435 = vst.msk [vmem:[#allocation3 + $0x60] sm:$0xff] %vm777_vm0, %v3403_v43  ;;  %v3406_v21 = vadd.f32 %v7067_v17, %v3374_v31  ;;  %v7234_v53 = vpop.f32.mrf.mxu0  ;;  %v3013_v50 = vld [vmem:[#allocation3 + $0xc8] sm:$0xff] }
 0x2ed   : > { %v5553_v8 = vpop.f32.mrf.mxu1  ;;  %v3372_v35 = vld [vmem:[#allocation3 + $0x68] sm:$0xff] }
 0x2ee   : > { %3069 = vst.msk [vmem:[#allocation3 + $0x88] sm:$0xff] %vm777_vm0, %v3037_v44  ;;  %v3042_v19 = vadd.f32 %v5553_v8, %v3010_v39  ;;  %3438 = vst.msk [vmem:[#allocation3 + $0x78] sm:$0xff] %vm777_vm0, %v3406_v21  ;;  %v3404_v1 = vadd.f32 %v3372_v35, %v7072_v58  ;;  %v3018_v21 = vld [vmem:[#allocation3 + $0xf0] sm:$0xff]  ;;  %v7242_v35 = vpop.f32.mrf.mxu0 }
 0x2ef   : > { %v2941_v20 = vpop.f32.mrf.mxu1  ;;  %v3377_v45 = vld [vmem:[#allocation3 + $0x90] sm:$0xff] }
 0x2f0   : > { %3074 = vst.msk [vmem:[#allocation3 + $0xb0] sm:$0xff] %vm777_vm0, %v3042_v19  ;;  %v3040_v48 = vadd.f32 %v3008_v26, %v2941_v20  ;;  %3436 = vst.msk [vmem:[#allocation3 + $0x68] sm:$0xff] %vm777_vm0, %v3404_v1  ;;  %v3409_v17 = vadd.f32 %v7077_v47, %v3377_v45  ;;  %v3016_v1 = vld [vmem:[#allocation3 + $0xe0] sm:$0xff] }
 0x2f1   : > { %v5554_v2 = vpop.f32.mrf.mxu1  ;;  %v3375_v41 = vld [vmem:[#allocation3 + $0x80] sm:$0xff] }
 0x2f2   : > { %3072 = vst.msk [vmem:[#allocation3 + $0xa0] sm:$0xff] %vm777_vm0, %v3040_v48  ;;  %v3043_v13 = vadd.f32 %v5554_v2, %v3011_v59  ;;  %3441 = vst.msk [vmem:[#allocation3 + $0x90] sm:$0xff] %vm777_vm0, %v3409_v17  ;;  %v3407_v58 = vadd.f32 %v3375_v41, %v7082_v27  ;;  %v3019_v48 = vld [vmem:[#allocation3 + $0xf8] sm:$0xff]  ;;  %v7250_v59 = vpop.f32.mrf.mxu0 }
 0x2f3   : > { %v2944_v7 = vpop.f32.mrf.mxu1  ;;  %v3378_v33 = vld [vmem:[#allocation3 + $0x98] sm:$0xff] }
 0x2f4   : > { %3075 = vst.msk [vmem:[#allocation3 + $0xb8] sm:$0xff] %vm777_vm0, %v3043_v13  ;;  %v3041_v40 = vadd.f32 %v3009_v10, %v2944_v7  ;;  %3439 = vst.msk [vmem:[#allocation3 + $0x80] sm:$0xff] %vm777_vm0, %v3407_v58  ;;  %v3410_v47 = vadd.f32 %v7087_v11, %v3378_v33  ;;  %v3017_v13 = vld [vmem:[#allocation3 + $0xe8] sm:$0xff]  ;;  %v3732_v33 = vld [vmem:[#allocation3 + $0x10] sm:$0xff] }
 0x2f5   : > { %v5557_v60 = vpop.f32.mrf.mxu1  ;;  %v3376_v15 = vld [vmem:[#allocation3 + $0x88] sm:$0xff] }
 0x2f6   : > { %3073 = vst.msk [vmem:[#allocation3 + $0xa8] sm:$0xff] %vm777_vm0, %v3041_v40  ;;  %v3046_v25 = vadd.f32 %v5557_v60, %v3014_v37  ;;  %3442 = vst.msk [vmem:[#allocation3 + $0x98] sm:$0xff] %vm777_vm0, %v3410_v47  ;;  %v3408_v27 = vadd.f32 %v3376_v15, %v7092_v46  ;;  %v7258_v60 = vpop.f32.mrf.mxu0  ;;  %v3730_v15 = vld [vmem:[#allocation3] sm:$0xff] }
 0x2f7   : > { %v2957_v29 = vpop.f32.mrf.mxu1  ;;  %v3381_v32 = vld [vmem:[#allocation3 + $0xb0] sm:$0xff] }
 0x2f8   : > { %3078 = vst.msk [vmem:[#allocation3 + $0xd0] sm:$0xff] %vm777_vm0, %v3046_v25  ;;  %v3044_v56 = vadd.f32 %v3012_v9, %v2957_v29  ;;  %3440 = vst.msk [vmem:[#allocation3 + $0x88] sm:$0xff] %vm777_vm0, %v3408_v27  ;;  %v3413_v11 = vadd.f32 %v7097_v62, %v3381_v32  ;;  %v3733_v9 = vld [vmem:[#allocation3 + $0x18] sm:$0xff] }
 0x2f9   : > { %v5558_v3 = vpop.f32.mrf.mxu1  ;;  %v3379_v52 = vld [vmem:[#allocation3 + $0xa0] sm:$0xff] }
 0x2fa   : > { %3076 = vst.msk [vmem:[#allocation3 + $0xc0] sm:$0xff] %vm777_vm0, %v3044_v56  ;;  %v3047_v16 = vadd.f32 %v5558_v3, %v3015_v54  ;;  %3445 = vst.msk [vmem:[#allocation3 + $0xb0] sm:$0xff] %vm777_vm0, %v3413_v11  ;;  %v3411_v46 = vadd.f32 %v3379_v52, %v7102_v6  ;;  %v7266_v11 = vpop.f32.mrf.mxu0  ;;  %v3731_v54 = vld [vmem:[#allocation3 + $0x8] sm:$0xff] }
 0x2fb   : > { %v2960_v43 = vpop.f32.mrf.mxu1  ;;  %v3382_v55 = vld [vmem:[#allocation3 + $0xb8] sm:$0xff] }
 0x2fc   : > { %3079 = vst.msk [vmem:[#allocation3 + $0xd8] sm:$0xff] %vm777_vm0, %v3047_v16  ;;  %v3045_v31 = vadd.f32 %v3013_v50, %v2960_v43  ;;  %3443 = vst.msk [vmem:[#allocation3 + $0xa0] sm:$0xff] %vm777_vm0, %v3411_v46  ;;  %v3414_v62 = vadd.f32 %v7107_v49, %v3382_v55  ;;  %v3736_v43 = vld [vmem:[#allocation3 + $0x30] sm:$0xff] }
 0x2fd   : > { %v5561_v44 = vpop.f32.mrf.mxu1  ;;  %v3380_v8 = vld [vmem:[#allocation3 + $0xa8] sm:$0xff] }
 0x2fe   : > { %3077 = vst.msk [vmem:[#allocation3 + $0xc8] sm:$0xff] %vm777_vm0, %v3045_v31  ;;  %v3050_v39 = vadd.f32 %v5561_v44, %v3018_v21  ;;  %3446 = vst.msk [vmem:[#allocation3 + $0xb8] sm:$0xff] %vm777_vm0, %v3414_v62  ;;  %v3412_v6 = vadd.f32 %v3380_v8, %v7112_v57  ;;  %v7274_v31 = vpop.f32.mrf.mxu0  ;;  %v3734_v21 = vld [vmem:[#allocation3 + $0x20] sm:$0xff] }
 0x2ff   : > { %v2973_v19 = vpop.f32.mrf.mxu1  ;;  %v3385_v20 = vld [vmem:[#allocation3 + $0xd0] sm:$0xff] }
 0x300   : > { %3082 = vst.msk [vmem:[#allocation3 + $0xf0] sm:$0xff] %vm777_vm0, %v3050_v39  ;;  %v3048_v26 = vadd.f32 %v3016_v1, %v2973_v19  ;;  %3444 = vst.msk [vmem:[#allocation3 + $0xa8] sm:$0xff] %vm777_vm0, %v3412_v6  ;;  %v3417_v49 = vadd.f32 %v7117_v51, %v3385_v20  ;;  %v3737_v19 = vld [vmem:[#allocation3 + $0x38] sm:$0xff]  ;;  %v7282_v20 = vpop.f32.mrf.mxu0 }
 0x301   : > { %v5562_v45 = vpop.f32.mrf.mxu1  ;;  %v3383_v17 = vld [vmem:[#allocation3 + $0xc0] sm:$0xff] }
 0x302   : > { %3080 = vst.msk [vmem:[#allocation3 + $0xe0] sm:$0xff] %vm777_vm0, %v3048_v26  ;;  %v3051_v2 = vadd.f32 %v5562_v45, %v3019_v48  ;;  %3449 = vst.msk [vmem:[#allocation3 + $0xd0] sm:$0xff] %vm777_vm0, %v3417_v49  ;;  %v3415_v57 = vadd.f32 %v3383_v17, %v7122_v36 }
 0x303   : > { %v2976_v41 = vpop.f32.mrf.mxu1  ;;  %v3386_v58 = vld [vmem:[#allocation3 + $0xd8] sm:$0xff] }
 0x304   : > { %3083 = vst.msk [vmem:[#allocation3 + $0xf8] sm:$0xff] %vm777_vm0, %v3051_v2  ;;  %v3049_v7 = vadd.f32 %v3017_v13, %v2976_v41  ;;  %3447 = vst.msk [vmem:[#allocation3 + $0xc0] sm:$0xff] %vm777_vm0, %v3415_v57  ;;  %v3418_v51 = vadd.f32 %v7127_v14, %v3386_v58  ;;  %v3740_v57 = vld [vmem:[#allocation3 + $0x50] sm:$0xff]  ;;  %v7290_v13 = vpop.f32.mrf.mxu0 }
 0x305   : > { %v5605_v10 = vpop.f32.mrf.mxu1  ;;  %v3384_v40 = vld [vmem:[#allocation3 + $0xc8] sm:$0xff] }
 0x306   : > { %3081 = vst.msk [vmem:[#allocation3 + $0xe8] sm:$0xff] %vm777_vm0, %v3049_v7  ;;  %v3764_v47 = vadd.f32 %v5605_v10, %v3732_v33  ;;  %3450 = vst.msk [vmem:[#allocation3 + $0xd8] sm:$0xff] %vm777_vm0, %v3418_v51  ;;  %v3416_v36 = vadd.f32 %v3384_v40, %v7132_v5  ;;  %v3738_v51 = vld [vmem:[#allocation3 + $0x40] sm:$0xff] }
 0x307   : > { %v3603_v37 = vpop.f32.mrf.mxu1  ;;  %v3389_v25 = vld [vmem:[#allocation3 + $0xf0] sm:$0xff] }
 0x308   : > { %3796 = vst.msk [vmem:[#allocation3 + $0x10] sm:$0xff] %vm777_vm0, %v3764_v47  ;;  %v3762_v27 = vadd.f32 %v3730_v15, %v3603_v37  ;;  %3448 = vst.msk [vmem:[#allocation3 + $0xc8] sm:$0xff] %vm777_vm0, %v3416_v36  ;;  %v3421_v14 = vadd.f32 %v7137_v63, %v3389_v25  ;;  %v3741_v47 = vld [vmem:[#allocation3 + $0x58] sm:$0xff]  ;;  %v7301_v37 = vld [vmem:[%s7670_s5] ss:$0 sm:$0xff] }
 0x309   : > { %v5606_v29 = vpop.f32.mrf.mxu1  ;;  %v3387_v32 = vld [vmem:[#allocation3 + $0xe0] sm:$0xff] }
 0x30a   : > { %3794 = vst.msk [vmem:[#allocation3] sm:$0xff] %vm777_vm0, %v3762_v27  ;;  %v3765_v56 = vadd.f32 %v5606_v29, %v3733_v9  ;;  %3453 = vst.msk [vmem:[#allocation3 + $0xf0] sm:$0xff] %vm777_vm0, %v3421_v14  ;;  %v3419_v5 = vadd.f32 %v3387_v32, %v7142_v12  ;;  %v3739_v14 = vld [vmem:[#allocation3 + $0x48] sm:$0xff] }
 0x30b   : > { %v3606_v3 = vpop.f32.mrf.mxu1  ;;  %v3390_v52 = vld [vmem:[#allocation3 + $0xf8] sm:$0xff] }
 0x30c   : > { %3797 = vst.msk [vmem:[#allocation3 + $0x18] sm:$0xff] %vm777_vm0, %v3765_v56  ;;  %v3763_v16 = vadd.f32 %v3731_v54, %v3606_v3  ;;  %3451 = vst.msk [vmem:[#allocation3 + $0xe0] sm:$0xff] %vm777_vm0, %v3419_v5  ;;  %v3422_v63 = vadd.f32 %v7147_v61, %v3390_v52  ;;  %v3744_v3 = vld [vmem:[#allocation3 + $0x70] sm:$0xff] }
 0x30d   : > { %v5609_v46 = vpop.f32.mrf.mxu1  ;;  %v3388_v50 = vld [vmem:[#allocation3 + $0xe8] sm:$0xff] }
 0x30e   : > { %3795 = vst.msk [vmem:[#allocation3 + $0x8] sm:$0xff] %vm777_vm0, %v3763_v16  ;;  %v3768_v55 = vadd.f32 %v5609_v46, %v3736_v43  ;;  %3454 = vst.msk [vmem:[#allocation3 + $0xf8] sm:$0xff] %vm777_vm0, %v3422_v63  ;;  %v3420_v12 = vadd.f32 %v3388_v50, %v7152_v18 }
 0x30f   : > { %v4103_v62 = vld [vmem:[#allocation3 + $0x10] sm:$0xff]  ;;  %v3619_v44 = vpop.f32.mrf.mxu1 }
 0x310   : > { %v4135_v8 = vadd.f32 %v7157_v34, %v4103_v62  ;;  %3800 = vst.msk [vmem:[#allocation3 + $0x30] sm:$0xff] %vm777_vm0, %v3768_v55  ;;  %v3766_v61 = vadd.f32 %v3734_v21, %v3619_v44  ;;  %3452 = vst.msk [vmem:[#allocation3 + $0xe8] sm:$0xff] %vm777_vm0, %v3420_v12  ;;  %v3735_v34 = vld [vmem:[#allocation3 + $0x28] sm:$0xff]  ;;  %v3742_v12 = vld [vmem:[#allocation3 + $0x60] sm:$0xff] }
 0x311   : > { %v4101_v39 = vld [vmem:[#allocation3] sm:$0xff]  ;;  %v5610_v6 = vpop.f32.mrf.mxu1 }
 0x312   : > { %4167 = vst.msk [vmem:[#allocation3 + $0x10] sm:$0xff] %vm777_vm0, %v4135_v8  ;;  %v4133_v1 = vadd.f32 %v4101_v39, %v7162_v28  ;;  %3798 = vst.msk [vmem:[#allocation3 + $0x20] sm:$0xff] %vm777_vm0, %v3766_v61  ;;  %v3769_v18 = vadd.f32 %v5610_v6, %v3737_v19  ;;  %v3745_v6 = vld [vmem:[#allocation3 + $0x78] sm:$0xff] }
 0x313   : > { %v4104_v26 = vld [vmem:[#allocation3 + $0x18] sm:$0xff]  ;;  %v3622_v49 = vpop.f32.mrf.mxu1 }
 0x314   : > { %4165 = vst.msk [vmem:[#allocation3] sm:$0xff] %vm777_vm0, %v4133_v1  ;;  %v4136_v45 = vadd.f32 %v7170_v42, %v4104_v26  ;;  %3801 = vst.msk [vmem:[#allocation3 + $0x38] sm:$0xff] %vm777_vm0, %v3769_v18  ;;  %v3767_v48 = vadd.f32 %v3735_v34, %v3622_v49 }
 0x315   : > { %v4102_v17 = vld [vmem:[#allocation3 + $0x8] sm:$0xff]  ;;  %v5613_v2 = vpop.f32.mrf.mxu1 }
 0x316   : > { %4168 = vst.msk [vmem:[#allocation3 + $0x18] sm:$0xff] %vm777_vm0, %v4136_v45  ;;  %v4134_v28 = vadd.f32 %v4102_v17, %v7178_v23  ;;  %3799 = vst.msk [vmem:[#allocation3 + $0x28] sm:$0xff] %vm777_vm0, %v3767_v48  ;;  %v3772_v41 = vadd.f32 %v5613_v2, %v3740_v57  ;;  %v3743_v17 = vld [vmem:[#allocation3 + $0x68] sm:$0xff] }
 0x317   : > { %v4107_v58 = vld [vmem:[#allocation3 + $0x30] sm:$0xff]  ;;  %v3635_v7 = vpop.f32.mrf.mxu1 }
 0x318   : > { %4166 = vst.msk [vmem:[#allocation3 + $0x8] sm:$0xff] %vm777_vm0, %v4134_v28  ;;  %v4139_v42 = vadd.f32 %v7186_v4, %v4107_v58  ;;  %3804 = vst.msk [vmem:[#allocation3 + $0x50] sm:$0xff] %vm777_vm0, %v3772_v41  ;;  %v3770_v10 = vadd.f32 %v3738_v51, %v3635_v7  ;;  %v7303_v4 = vpop.f32.mrf.mxu0 }
 0x319   : > { %v4105_v33 = vld [vmem:[#allocation3 + $0x20] sm:$0xff]  ;;  %v5614_v40 = vpop.f32.mrf.mxu1  ;;  %v4199_v15 = vld [vmem:[#allocation3 + $0x10] sm:$0xff] }
 0x31a   : > { %4171 = vst.msk [vmem:[#allocation3 + $0x30] sm:$0xff] %vm777_vm0, %v4139_v42  ;;  %v4137_v23 = vadd.f32 %v4105_v33, %v7194_v0  ;;  %3802 = vst.msk [vmem:[#allocation3 + $0x40] sm:$0xff] %vm777_vm0, %v3770_v10  ;;  %v3773_v36 = vadd.f32 %v5614_v40, %v3741_v47  ;;  %v4238_v52 = vmul.f32 %v7301_v37, %v4199_v15  ;;  %v7319_v43 = vpop.f32.mrf.mxu0  ;;  %v3748_v10 = vld [vmem:[#allocation3 + $0x90] sm:$0xff] }
 0x31b   : > { %v4108_v25 = vld [vmem:[#allocation3 + $0x38] sm:$0xff]  ;;  %v3638_v27 = vpop.f32.mrf.mxu1  ;;  %v4197_v29 = vld [vmem:[#allocation3] sm:$0xff] }
 0x31c   : > { %4169 = vst.msk [vmem:[#allocation3 + $0x20] sm:$0xff] %vm777_vm0, %v4137_v23  ;;  %v4140_v9 = vadd.f32 %v7202_v38, %v4108_v25  ;;  %3805 = vst.msk [vmem:[#allocation3 + $0x58] sm:$0xff] %vm777_vm0, %v3773_v36  ;;  %v3771_v0 = vadd.f32 %v3739_v14, %v3638_v27  ;;  %v4236_v32 = vmul.f32 %v7301_v37, %v4197_v29  ;;  %v7316_v38 = vld [vmem:[%s7671_s6] ss:$0 sm:$0xff]  ;;  %v7332_v34 = vpop.f32.mrf.mxu0 }
 0x31d   : > { %v4106_v56 = vld [vmem:[#allocation3 + $0x28] sm:$0xff]  ;;  %v5617_v5 = vpop.f32.mrf.mxu1  ;;  %v4200_v54 = vld [vmem:[#allocation3 + $0x18] sm:$0xff]  ;;  %v4277_v19 = vadd.f32 %v7316_v38, %v4238_v52  ;;  %v3746_v14 = vld [vmem:[#allocation3 + $0x80] sm:$0xff] }
 0x31e   : > { %4172 = vst.msk [vmem:[#allocation3 + $0x38] sm:$0xff] %vm777_vm0, %v4140_v9  ;;  %v4138_v16 = vadd.f32 %v4106_v56, %v7210_v24  ;;  %3803 = vst.msk [vmem:[#allocation3 + $0x48] sm:$0xff] %vm777_vm0, %v3771_v0  ;;  %v3776_v63 = vadd.f32 %v5617_v5, %v3744_v3  ;;  %v4239_v46 = vmul.f32 %v7301_v37, %v4200_v54  ;;  %v7342_v15 = vpop.f32.mrf.mxu0  ;;  %v3749_v52 = vld [vmem:[#allocation3 + $0x98] sm:$0xff] }
 0x31f   : > { %v4111_v50 = vld [vmem:[#allocation3 + $0x50] sm:$0xff]  ;;  %v3651_v55 = vpop.f32.mrf.mxu1  ;;  %v4198_v62 = vld [vmem:[#allocation3 + $0x8] sm:$0xff]  ;;  %v4275_v44 = vadd.f32 %v7316_v38, %v4236_v32  ;;  %v4309_v33 = vmax.f32 %v4277_v19, 0.0 }
 0x320   : > { %4170 = vst.msk [vmem:[#allocation3 + $0x28] sm:$0xff] %vm777_vm0, %v4138_v16  ;;  %v4143_v24 = vadd.f32 %v7218_v22, %v4111_v50  ;;  %3808 = vst.msk [vmem:[#allocation3 + $0x70] sm:$0xff] %vm777_vm0, %v3776_v63  ;;  %v3774_v21 = vadd.f32 %v3742_v12, %v3651_v55  ;;  %v4237_v8 = vmul.f32 %v7301_v37, %v4198_v62  ;;  %v7358_v12 = vpop.f32.mrf.mxu0 }
 0x321   : > { %v4109_v61 = vld [vmem:[#allocation3 + $0x40] sm:$0xff]  ;;  %v5618_v39 = vpop.f32.mrf.mxu1  ;;  %v4278_v1 = vadd.f32 %v7316_v38, %v4239_v46  ;;  %v4203_v49 = vld [vmem:[#allocation3 + $0x30] sm:$0xff]  ;;  %v4307_v2 = vmax.f32 %v4275_v44, 0.0 }
 0x322   : > { %4175 = vst.msk [vmem:[#allocation3 + $0x50] sm:$0xff] %vm777_vm0, %v4143_v24  ;;  %v4141_v18 = vadd.f32 %v4109_v61, %v7226_v30  ;;  %3806 = vst.msk [vmem:[#allocation3 + $0x60] sm:$0xff] %vm777_vm0, %v3774_v21  ;;  %v3777_v26 = vadd.f32 %v5618_v39, %v3745_v6  ;;  %v4276_v22 = vadd.f32 %v7316_v38, %v4237_v8  ;;  %v3747_v24 = vld [vmem:[#allocation3 + $0x88] sm:$0xff] }
 0x323   : > { %v4112_v45 = vld [vmem:[#allocation3 + $0x58] sm:$0xff]  ;;  %v3654_v48 = vpop.f32.mrf.mxu1  ;;  %v4310_v57 = vmax.f32 %v4278_v1, 0.0  ;;  %v4201_v28 = vld [vmem:[#allocation3 + $0x20] sm:$0xff]  ;;  %v4242_v47 = vmul.f32 %v7301_v37, %v4203_v49 }
 0x324   : > { %4173 = vst.msk [vmem:[#allocation3 + $0x40] sm:$0xff] %vm777_vm0, %v4141_v18  ;;  %v4144_v41 = vadd.f32 %v7234_v53, %v4112_v45  ;;  %3809 = vst.msk [vmem:[#allocation3 + $0x78] sm:$0xff] %vm777_vm0, %v3777_v26  ;;  %v3775_v30 = vadd.f32 %v3743_v17, %v3654_v48  ;;  %v4308_v58 = vmax.f32 %v4276_v22, 0.0  ;;  %v4240_v7 = vmul.f32 %v7301_v37, %v4201_v28  ;;  %v3752_v26 = vld [vmem:[#allocation3 + $0xb0] sm:$0xff] }
 0x325   : > { %v4110_v51 = vld [vmem:[#allocation3 + $0x48] sm:$0xff]  ;;  %v5621_v42 = vpop.f32.mrf.mxu1  ;;  %v4204_v40 = vld [vmem:[#allocation3 + $0x38] sm:$0xff]  ;;  %v4340_v29 = vpack.c.bf16 %v4310_v57, %v4309_v33  ;;  %v4281_v16 = vadd.f32 %v7316_v38, %v4242_v47 }
 0x326   : > { %4176 = vst.msk [vmem:[#allocation3 + $0x58] sm:$0xff] %vm777_vm0, %v4144_v41  ;;  %v4142_v23 = vadd.f32 %v4110_v51, %v7242_v35  ;;  %3807 = vst.msk [vmem:[#allocation3 + $0x68] sm:$0xff] %vm777_vm0, %v3775_v30  ;;  %v3780_v53 = vadd.f32 %v5621_v42, %v3748_v10  ;;  %v4339_v36 = vpack.c.bf16 %v4308_v58, %v4307_v2  ;;  %v7368_v2 = vpop.f32.mrf.mxu0  ;;  %v3750_v41 = vld [vmem:[#allocation3 + $0xa0] sm:$0xff]  ;;  %v3753_v47 = vld [vmem:[#allocation3 + $0xb8] sm:$0xff] }
 0x327   : > { %v4115_v25 = vld [vmem:[#allocation3 + $0x70] sm:$0xff]  ;;  %v3667_v27 = vpop.f32.mrf.mxu1  ;;  %v4202_v9 = vld [vmem:[#allocation3 + $0x28] sm:$0xff]  ;;  %v4279_v0 = vadd.f32 %v7316_v38, %v4240_v7  ;;  %v4243_v32 = vmul.f32 %v7301_v37, %v4204_v40  ;;  %v4313_v22 = vmax.f32 %v4281_v16, 0.0 }
 0x328   : > { %4174 = vst.msk [vmem:[#allocation3 + $0x48] sm:$0xff] %vm777_vm0, %v4142_v23  ;;  %v4147_v56 = vadd.f32 %v7250_v59, %v4115_v25  ;;  %3812 = vst.msk [vmem:[#allocation3 + $0x90] sm:$0xff] %vm777_vm0, %v3780_v53  ;;  %v3778_v35 = vadd.f32 %v3746_v14, %v3667_v27  ;;  %5675 = vmatprep.mubr.msk.bf16.mxu1 %vm777_vm0, %v4339_v36  ;;  %v4241_v5 = vmul.f32 %v7301_v37, %v4202_v9  ;;  %v7384_v14 = vpop.f32.mrf.mxu0 }
 0x329   : > { %v4113_v3 = vld [vmem:[#allocation3 + $0x60] sm:$0xff]  ;;  %v5622_v54 = vpop.f32.mrf.mxu1  ;;  %5676 = vmatmul.mubr.msk.bf16.vlgmr.msra.gmra.mxu1 %vm777_vm0, %v4340_v29  ;;  %v4282_v63 = vadd.f32 %v7316_v38, %v4243_v32  ;;  %v4207_v55 = vld [vmem:[#allocation3 + $0x50] sm:$0xff]  ;;  %v4311_v21 = vmax.f32 %v4279_v0, 0.0  ;;  %v3751_v0 = vld [vmem:[#allocation3 + $0xa8] sm:$0xff] }
 0x32a   : > { %4179 = vst.msk [vmem:[#allocation3 + $0x70] sm:$0xff] %vm777_vm0, %v4147_v56  ;;  %v4145_v59 = vadd.f32 %v4113_v3, %v7258_v60  ;;  %3810 = vst.msk [vmem:[#allocation3 + $0x80] sm:$0xff] %vm777_vm0, %v3778_v35  ;;  %v3781_v46 = vadd.f32 %v5622_v54, %v3749_v52  ;;  %v4280_v50 = vadd.f32 %v7316_v38, %v4241_v5 }
 0x32b   : > { %v4116_v62 = vld [vmem:[#allocation3 + $0x78] sm:$0xff]  ;;  %v3670_v44 = vpop.f32.mrf.mxu1  ;;  %v4314_v8 = vmax.f32 %v4282_v63, 0.0  ;;  %v4205_v61 = vld [vmem:[#allocation3 + $0x40] sm:$0xff]  ;;  %v4246_v45 = vmul.f32 %v7301_v37, %v4207_v55  ;;  %v3756_v63 = vld [vmem:[#allocation3 + $0xd0] sm:$0xff] }
 0x32c   : > { %4177 = vst.msk [vmem:[#allocation3 + $0x60] sm:$0xff] %vm777_vm0, %v4145_v59  ;;  %v4148_v39 = vadd.f32 %v7266_v11, %v4116_v62  ;;  %3813 = vst.msk [vmem:[#allocation3 + $0x98] sm:$0xff] %vm777_vm0, %v3781_v46  ;;  %v3779_v60 = vadd.f32 %v3747_v24, %v3670_v44  ;;  %v4312_v6 = vmax.f32 %v4280_v50, 0.0  ;;  %v4244_v19 = vmul.f32 %v7301_v37, %v4205_v61  ;;  %v7394_v44 = vpop.f32.mrf.mxu0 }
 0x32d   : > { %v4114_v1 = vld [vmem:[#allocation3 + $0x68] sm:$0xff]  ;;  %v5625_v18 = vpop.f32.mrf.mxu1  ;;  %v4208_v49 = vld [vmem:[#allocation3 + $0x58] sm:$0xff]  ;;  %v4342_v30 = vpack.c.bf16 %v4314_v8, %v4313_v22  ;;  %v4285_v23 = vadd.f32 %v7316_v38, %v4246_v45  ;;  %v3754_v8 = vld [vmem:[#allocation3 + $0xc0] sm:$0xff] }
 0x32e   : > { %4180 = vst.msk [vmem:[#allocation3 + $0x78] sm:$0xff] %vm777_vm0, %v4148_v39  ;;  %v4146_v48 = vadd.f32 %v4114_v1, %v7274_v31  ;;  %3811 = vst.msk [vmem:[#allocation3 + $0x88] sm:$0xff] %vm777_vm0, %v3779_v60  ;;  %v3784_v11 = vadd.f32 %v5625_v18, %v3752_v26  ;;  %v4341_v17 = vpack.c.bf16 %v4312_v6, %v4311_v21  ;;  %v3757_v22 = vld [vmem:[#allocation3 + $0xd8] sm:$0xff] }
 0x32f   : > { %v4119_v57 = vld [vmem:[#allocation3 + $0x90] sm:$0xff]  ;;  %v3683_v28 = vpop.f32.mrf.mxu1  ;;  %v4206_v58 = vld [vmem:[#allocation3 + $0x48] sm:$0xff]  ;;  %v4283_v7 = vadd.f32 %v7316_v38, %v4244_v19  ;;  %v4247_v51 = vmul.f32 %v7301_v37, %v4208_v49  ;;  %v4317_v59 = vmax.f32 %v4285_v23, 0.0 }
 0x330   : > { %4178 = vst.msk [vmem:[#allocation3 + $0x68] sm:$0xff] %vm777_vm0, %v4146_v48  ;;  %v4151_v42 = vadd.f32 %v7282_v20, %v4119_v57  ;;  %3816 = vst.msk [vmem:[#allocation3 + $0xb0] sm:$0xff] %vm777_vm0, %v3784_v11  ;;  %v3782_v31 = vadd.f32 %v3750_v41, %v3683_v28  ;;  %5679 = vmatprep.mubr.msk.bf16.mxu1 %vm777_vm0, %v4341_v17  ;;  %v4245_v10 = vmul.f32 %v7301_v37, %v4206_v58  ;;  %v5666_v57 = vpop.f32.mrf.mxu0 }
 0x331   : > { %v4117_v33 = vld [vmem:[#allocation3 + $0x80] sm:$0xff]  ;;  %v5626_v40 = vpop.f32.mrf.mxu1  ;;  %5680 = vmatmul.mubr.msk.bf16.gmra.mxu1 %vm777_vm0, %v4342_v30  ;;  %v4286_v53 = vadd.f32 %v7316_v38, %v4247_v51  ;;  %v4211_v27 = vld [vmem:[#allocation3 + $0x70] sm:$0xff]  ;;  %v4315_v32 = vmax.f32 %v4283_v7, 0.0  ;;  %v3755_v30 = vld [vmem:[#allocation3 + $0xc8] sm:$0xff] }
 0x332   : > { %4183 = vst.msk [vmem:[#allocation3 + $0x90] sm:$0xff] %vm777_vm0, %v4151_v42  ;;  %v4149_v20 = vadd.f32 %v4117_v33, %v7290_v13  ;;  %3814 = vst.msk [vmem:[#allocation3 + $0xa0] sm:$0xff] %vm777_vm0, %v3782_v31  ;;  %v3785_v36 = vadd.f32 %v5626_v40, %v3753_v47  ;;  %v4284_v25 = vadd.f32 %v7316_v38, %v4245_v10  ;;  %v3760_v47 = vld [vmem:[#allocation3 + $0xf0] sm:$0xff] }
 0x333   : > { %v4120_v29 = vld [vmem:[#allocation3 + $0x98] sm:$0xff]  ;;  %v3686_v9 = vpop.f32.mrf.mxu1  ;;  %v4318_v56 = vmax.f32 %v4286_v53, 0.0  ;;  %v4209_v35 = vld [vmem:[#allocation3 + $0x60] sm:$0xff]  ;;  %v4250_v50 = vmul.f32 %v7301_v37, %v4211_v27  ;;  %v4073_v27 = vpop.f32.mrf.mxu0 }
 0x334   : > { %4181 = vst.msk [vmem:[#allocation3 + $0x80] sm:$0xff] %vm777_vm0, %v4149_v20  ;;  %v4152_v5 = vadd.f32 %v7303_v4, %v4120_v29  ;;  %3817 = vst.msk [vmem:[#allocation3 + $0xb8] sm:$0xff] %vm777_vm0, %v3785_v36  ;;  %v3783_v13 = vadd.f32 %v3751_v0, %v3686_v9  ;;  %v4316_v3 = vmax.f32 %v4284_v25, 0.0  ;;  %v4248_v54 = vmul.f32 %v7301_v37, %v4209_v35  ;;  %v3758_v0 = vld [vmem:[#allocation3 + $0xe0] sm:$0xff] }
 0x335   : > { %v4118_v52 = vld [vmem:[#allocation3 + $0x88] sm:$0xff]  ;;  %v5629_v16 = vpop.f32.mrf.mxu1  ;;  %v4212_v46 = vld [vmem:[#allocation3 + $0x78] sm:$0xff]  ;;  %v4344_v61 = vpack.c.bf16 %v4318_v56, %v4317_v59  ;;  %v4289_v49 = vadd.f32 %v7316_v38, %v4250_v50 }
 0x336   : > { %4184 = vst.msk [vmem:[#allocation3 + $0x98] sm:$0xff] %vm777_vm0, %v4152_v5  ;;  %v4150_v55 = vadd.f32 %v4118_v52, %v7319_v43  ;;  %3815 = vst.msk [vmem:[#allocation3 + $0xa8] sm:$0xff] %vm777_vm0, %v3783_v13  ;;  %v3788_v4 = vadd.f32 %v5629_v16, %v3756_v63  ;;  %v4343_v62 = vpack.c.bf16 %v4316_v3, %v4315_v32  ;;  %v3761_v16 = vld [vmem:[#allocation3 + $0xf8] sm:$0xff]  ;;  %v5669_v63 = vpop.f32.mrf.mxu0 }
 0x337   : > { %v4123_v24 = vld [vmem:[#allocation3 + $0xb0] sm:$0xff]  ;;  %v3699_v21 = vpop.f32.mrf.mxu1  ;;  %v4210_v39 = vld [vmem:[#allocation3 + $0x68] sm:$0xff]  ;;  %v4287_v60 = vadd.f32 %v7316_v38, %v4248_v54  ;;  %v4251_v6 = vmul.f32 %v7301_v37, %v4212_v46  ;;  %v4321_v23 = vmax.f32 %v4289_v49, 0.0 }
 0x338   : > { %4182 = vst.msk [vmem:[#allocation3 + $0x88] sm:$0xff] %vm777_vm0, %v4150_v55  ;;  %v4155_v19 = vadd.f32 %v7332_v34, %v4123_v24  ;;  %3820 = vst.msk [vmem:[#allocation3 + $0xd0] sm:$0xff] %vm777_vm0, %v3788_v4  ;;  %v3786_v43 = vadd.f32 %v3754_v8, %v3699_v21  ;;  %5683 = vmatprep.mubr.msk.bf16.mxu1 %vm777_vm0, %v4343_v62  ;;  %v4249_v1 = vmul.f32 %v7301_v37, %v4210_v39  ;;  %v3759_v21 = vld [vmem:[#allocation3 + $0xe8] sm:$0xff] }
 0x339   : > { %v4121_v18 = vld [vmem:[#allocation3 + $0xa0] sm:$0xff]  ;;  %v5630_v26 = vpop.f32.mrf.mxu1  ;;  %5684 = vmatmul.mubr.msk.bf16.gmra.mxu1 %vm777_vm0, %v4344_v61  ;;  %v4290_v45 = vadd.f32 %v7316_v38, %v4251_v6  ;;  %v4215_v17 = vld [vmem:[#allocation3 + $0x90] sm:$0xff]  ;;  %v4319_v58 = vmax.f32 %v4287_v60, 0.0 }
 0x33a   : > { %4187 = vst.msk [vmem:[#allocation3 + $0xb0] sm:$0xff] %vm777_vm0, %v4155_v19  ;;  %v4153_v34 = vadd.f32 %v4121_v18, %v7342_v15  ;;  %3818 = vst.msk [vmem:[#allocation3 + $0xc0] sm:$0xff] %vm777_vm0, %v3786_v43  ;;  %v3789_v48 = vadd.f32 %v5630_v26, %v3757_v22  ;;  %v4288_v11 = vadd.f32 %v7316_v38, %v4249_v1  ;;  %v4086_v1 = vpop.f32.mrf.mxu0 }
 0x33b   : > { %v4124_v28 = vld [vmem:[#allocation3 + $0xb8] sm:$0xff]  ;;  %v3702_v41 = vpop.f32.mrf.mxu1  ;;  %v4322_v7 = vmax.f32 %v4290_v45, 0.0  ;;  %v4213_v51 = vld [vmem:[#allocation3 + $0x80] sm:$0xff]  ;;  %v4254_v20 = vmul.f32 %v7301_v37, %v4215_v17 }
 0x33c   : > { %4185 = vst.msk [vmem:[#allocation3 + $0xa0] sm:$0xff] %vm777_vm0, %v4153_v34  ;;  %v4156_v42 = vadd.f32 %v7358_v12, %v4124_v28  ;;  %3821 = vst.msk [vmem:[#allocation3 + $0xd8] sm:$0xff] %vm777_vm0, %v3789_v48  ;;  %v3787_v15 = vadd.f32 %v3755_v30, %v3702_v41  ;;  %v4320_v31 = vmax.f32 %v4288_v11, 0.0  ;;  %v4252_v10 = vmul.f32 %v7301_v37, %v4213_v51 }
 0x33d   : > { %v4122_v33 = vld [vmem:[#allocation3 + $0xa8] sm:$0xff]  ;;  %v5633_v40 = vpop.f32.mrf.mxu1  ;;  %v4216_v53 = vld [vmem:[#allocation3 + $0x98] sm:$0xff]  ;;  %v4346_v32 = vpack.c.bf16 %v4322_v7, %v4321_v23  ;;  %v4293_v59 = vadd.f32 %v7316_v38, %v4254_v20  ;;  %v5670_v7 = vpop.f32.mrf.mxu0 }
 0x33e   : > { %4188 = vst.msk [vmem:[#allocation3 + $0xb8] sm:$0xff] %vm777_vm0, %v4156_v42  ;;  %v4154_v36 = vadd.f32 %v4122_v33, %v7368_v2  ;;  %3819 = vst.msk [vmem:[#allocation3 + $0xc8] sm:$0xff] %vm777_vm0, %v3787_v15  ;;  %v3792_v12 = vadd.f32 %v5633_v40, %v3760_v47  ;;  %v4345_v25 = vpack.c.bf16 %v4320_v31, %v4319_v58 }
 0x33f   : > { %v4127_v29 = vld [vmem:[#allocation3 + $0xd0] sm:$0xff]  ;;  %v3715_v9 = vpop.f32.mrf.mxu1  ;;  %v4214_v56 = vld [vmem:[#allocation3 + $0x88] sm:$0xff]  ;;  %v4291_v35 = vadd.f32 %v7316_v38, %v4252_v10  ;;  %v4255_v5 = vmul.f32 %v7301_v37, %v4216_v53  ;;  %v4325_v18 = vmax.f32 %v4293_v59, 0.0 }
 0x340   : > { %4186 = vst.msk [vmem:[#allocation3 + $0xa8] sm:$0xff] %vm777_vm0, %v4154_v36  ;;  %v4159_v13 = vadd.f32 %v7384_v14, %v4127_v29  ;;  %3824 = vst.msk [vmem:[#allocation3 + $0xf0] sm:$0xff] %vm777_vm0, %v3792_v12  ;;  %v3790_v2 = vadd.f32 %v3758_v0, %v3715_v9  ;;  %5687 = vmatprep.mubr.msk.bf16.mxu1 %vm777_vm0, %v4345_v25  ;;  %v4253_v3 = vmul.f32 %v7301_v37, %v4214_v56  ;;  %v4089_v36 = vpop.f32.mrf.mxu0 }
 0x341   : > { %v4125_v54 = vld [vmem:[#allocation3 + $0xc0] sm:$0xff]  ;;  %v5634_v52 = vpop.f32.mrf.mxu1  ;;  %5688 = vmatmul.mubr.msk.bf16.gmra.mxu1 %vm777_vm0, %v4346_v32  ;;  %v4294_v46 = vadd.f32 %v7316_v38, %v4255_v5  ;;  %v4219_v4 = vld [vmem:[#allocation3 + $0xb0] sm:$0xff]  ;;  %v4323_v8 = vmax.f32 %v4291_v35, 0.0 }
 0x342   : > { %4191 = vst.msk [vmem:[#allocation3 + $0xd0] sm:$0xff] %vm777_vm0, %v4159_v13  ;;  %v4157_v14 = vadd.f32 %v4125_v54, %v7394_v44  ;;  %3822 = vst.msk [vmem:[#allocation3 + $0xe0] sm:$0xff] %vm777_vm0, %v3790_v2  ;;  %v3793_v50 = vadd.f32 %v5634_v52, %v3761_v16  ;;  %v4292_v55 = vadd.f32 %v7316_v38, %v4253_v3 }
 0x343   : > { %v4128_v62 = vld [vmem:[#allocation3 + $0xd8] sm:$0xff]  ;;  %v3718_v24 = vpop.f32.mrf.mxu1  ;;  %v4326_v61 = vmax.f32 %v4294_v46, 0.0  ;;  %v4217_v39 = vld [vmem:[#allocation3 + $0xa0] sm:$0xff]  ;;  %v4258_v22 = vmul.f32 %v7301_v37, %v4219_v4 }
 0x344   : > { %4189 = vst.msk [vmem:[#allocation3 + $0xc0] sm:$0xff] %vm777_vm0, %v4157_v14  ;;  %v4160_v60 = vadd.f32 %v5666_v57, %v4128_v62  ;;  %3825 = vst.msk [vmem:[#allocation3 + $0xf8] sm:$0xff] %vm777_vm0, %v3793_v50  ;;  %v3791_v6 = vadd.f32 %v3759_v21, %v3718_v24  ;;  %v4324_v19 = vmax.f32 %v4292_v55, 0.0  ;;  %v4256_v44 = vmul.f32 %v7301_v37, %v4217_v39 }
 0x345   : > { %v4126_v43 = vld [vmem:[#allocation3 + $0xc8] sm:$0xff]  ;;  %v4220_v26 = vld [vmem:[#allocation3 + $0xb8] sm:$0xff]  ;;  %v4348_v11 = vpack.c.bf16 %v4326_v61, %v4325_v18  ;;  %v4297_v51 = vadd.f32 %v7316_v38, %v4258_v22 }
 0x346   : > { %4192 = vst.msk [vmem:[#allocation3 + $0xd8] sm:$0xff] %vm777_vm0, %v4160_v60  ;;  %v4158_v49 = vadd.f32 %v4126_v43, %v4073_v27  ;;  %3823 = vst.msk [vmem:[#allocation3 + $0xe8] sm:$0xff] %vm777_vm0, %v3791_v6  ;;  %v4347_v45 = vpack.c.bf16 %v4324_v19, %v4323_v8  ;;  %v4259_v34 = vmul.f32 %v7301_v37, %v4220_v26 }
 0x347   : > { %v4131_v48 = vld [vmem:[#allocation3 + $0xf0] sm:$0xff]  ;;  %v4218_v17 = vld [vmem:[#allocation3 + $0xa8] sm:$0xff]  ;;  %v4295_v41 = vadd.f32 %v7316_v38, %v4256_v44  ;;  %v4329_v25 = vmax.f32 %v4297_v51, 0.0 }
 0x348   : > { %4190 = vst.msk [vmem:[#allocation3 + $0xc8] sm:$0xff] %vm777_vm0, %v4158_v49  ;;  %v4163_v57 = vadd.f32 %v5669_v63, %v4131_v48  ;;  %5691 = vmatprep.mubr.msk.bf16.mxu1 %vm777_vm0, %v4347_v45  ;;  %v4257_v28 = vmul.f32 %v7301_v37, %v4218_v17  ;;  %v4298_v30 = vadd.f32 %v7316_v38, %v4259_v34  ;;  %v4660_v34 = vld [vmem:[%s6114_s24 + $0x10] sm:$0xff] }
 0x349   : > { %v4129_v58 = vld [vmem:[#allocation3 + $0xe0] sm:$0xff]  ;;  %5692 = vmatmul.mubr.msk.bf16.gmra.mxu1 %vm777_vm0, %v4348_v11  ;;  %v4223_v31 = vld [vmem:[#allocation3 + $0xd0] sm:$0xff]  ;;  %v4327_v23 = vmax.f32 %v4295_v41, 0.0 }
 0x34a   : > { %4195 = vst.msk [vmem:[#allocation3 + $0xf0] sm:$0xff] %vm777_vm0, %v4163_v57  ;;  %v4161_v42 = vadd.f32 %v4129_v58, %v4086_v1  ;;  %v4296_v15 = vadd.f32 %v7316_v38, %v4257_v28  ;;  %v4330_v33 = vmax.f32 %v4298_v30, 0.0  ;;  %v4262_v29 = vmul.f32 %v7301_v37, %v4223_v31  ;;  %v4658_v57 = vld [vmem:[%s6114_s24] sm:$0xff] }
 0x34b   : > { %v4132_v10 = vld [vmem:[#allocation3 + $0xf8] sm:$0xff]  ;;  %v4221_v40 = vld [vmem:[#allocation3 + $0xc0] sm:$0xff] }
 0x34c   : > { %4193 = vst.msk [vmem:[#allocation3 + $0xe0] sm:$0xff] %vm777_vm0, %v4161_v42  ;;  %v4164_v47 = vadd.f32 %v5670_v7, %v4132_v10  ;;  %v4328_v53 = vmax.f32 %v4296_v15, 0.0  ;;  %v4260_v20 = vmul.f32 %v7301_v37, %v4221_v40  ;;  %v4350_v56 = vpack.c.bf16 %v4330_v33, %v4329_v25  ;;  %v4661_v7 = vld [vmem:[%s6114_s24 + $0x18] sm:$0xff]  ;;  %v4659_v33 = vld [vmem:[%s6114_s24 + $0x8] sm:$0xff] }
 0x34d   : > { %v4130_v12 = vld [vmem:[#allocation3 + $0xe8] sm:$0xff]  ;;  %v4224_v27 = vld [vmem:[#allocation3 + $0xd8] sm:$0xff]  ;;  %v4301_v3 = vadd.f32 %v7316_v38, %v4262_v29 }
 0x34e   : > { %4196 = vst.msk [vmem:[#allocation3 + $0xf8] sm:$0xff] %vm777_vm0, %v4164_v47  ;;  %v4162_v9 = vadd.f32 %v4130_v12, %v4089_v36  ;;  %v4349_v0 = vpack.c.bf16 %v4328_v53, %v4327_v23  ;;  %v4263_v32 = vmul.f32 %v7301_v37, %v4224_v27  ;;  %v4299_v13 = vadd.f32 %v7316_v38, %v4260_v20  ;;  %v4664_v36 = vld [vmem:[%s6114_s24 + $0x30] sm:$0xff] }
 0x34f   : > { %v4222_v35 = vld [vmem:[#allocation3 + $0xc8] sm:$0xff]  ;;  %v4333_v50 = vmax.f32 %v4301_v3, 0.0 }
 0x350   : > { %4194 = vst.msk [vmem:[#allocation3 + $0xe8] sm:$0xff] %vm777_vm0, %v4162_v9  ;;  %5695 = vmatprep.mubr.msk.bf16.mxu1 %vm777_vm0, %v4349_v0  ;;  %v4261_v5 = vmul.f32 %v7301_v37, %v4222_v35  ;;  %v4302_v2 = vadd.f32 %v7316_v38, %v4263_v32  ;;  %v4331_v59 = vmax.f32 %v4299_v13, 0.0  ;;  %v4662_v0 = vld [vmem:[%s6114_s24 + $0x20] sm:$0xff] }
 0x351   : > { %5696 = vmatmul.mubr.msk.bf16.gmra.mxu1 %vm777_vm0, %v4350_v56  ;;  %v4227_v52 = vld [vmem:[#allocation3 + $0xf0] sm:$0xff] }
 0x352   : > { %v4300_v54 = vadd.f32 %v7316_v38, %v4261_v5  ;;  %v4334_v16 = vmax.f32 %v4302_v2, 0.0  ;;  %v4266_v4 = vmul.f32 %v7301_v37, %v4227_v52  ;;  %v4665_v2 = vld [vmem:[%s6114_s24 + $0x38] sm:$0xff] }
 0x353   : > { %v4225_v63 = vld [vmem:[#allocation3 + $0xe0] sm:$0xff] }
 0x354   : > { %v4332_v46 = vmax.f32 %v4300_v54, 0.0  ;;  %v4264_v14 = vmul.f32 %v7301_v37, %v4225_v63  ;;  %v4352_v21 = vpack.c.bf16 %v4334_v16, %v4333_v50  ;;  %v4305_v6 = vadd.f32 %v7316_v38, %v4266_v4 }
 0x355   : > { %v4228_v55 = vld [vmem:[#allocation3 + $0xf8] sm:$0xff] }
 0x356   : > { %v4351_v62 = vpack.c.bf16 %v4332_v46, %v4331_v59  ;;  %v4267_v24 = vmul.f32 %v7301_v37, %v4228_v55  ;;  %v4303_v39 = vadd.f32 %v7316_v38, %v4264_v14  ;;  %v4337_v18 = vmax.f32 %v4305_v6, 0.0  ;;  %v4663_v59 = vld [vmem:[%s6114_s24 + $0x28] sm:$0xff] }
 0x357   : > { %v4226_v8 = vld [vmem:[#allocation3 + $0xe8] sm:$0xff] }
 0x358   : > { %5699 = vmatprep.mubr.msk.bf16.mxu1 %vm777_vm0, %v4351_v62  ;;  %v4265_v61 = vmul.f32 %v7301_v37, %v4226_v8  ;;  %v4306_v60 = vadd.f32 %v7316_v38, %v4267_v24  ;;  %v4335_v43 = vmax.f32 %v4303_v39, 0.0  ;;  %v7476_v37 = vld [vmem:[%s7673_s8] ss:$0 sm:$0xff]  ;;  %v4668_v62 = vld [vmem:[%s6114_s24 + $0x50] sm:$0xff] }
 0x359   : > { %5700 = vmatmul.mubr.msk.bf16.gmra.mxu1 %vm777_vm0, %v4352_v21 }
 0x35a   : > { %v4304_v19 = vadd.f32 %v7316_v38, %v4265_v61  ;;  %v4338_v44 = vmax.f32 %v4306_v60, 0.0  ;;  %v7481_v38 = vld [vmem:[%s7674_s9] ss:$0 sm:$0xff] }
 0x35b   : > { %v4666_v60 = vld [vmem:[%s6114_s24 + $0x40] sm:$0xff] }
 0x35c   : > { %v4336_v1 = vmax.f32 %v4304_v19, 0.0  ;;  %v4354_v22 = vpack.c.bf16 %v4338_v44, %v4337_v18  ;;  %v4669_v18 = vld [vmem:[%s6114_s24 + $0x58] sm:$0xff] }
 0x35e   : > { %v4353_v26 = vpack.c.bf16 %v4336_v1, %v4335_v43 }
 0x360   : > { %5703 = vmatprep.mubr.msk.bf16.mxu1 %vm777_vm0, %v4353_v26 }
 0x361   : > { %5704 = vmatmul.mubr.msk.bf16.gmra.mxu1 %vm777_vm0, %v4354_v22 }
 0x3e9   : > { %v5677_v49 = vpop.f32.mrf.mxu1 }
 0x3ea   : > { %v4589_v45 = vmul.f32 %v5677_v49, %v7476_v37 }
 0x3eb   : > { %v4453_v48 = vpop.f32.mrf.mxu1 }
 0x3ec   : > { %v4628_v11 = vadd.f32 %v7481_v38, %v4589_v45  ;;  %v4587_v17 = vmul.f32 %v7476_v37, %v4453_v48  ;;  %v4667_v48 = vld [vmem:[%s6114_s24 + $0x48] sm:$0xff] }
 0x3ed   : > { %v5678_v28 = vpop.f32.mrf.mxu1 }
 0x3ee   : > { %v4692_v41 = vadd.f32 %v4660_v34, %v4628_v11  ;;  %v4626_v30 = vadd.f32 %v7481_v38, %v4587_v17  ;;  %v4590_v58 = vmul.f32 %v5678_v28, %v7476_v37 }
 0x3ef   : > { %v4456_v51 = vpop.f32.mrf.mxu1 }
 0x3f0   : > { %v4724_v42 = vmax.f32 %v4692_v41, 0.0  ;;  %v4690_v15 = vadd.f32 %v4658_v57, %v4626_v30  ;;  %v4629_v31 = vadd.f32 %v7481_v38, %v4590_v58  ;;  %v4588_v10 = vmul.f32 %v7476_v37, %v4456_v51  ;;  %v4672_v30 = vld [vmem:[%s6114_s24 + $0x70] sm:$0xff] }
 0x3f1   : > { %v5681_v40 = vpop.f32.mrf.mxu1 }
 0x3f2   : > { %4756 = vst [vmem:[%s7496_s13 + $0x10] sm:$0xff] %v4724_v42  ;;  %v4722_v47 = vmax.f32 %v4690_v15, 0.0  ;;  %v4693_v23 = vadd.f32 %v4661_v7, %v4629_v31  ;;  %v4627_v53 = vadd.f32 %v7481_v38, %v4588_v10  ;;  %v4593_v20 = vmul.f32 %v5681_v40, %v7476_v37  ;;  %v4670_v31 = vld [vmem:[%s6114_s24 + $0x60] sm:$0xff] }
 0x3f3   : > { %v4469_v12 = vpop.f32.mrf.mxu1 }
 0x3f4   : > { %4754 = vst [vmem:[%s7496_s13] sm:$0xff] %v4722_v47  ;;  %v4725_v25 = vmax.f32 %v4693_v23, 0.0  ;;  %v4691_v27 = vadd.f32 %v4659_v33, %v4627_v53  ;;  %v4632_v29 = vadd.f32 %v7481_v38, %v4593_v20  ;;  %v4591_v9 = vmul.f32 %v7476_v37, %v4469_v12  ;;  %v4673_v53 = vld [vmem:[%s6114_s24 + $0x78] sm:$0xff] }
 0x3f5   : > { %v5682_v32 = vpop.f32.mrf.mxu1 }
 0x3f6   : > { %4757 = vst [vmem:[%s7496_s13 + $0x18] sm:$0xff] %v4725_v25  ;;  %v4723_v56 = vmax.f32 %v4691_v27, 0.0  ;;  %v4696_v35 = vadd.f32 %v4664_v36, %v4632_v29  ;;  %v4630_v5 = vadd.f32 %v7481_v38, %v4591_v9  ;;  %v4594_v13 = vmul.f32 %v5682_v32, %v7476_v37  ;;  %v4671_v29 = vld [vmem:[%s6114_s24 + $0x68] sm:$0xff] }
 0x3f7   : > { %v4472_v3 = vpop.f32.mrf.mxu1 }
 0x3f8   : > { %4755 = vst [vmem:[%s7496_s13 + $0x8] sm:$0xff] %v4723_v56  ;;  %v4728_v54 = vmax.f32 %v4696_v35, 0.0  ;;  %v4694_v52 = vadd.f32 %v4662_v0, %v4630_v5  ;;  %v4633_v16 = vadd.f32 %v7481_v38, %v4594_v13  ;;  %v4592_v63 = vmul.f32 %v7476_v37, %v4472_v3  ;;  %v4676_v5 = vld [vmem:[%s6114_s24 + $0x90] sm:$0xff] }
 0x3f9   : > { %v5685_v46 = vpop.f32.mrf.mxu1 }
 0x3fa   : > { %4760 = vst [vmem:[%s7496_s13 + $0x30] sm:$0xff] %v4728_v54  ;;  %v4726_v14 = vmax.f32 %v4694_v52, 0.0  ;;  %v4697_v50 = vadd.f32 %v4665_v2, %v4633_v16  ;;  %v4631_v55 = vadd.f32 %v7481_v38, %v4592_v63  ;;  %v4597_v4 = vmul.f32 %v5685_v46, %v7476_v37  ;;  %v4674_v16 = vld [vmem:[%s6114_s24 + $0x80] sm:$0xff] }
 0x3fb   : > { %v4485_v24 = vpop.f32.mrf.mxu1 }
 0x3fc   : > { %4758 = vst [vmem:[%s7496_s13 + $0x20] sm:$0xff] %v4726_v14  ;;  %v4729_v21 = vmax.f32 %v4697_v50, 0.0  ;;  %v4695_v8 = vadd.f32 %v4663_v59, %v4631_v55  ;;  %v4636_v61 = vadd.f32 %v7481_v38, %v4597_v4  ;;  %v4595_v39 = vmul.f32 %v7476_v37, %v4485_v24  ;;  %v4677_v55 = vld [vmem:[%s6114_s24 + $0x98] sm:$0xff] }
 0x3fd   : > { %v5686_v6 = vpop.f32.mrf.mxu1 }
 0x3fe   : > { %4761 = vst [vmem:[%s7496_s13 + $0x38] sm:$0xff] %v4729_v21  ;;  %v4727_v19 = vmax.f32 %v4695_v8, 0.0  ;;  %v4700_v44 = vadd.f32 %v4668_v62, %v4636_v61  ;;  %v4634_v43 = vadd.f32 %v7481_v38, %v4595_v39  ;;  %v4598_v1 = vmul.f32 %v5686_v6, %v7476_v37  ;;  %v4675_v61 = vld [vmem:[%s6114_s24 + $0x88] sm:$0xff] }
 0x3ff   : > { %v4488_v26 = vpop.f32.mrf.mxu1 }
 0x400   : > { %4759 = vst [vmem:[%s7496_s13 + $0x28] sm:$0xff] %v4727_v19  ;;  %v4732_v22 = vmax.f32 %v4700_v44, 0.0  ;;  %v4698_v49 = vadd.f32 %v4666_v60, %v4634_v43  ;;  %v4637_v45 = vadd.f32 %v7481_v38, %v4598_v1  ;;  %v4596_v34 = vmul.f32 %v7476_v37, %v4488_v26  ;;  %v4680_v43 = vld [vmem:[%s6114_s24 + $0xb0] sm:$0xff] }
 0x401   : > { %v5689_v11 = vpop.f32.mrf.mxu1 }
 0x402   : > { %4764 = vst [vmem:[%s7496_s13 + $0x50] sm:$0xff] %v4732_v22  ;;  %v4730_v17 = vmax.f32 %v4698_v49, 0.0  ;;  %v4701_v57 = vadd.f32 %v4669_v18, %v4637_v45  ;;  %v4635_v28 = vadd.f32 %v7481_v38, %v4596_v34  ;;  %v4601_v41 = vmul.f32 %v5689_v11, %v7476_v37  ;;  %v4678_v45 = vld [vmem:[%s6114_s24 + $0xa0] sm:$0xff] }
 0x403   : > { %v4501_v58 = vpop.f32.mrf.mxu1 }
 0x404   : > { %4762 = vst [vmem:[%s7496_s13 + $0x40] sm:$0xff] %v4730_v17  ;;  %v4733_v7 = vmax.f32 %v4701_v57, 0.0  ;;  %v4699_v51 = vadd.f32 %v4667_v48, %v4635_v28  ;;  %v4640_v42 = vadd.f32 %v7481_v38, %v4601_v41  ;;  %v4599_v15 = vmul.f32 %v7476_v37, %v4501_v58  ;;  %v4681_v28 = vld [vmem:[%s6114_s24 + $0xb8] sm:$0xff] }
 0x405   : > { %v5690_v10 = vpop.f32.mrf.mxu1 }
 0x406   : > { %4765 = vst [vmem:[%s7496_s13 + $0x58] sm:$0xff] %v4733_v7  ;;  %v4731_v33 = vmax.f32 %v4699_v51, 0.0  ;;  %v4704_v40 = vadd.f32 %v4672_v30, %v4640_v42  ;;  %v4638_v47 = vadd.f32 %v7481_v38, %v4599_v15  ;;  %v4602_v23 = vmul.f32 %v5690_v10, %v7476_v37  ;;  %v4679_v42 = vld [vmem:[%s6114_s24 + $0xa8] sm:$0xff] }
 0x407   : > { %v4504_v20 = vpop.f32.mrf.mxu1 }
 0x408   : > { %4763 = vst [vmem:[%s7496_s13 + $0x48] sm:$0xff] %v4731_v33  ;;  %v4736_v36 = vmax.f32 %v4704_v40, 0.0  ;;  %v4702_v12 = vadd.f32 %v4670_v31, %v4638_v47  ;;  %v4641_v25 = vadd.f32 %v7481_v38, %v4602_v23  ;;  %v4600_v27 = vmul.f32 %v7476_v37, %v4504_v20  ;;  %v4684_v47 = vld [vmem:[%s6114_s24 + $0xd0] sm:$0xff] }
 0x409   : > { %v5693_v9 = vpop.f32.mrf.mxu1 }
 0x40a   : > { %4768 = vst [vmem:[%s7496_s13 + $0x70] sm:$0xff] %v4736_v36  ;;  %v4734_v0 = vmax.f32 %v4702_v12, 0.0  ;;  %v4705_v32 = vadd.f32 %v4673_v53, %v4641_v25  ;;  %v4639_v56 = vadd.f32 %v7481_v38, %v4600_v27  ;;  %v4605_v35 = vmul.f32 %v5693_v9, %v7476_v37  ;;  %v4682_v25 = vld [vmem:[%s6114_s24 + $0xc0] sm:$0xff] }
 0x40b   : > { %v4517_v13 = vpop.f32.mrf.mxu1 }
 0x40c   : > { %4766 = vst [vmem:[%s7496_s13 + $0x60] sm:$0xff] %v4734_v0  ;;  %v4737_v2 = vmax.f32 %v4705_v32, 0.0  ;;  %v4703_v3 = vadd.f32 %v4671_v29, %v4639_v56  ;;  %v4644_v54 = vadd.f32 %v7481_v38, %v4605_v35  ;;  %v4603_v52 = vmul.f32 %v7476_v37, %v4517_v13  ;;  %v4685_v56 = vld [vmem:[%s6114_s24 + $0xd8] sm:$0xff] }
 0x40d   : > { %v5694_v63 = vpop.f32.mrf.mxu1 }
 0x40e   : > { %4769 = vst [vmem:[%s7496_s13 + $0x78] sm:$0xff] %v4737_v2  ;;  %v4735_v59 = vmax.f32 %v4703_v3, 0.0  ;;  %v4708_v46 = vadd.f32 %v4676_v5, %v4644_v54  ;;  %v4642_v14 = vadd.f32 %v7481_v38, %v4603_v52  ;;  %v4606_v50 = vmul.f32 %v5694_v63, %v7476_v37  ;;  %v4683_v54 = vld [vmem:[%s6114_s24 + $0xc8] sm:$0xff] }
 0x40f   : > { %v4520_v4 = vpop.f32.mrf.mxu1 }
 0x410   : > { %4767 = vst [vmem:[%s7496_s13 + $0x68] sm:$0xff] %v4735_v59  ;;  %v4740_v62 = vmax.f32 %v4708_v46, 0.0  ;;  %v4706_v24 = vadd.f32 %v4674_v16, %v4642_v14  ;;  %v4645_v21 = vadd.f32 %v7481_v38, %v4606_v50  ;;  %v4604_v8 = vmul.f32 %v7476_v37, %v4520_v4  ;;  %v4688_v14 = vld [vmem:[%s6114_s24 + $0xf0] sm:$0xff] }
 0x411   : > { %v5697_v39 = vpop.f32.mrf.mxu1 }
 0x412   : > { %4772 = vst [vmem:[%s7496_s13 + $0x90] sm:$0xff] %v4740_v62  ;;  %v4738_v60 = vmax.f32 %v4706_v24, 0.0  ;;  %v4709_v6 = vadd.f32 %v4677_v55, %v4645_v21  ;;  %v4643_v19 = vadd.f32 %v7481_v38, %v4604_v8  ;;  %v4609_v44 = vmul.f32 %v5697_v39, %v7476_v37  ;;  %v4686_v21 = vld [vmem:[%s6114_s24 + $0xe0] sm:$0xff] }
 0x413   : > { %v4533_v1 = vpop.f32.mrf.mxu1 }
 0x414   : > { %4770 = vst [vmem:[%s7496_s13 + $0x80] sm:$0xff] %v4738_v60  ;;  %v4741_v18 = vmax.f32 %v4709_v6, 0.0  ;;  %v4707_v26 = vadd.f32 %v4675_v61, %v4643_v19  ;;  %v4648_v22 = vadd.f32 %v7481_v38, %v4609_v44  ;;  %v4607_v49 = vmul.f32 %v7476_v37, %v4533_v1  ;;  %v4689_v19 = vld [vmem:[%s6114_s24 + $0xf8] sm:$0xff] }
 0x415   : > { %v5698_v34 = vpop.f32.mrf.mxu1 }
 0x416   : > { %4773 = vst [vmem:[%s7496_s13 + $0x98] sm:$0xff] %v4741_v18  ;;  %v4739_v48 = vmax.f32 %v4707_v26, 0.0  ;;  %v4712_v11 = vadd.f32 %v4680_v43, %v4648_v22  ;;  %v4646_v17 = vadd.f32 %v7481_v38, %v4607_v49  ;;  %v4610_v57 = vmul.f32 %v5698_v34, %v7476_v37  ;;  %v4687_v22 = vld [vmem:[%s6114_s24 + $0xe8] sm:$0xff]  ;;  %s4787_s24 = scalar_lea.sflag [#allocation6], %s6108_s20 }
 0x417   : > { %v4536_v41 = vpop.f32.mrf.mxu1 }
 0x418   : > { %4771 = vst [vmem:[%s7496_s13 + $0x88] sm:$0xff] %v4739_v48  ;;  %v4744_v30 = vmax.f32 %v4712_v11, 0.0  ;;  %v4710_v58 = vadd.f32 %v4678_v45, %v4646_v17  ;;  %v4649_v7 = vadd.f32 %v7481_v38, %v4610_v57  ;;  %v4608_v51 = vmul.f32 %v7476_v37, %v4536_v41 }
 0x419   : > { %v5701_v15 = vpop.f32.mrf.mxu1 }
 0x41a   : > { %4776 = vst [vmem:[%s7496_s13 + $0xb0] sm:$0xff] %v4744_v30  ;;  %v4742_v31 = vmax.f32 %v4710_v58, 0.0  ;;  %v4713_v10 = vadd.f32 %v4681_v28, %v4649_v7  ;;  %v4647_v33 = vadd.f32 %v7481_v38, %v4608_v51  ;;  %v4613_v40 = vmul.f32 %v5701_v15, %v7476_v37 }
 0x41b   : > { %v4549_v23 = vpop.f32.mrf.mxu1 }
 0x41c   : > { %4774 = vst [vmem:[%s7496_s13 + $0xa0] sm:$0xff] %v4742_v31  ;;  %v4745_v53 = vmax.f32 %v4713_v10, 0.0  ;;  %v4711_v20 = vadd.f32 %v4679_v42, %v4647_v33  ;;  %v4652_v36 = vadd.f32 %v7481_v38, %v4613_v40  ;;  %v4611_v12 = vmul.f32 %v7476_v37, %v4549_v23 }
 0x41d   : > { %v5702_v27 = vpop.f32.mrf.mxu1 }
 0x41e   : > { %4777 = vst [vmem:[%s7496_s13 + $0xb8] sm:$0xff] %v4745_v53  ;;  %v4743_v29 = vmax.f32 %v4711_v20, 0.0  ;;  %v4716_v9 = vadd.f32 %v4684_v47, %v4652_v36  ;;  %v4650_v0 = vadd.f32 %v7481_v38, %v4611_v12  ;;  %v4614_v32 = vmul.f32 %v5702_v27, %v7476_v37 }
 0x41f   : > { %v4552_v35 = vpop.f32.mrf.mxu1 }
 0x420   : > { %4775 = vst [vmem:[%s7496_s13 + $0xa8] sm:$0xff] %v4743_v29  ;;  %v4748_v5 = vmax.f32 %v4716_v9, 0.0  ;;  %v4714_v13 = vadd.f32 %v4682_v25, %v4650_v0  ;;  %v4653_v2 = vadd.f32 %v7481_v38, %v4614_v32  ;;  %v4612_v3 = vmul.f32 %v7476_v37, %v4552_v35 }
 0x421   : > { %v5705_v52 = vpop.f32.mrf.mxu1 }
 0x422   : > { %4780 = vst [vmem:[%s7496_s13 + $0xd0] sm:$0xff] %v4748_v5  ;;  %v4746_v16 = vmax.f32 %v4714_v13, 0.0  ;;  %v4717_v63 = vadd.f32 %v4685_v56, %v4653_v2  ;;  %v4651_v59 = vadd.f32 %v7481_v38, %v4612_v3  ;;  %v4617_v46 = vmul.f32 %v5705_v52, %v7476_v37 }
 0x423   : > { %v4565_v50 = vpop.f32.mrf.mxu1 }
 0x424   : > { %4778 = vst [vmem:[%s7496_s13 + $0xc0] sm:$0xff] %v4746_v16  ;;  %v4749_v55 = vmax.f32 %v4717_v63, 0.0  ;;  %v4715_v4 = vadd.f32 %v4683_v54, %v4651_v59  ;;  %v4656_v62 = vadd.f32 %v7481_v38, %v4617_v46  ;;  %v4615_v24 = vmul.f32 %v7476_v37, %v4565_v50 }
 0x425   : > { %v5706_v8 = vpop.f32.mrf.mxu1 }
 0x426   : > { %4781 = vst [vmem:[%s7496_s13 + $0xd8] sm:$0xff] %v4749_v55  ;;  %v4747_v61 = vmax.f32 %v4715_v4, 0.0  ;;  %v4720_v39 = vadd.f32 %v4688_v14, %v4656_v62  ;;  %v4654_v60 = vadd.f32 %v7481_v38, %v4615_v24  ;;  %v4618_v6 = vmul.f32 %v5706_v8, %v7476_v37 }
 0x427   : > { %v4568_v44 = vpop.f32.mrf.mxu1 }
 0x428   : > { %4779 = vst [vmem:[%s7496_s13 + $0xc8] sm:$0xff] %v4747_v61  ;;  %v4752_v43 = vmax.f32 %v4720_v39, 0.0  ;;  %v4718_v1 = vadd.f32 %v4686_v21, %v4654_v60  ;;  %v4657_v18 = vadd.f32 %v7481_v38, %v4618_v6  ;;  %v4616_v26 = vmul.f32 %v7476_v37, %v4568_v44 }
 0x42a   : > { %4784 = vst [vmem:[%s7496_s13 + $0xf0] sm:$0xff] %v4752_v43  ;;  %v4750_v49 = vmax.f32 %v4718_v1, 0.0  ;;  %v4721_v45 = vadd.f32 %v4689_v19, %v4657_v18  ;;  %v4655_v34 = vadd.f32 %v7481_v38, %v4616_v26 }
 0x42c   : > { %4782 = vst [vmem:[%s7496_s13 + $0xe0] sm:$0xff] %v4750_v49  ;;  %v4753_v48 = vmax.f32 %v4721_v45, 0.0  ;;  %v4719_v11 = vadd.f32 %v4687_v22, %v4655_v34 }
 0x42e   : > { %4785 = vst [vmem:[%s7496_s13 + $0xf8] sm:$0xff] %v4753_v48  ;;  %v4751_v37 = vmax.f32 %v4719_v11, 0.0 }
 0x430   : > { %4783 = vst [vmem:[%s7496_s13 + $0xe8] sm:$0xff] %v4751_v37 }
 0x431   : > { %5870 = shalt.err (!%p5867_p0)
}
 0x432   : > { %s5871_s19 = scalar_lea.hbm %s7618_s21, 4096  ;;  %s5875_s23 = scalar_lea.hbm %s7675_s10, 8192 }
 0x433   : > { %p5872_p5 = scmp.ne.s32.totalorder %s7618_s21, %s5871_s19  ;;  %p5876_p4 = scmp.lt.s32.totalorder %s7618_s21, %s7675_s10 }
 0x434   : > { %p5877_p6 = scmp.lt.s32.totalorder %s5875_s23, %s5871_s19 }
 0x435   : > { %p5873_p9 = pnand %p5872_p5, %p7700_p11 }
 0x436   : > { %p5878_p8 = por %p5877_p6, %p5876_p4 }
 0x437   : > { %p5874_p1 = pneg %p5873_p9 }
 0x439   : > { %p5879_p3 = pnand %p5878_p8, %p5874_p1 }
 0x43b   : > { %5882 = shalt.err (!%p5879_p3)
}
 0x43c   : > { %s5935_s25 = smov 128   ;;  %s5936_s12 = smov 8  }
 0x43d   : > { %5717 = dma.vmem_to_hbm [thread:$0]  (%p7700_p11), %s7620_s30, 4096, %s7618_s21, %s4787_s24, %s5935_s25, %s5935_s25, %s5936_s12  }
 0x43e PF: > { %s7701_s11 = sld [smem:[#allocation13_spill]]  ;;  %p7704_p12 = scmp.ge.s32.totalorder %s5925_s16, 2 }
 0x43f   : > { %s7702_s17 = sld [smem:[#allocation14_spill]] }
 0x444   : > { %s4815_s26 = sand.u32 1, %s7701_s11  }
 0x445   : > { %p7703_p7 = scmp.ne.s32.totalorder %s7702_s17, 0  ;;  %s4816_s27 = scalar_lea.sflag [#allocation6], %s4815_s26 }
 0x447   : > { %p5728_p10 = pnand %p7704_p12, %p7703_p7 }
 0x449   : > { %p5729_p2 = pneg %p5728_p10 }
 0x44b   : > { %5908 = dma.done.wait (%p5729_p2), %s4816_s27, 4096  }
 0x44c   : > { %5910 = vsyncadd (%p5729_p2), %s4816_s27, 4294963200  ;;  %s7705_s16 = sld [smem:[#allocation15_spill]]  ;;  %s7706_s13 = smov %s5917_s14 }
 0x44d   : > { %s7707_s14 = smov %s5921_s15  ;;  %s7708_s15 = smov %s6063_s18 }
 0x452   : > { %p24_p13 = scmp.ge.s32.totalorder %s7705_s16, 4  }
 0x454   :  { %26 = sbr.rel (!%p24_p13) target bundleno = 8 (0x8), region = 128 }
 0x459   :  { %4821 = vsyncpa [#allocation5], 1 }
 0x45a   :  { %4823 = vsyncpa [#allocation5 + $0x1], 1 }
 0x45b   :  { %4824 = vsyncpa [#allocation8], 1 }
 0x45c   :  { %4825 = vsyncpa [#allocation6], 1 }
 0x45d   :  { %4827 = vsyncpa [#allocation6 + $0x1], 1 }

</bundles_post_ra>
